<compile_context>
chip_gen: v6e
topology: v6e:2x2x1
jax: 0.10.0
libtpu: 0.0.40
codegen_flags: <defaults>
</compile_context>

<pallas_src>
import math
import jax
import jax.numpy as jnp
from jax.experimental import pallas as pl
from jax.experimental.pallas import tpu as pltpu

# The PyTorch module reads `channels`, `audio_dim`, `device` from globals; pinned here
# at small, shape-consistent values (L must equal audio_dim for the Linear stage).
CHANNELS = 4        # conv1 input channels
AUDIO_DIM = 16      # sequence length L == linear_1 in-features
LATENT = 8
BATCH = 2
K = 3               # conv kernel size
BN_EPS = 1e-5

# Lane-padded linear dims (zero padding is mathematically exact, see prepare_params).
LIN1_PAD = 896      # 784 -> 896
LIN2_PAD = 512      # 392 -> 512


# ------------------------------ in-kernel helpers ------------------------------------
def _bn_tanh(y, gamma, beta):
    """Training-mode BatchNorm1d (single-pass biased batch stats) + tanh on (B*L, C)."""
    mean = jnp.mean(y, axis=0, keepdims=True)
    var = jnp.mean(y * y, axis=0, keepdims=True) - mean * mean
    scale = gamma * jax.lax.rsqrt(var + BN_EPS)
    shift = beta - mean * scale
    return jnp.tanh(y * scale + shift)


def _conv_bn_tanh_cl(x_blc, w2d, gamma, beta):
    """Conv1d(K=3, stride=1, pad=1) + BN + tanh on a channels-last (B, L, Cin) value.

    w2d: (K*Cin, Cout) tap-major.  Conv bias intentionally absent (cancelled by BN).
    """
    B, L, Cin = x_blc.shape
    zrow = jnp.zeros((B, 1, Cin), x_blc.dtype)
    xp = jnp.concatenate([zrow, x_blc, zrow], axis=1)                       # (B, L+2, Cin)
    cols = jnp.concatenate([xp[:, k:k + L, :] for k in range(K)], axis=-1)  # (B, L, K*Cin)
    y = jnp.dot(cols.reshape(B * L, K * Cin), w2d,
                preferred_element_type=jnp.float32)                         # (B*L, Cout)
    return _bn_tanh(y, gamma, beta).reshape(B, L, -1)


# ------------------------------- fused encoder kernel --------------------------------
def _encoder_kernel(x_ref, w1_ref, w2_ref, w3_ref, misc_ref,
                    wl1_hbm, wl2_hbm, wl3_hbm,
                    o_ref,
                    wl1_v, wl2_v, wl3_v, sem):
    f32 = jnp.float32
    B, CIN, L = x_ref.shape

    # Kick off the linear-weight DMAs immediately; they complete under the conv stage.
    cp1 = pltpu.make_async_copy(wl1_hbm, wl1_v, sem.at[0])
    cp2 = pltpu.make_async_copy(wl2_hbm, wl2_v, sem.at[1])
    cp3 = pltpu.make_async_copy(wl3_hbm, wl3_v, sem.at[2])
    cp1.start()
    cp2.start()
    cp3.start()

    # ---- conv1 + bn1 + tanh: NCL input, transpose folded into the im2col matmul -----
    x = x_ref[...]                                                # (B, Cin, L)
    zc = jnp.zeros((B, CIN, 1), x.dtype)
    xp = jnp.concatenate([zc, x, zc], axis=-1)                    # (B, Cin, L+2), pad=1
    w1 = w1_ref[...]                                              # (K*Cin, 256) tap-major
    rows = []
    for b in range(B):                                            # static loop, B tiny
        cols_b = jnp.concatenate([xp[b, :, k:k + L] for k in range(K)], axis=0)  # (K*Cin, L)
        rows.append(jax.lax.dot_general(cols_b, w1, (((0,), (0,)), ((), ())),
                                        preferred_element_type=f32))             # (L, 256)
    y1 = jnp.concatenate(rows, axis=0)                            # (B*L, 256)
    h = _bn_tanh(y1, misc_ref[0:1, :256], misc_ref[1:2, :256]).reshape(B, L, 256)

    # ---- conv2 / conv3 + bn + tanh (channels-last) -----------------------------------
    h = _conv_bn_tanh_cl(h, w2_ref[...], misc_ref[2:3, :128], misc_ref[3:4, :128])
    h = _conv_bn_tanh_cl(h, w3_ref[...], misc_ref[4:5, :64], misc_ref[5:6, :64])  # (B,L,64)

    # ---- linear stage: contract on L (folds the NLC->NCL transpose into lin1) --------
    cp1.wait()
    wl1 = wl1_v[...]                                              # (L, 896)
    rows = []
    for b in range(B):
        rows.append(jax.lax.dot_general(h[b], wl1, (((0,), (0,)), ((), ())),
                                        preferred_element_type=f32))   # (64, 896)
    y = jnp.tanh(jnp.concatenate(rows, axis=0) + misc_ref[6:7, :])     # (B*64, 896)

    cp2.wait()
    y = jnp.tanh(jnp.dot(y, wl2_v[...], preferred_element_type=f32)
                 + misc_ref[7:8, :LIN2_PAD])                           # (B*64, 512)

    cp3.wait()
    y = jnp.tanh(jnp.dot(y, wl3_v[...], preferred_element_type=f32)
                 + misc_ref[8:9, :LATENT])                             # (B*64, LATENT)

    # TODO(synk): nn.BatchNorm1d running_mean/running_var buffer updates (training-time
    # side effect) are not materialized; only the forward activations are produced.
    o_ref[...] = y.reshape(o_ref.shape).astype(o_ref.dtype)


def encoder_forward(x_ncl, prep):
    """x_ncl: (B, CHANNELS, L) PyTorch NCL input -> (B, 64, LATENT)."""
    B = x_ncl.shape[0]
    vmem = pl.BlockSpec(memory_space=pltpu.MemorySpace.VMEM)
    hbm = pl.BlockSpec(memory_space=pl.ANY)      # linear weights: manual async DMA
    return pl.pallas_call(
        _encoder_kernel,
        out_shape=jax.ShapeDtypeStruct((B, 64, LATENT), jnp.float32),
        in_specs=[vmem, vmem, vmem, vmem, vmem, hbm, hbm, hbm],
        out_specs=vmem,
        scratch_shapes=[
            pltpu.VMEM((AUDIO_DIM, LIN1_PAD), jnp.float32),   # wl1 landing buffer
            pltpu.VMEM((LIN1_PAD, LIN2_PAD), jnp.float32),    # wl2 landing buffer
            pltpu.VMEM((LIN2_PAD, LATENT), jnp.float32),      # wl3 landing buffer
            pltpu.SemaphoreType.DMA((3,)),
        ],
    )(x_ncl, prep["w1"], prep["w2"], prep["w3"], prep["misc"],
      prep["wl1"], prep["wl2"], prep["wl3"])


# ------------------------------- deterministic params --------------------------------
def init_params(key):
    # 3 conv layers x 4 draws + 3 linear layers x 2 draws = 18 keys (24 for slack).
    keys = iter(jax.random.split(key, 24))

    def unif(shape, scale):
        return jax.random.uniform(next(keys), shape, jnp.float32, -scale, scale)

    params = {}
    for idx, (cin, cout) in enumerate([(CHANNELS, 256), (256, 128), (128, 64)], 1):
        s = 1.0 / math.sqrt(cin * K)
        params[f"conv{idx}"] = dict(
            w=unif((K, cin, cout), s),            # torch (Cout, Cin, K) stored tap-major
            b=unif((cout,), s),
            gamma=1.0 + 0.1 * unif((cout,), 1.0),
            beta=0.1 * unif((cout,), 1.0),
        )
    for idx, (fin, fout) in enumerate([(AUDIO_DIM, 784), (784, 392), (392, LATENT)], 1):
        s = 1.0 / math.sqrt(fin)
        params[f"lin{idx}"] = dict(w=unif((fin, fout), s), b=unif((fout,), s))
    return params


def prepare_params(params):
    """One-time packing/padding of parameters into the kernel's input layout.

    * conv weights -> (K*Cin, Cout) tap-major matrices; conv biases dropped (exactly
      cancelled by training-mode BatchNorm mean subtraction).
    * all small per-channel vectors packed into one (9, 896) array -> one DMA.
    * linear weights zero-padded to lane-aligned shapes; exact because padded
      activation columns are tanh(0 + 0) = 0 and meet zero weight rows downstream.
    """
    prep = {}
    for i in (1, 2, 3):
        w = params[f"conv{i}"]["w"]
        kk, cin, cout = w.shape
        prep[f"w{i}"] = w.reshape(kk * cin, cout)

    misc = jnp.zeros((9, LIN1_PAD), jnp.float32)
    small = [params["conv1"]["gamma"], params["conv1"]["beta"],
             params["conv2"]["gamma"], params["conv2"]["beta"],
             params["conv3"]["gamma"], params["conv3"]["beta"],
             params["lin1"]["b"], params["lin2"]["b"], params["lin3"]["b"]]
    for r, v in enumerate(small):
        misc = misc.at[r, :v.shape[0]].set(v)
    prep["misc"] = misc

    prep["wl1"] = jnp.zeros((AUDIO_DIM, LIN1_PAD), jnp.float32).at[:, :784].set(params["lin1"]["w"])
    prep["wl2"] = jnp.zeros((LIN1_PAD, LIN2_PAD), jnp.float32).at[:784, :392].set(params["lin2"]["w"])
    prep["wl3"] = jnp.zeros((LIN2_PAD, LATENT), jnp.float32).at[:392, :].set(params["lin3"]["w"])
    return prep


# -------------------------------- pure-JAX reference ---------------------------------
def ref_forward(x_ncl, params):
    x = x_ncl
    for i in (1, 2, 3):
        p = params[f"conv{i}"]
        w_t = jnp.transpose(p["w"], (2, 1, 0))                # (Cout, Cin, K)
        y = jax.lax.conv_general_dilated(
            x, w_t, window_strides=(1,), padding=((1, 1),),
            dimension_numbers=("NCH", "OIH", "NCH"))
        y = y + p["b"][None, :, None]
        mean = jnp.mean(y, axis=(0, 2), keepdims=True)
        var = jnp.mean((y - mean) ** 2, axis=(0, 2), keepdims=True)
        x = jnp.tanh((y - mean) * jax.lax.rsqrt(var + BN_EPS)
                     * p["gamma"][None, :, None] + p["beta"][None, :, None])
    for i in (1, 2, 3):
        p = params[f"lin{i}"]
        x = jnp.tanh(x @ p["w"] + p["b"])
    return x


if __name__ == "__main__":
    key = jax.random.PRNGKey(0)
    pkey, xkey = jax.random.split(key)
    params = init_params(pkey)
    prep = prepare_params(params)          # one-time packing, not part of the forward
    x = jax.random.normal(xkey, (BATCH, CHANNELS, AUDIO_DIM), jnp.float32)

    out = jax.jit(encoder_forward)(x, prep)
    out = jax.block_until_ready(out)
    assert out.shape == (BATCH, 64, LATENT), out.shape

    ref = jax.block_until_ready(ref_forward(x, params))
    max_err = float(jnp.max(jnp.abs(out - ref)))
    assert max_err < 2e-3, f"mismatch vs reference: {max_err}"

    print("KERNEL_OK")
</pallas_src>

<mosaic_0001>
module attributes {stable_mosaic.version = 11 : i64} {
  func.func @_encoder_kernel(%arg0: memref<2x4x16xf32, #tpu.memory_space<vmem>>, %arg1: memref<12x256xf32, #tpu.memory_space<vmem>>, %arg2: memref<768x128xf32, #tpu.memory_space<vmem>>, %arg3: memref<384x64xf32, #tpu.memory_space<vmem>>, %arg4: memref<9x896xf32, #tpu.memory_space<vmem>>, %arg5: memref<16x896xf32, #tpu.memory_space<any>>, %arg6: memref<896x512xf32, #tpu.memory_space<any>>, %arg7: memref<512x8xf32, #tpu.memory_space<any>>, %arg8: memref<2x64x8xf32, #tpu.memory_space<vmem>>, %arg9: memref<16x896xf32, #tpu.memory_space<vmem>>, %arg10: memref<896x512xf32, #tpu.memory_space<vmem>>, %arg11: memref<512x8xf32, #tpu.memory_space<vmem>>, %arg12: memref<3x!tpu.dma_semaphore, #tpu.memory_space<semaphore_mem>>) attributes {dimension_semantics = [], scalar_prefetch = 0 : i64, scratch_operands = 4 : i64, tpu.core_type = #tpu.core_type<tc>} {
    %c0_i32 = arith.constant 0 : i32
    %0 = tpu.memref_slice %arg12[%c0_i32] : memref<3x!tpu.dma_semaphore, #tpu.memory_space<semaphore_mem>> -> memref<1x!tpu.dma_semaphore, #tpu.memory_space<semaphore_mem>>
    %1 = tpu.memref_squeeze %0 : memref<1x!tpu.dma_semaphore, #tpu.memory_space<semaphore_mem>> -> memref<!tpu.dma_semaphore, #tpu.memory_space<semaphore_mem>>
    tpu.enqueue_dma source(%arg5 : memref<16x896xf32, #tpu.memory_space<any>>) target(%arg9 : memref<16x896xf32, #tpu.memory_space<vmem>>) target_semaphore(%1 : memref<!tpu.dma_semaphore, #tpu.memory_space<semaphore_mem>>)
    %c1_i32 = arith.constant 1 : i32
    %2 = tpu.memref_slice %arg12[%c1_i32] : memref<3x!tpu.dma_semaphore, #tpu.memory_space<semaphore_mem>> -> memref<1x!tpu.dma_semaphore, #tpu.memory_space<semaphore_mem>>
    %3 = tpu.memref_squeeze %2 : memref<1x!tpu.dma_semaphore, #tpu.memory_space<semaphore_mem>> -> memref<!tpu.dma_semaphore, #tpu.memory_space<semaphore_mem>>
    tpu.enqueue_dma source(%arg6 : memref<896x512xf32, #tpu.memory_space<any>>) target(%arg10 : memref<896x512xf32, #tpu.memory_space<vmem>>) target_semaphore(%3 : memref<!tpu.dma_semaphore, #tpu.memory_space<semaphore_mem>>)
    %c2_i32 = arith.constant 2 : i32
    %4 = tpu.memref_slice %arg12[%c2_i32] : memref<3x!tpu.dma_semaphore, #tpu.memory_space<semaphore_mem>> -> memref<1x!tpu.dma_semaphore, #tpu.memory_space<semaphore_mem>>
    %5 = tpu.memref_squeeze %4 : memref<1x!tpu.dma_semaphore, #tpu.memory_space<semaphore_mem>> -> memref<!tpu.dma_semaphore, #tpu.memory_space<semaphore_mem>>
    tpu.enqueue_dma source(%arg7 : memref<512x8xf32, #tpu.memory_space<any>>) target(%arg11 : memref<512x8xf32, #tpu.memory_space<vmem>>) target_semaphore(%5 : memref<!tpu.dma_semaphore, #tpu.memory_space<semaphore_mem>>)
    %c0 = arith.constant 0 : index
    %c0_0 = arith.constant 0 : index
    %c0_1 = arith.constant 0 : index
    %6 = vector.load %arg0[%c0, %c0_0, %c0_1] : memref<2x4x16xf32, #tpu.memory_space<vmem>>, vector<2x4x16xf32>
    %cst = arith.constant 0.000000e+00 : f32
    %7 = vector.broadcast %cst : f32 to vector<2x4x1xf32>
    %8 = tpu.concatenate %7, %6, %7 in 2 : vector<2x4x1xf32>, vector<2x4x16xf32>, vector<2x4x1xf32> -> vector<2x4x18xf32>
    %c0_2 = arith.constant 0 : index
    %c0_3 = arith.constant 0 : index
    %9 = vector.load %arg1[%c0_2, %c0_3] : memref<12x256xf32, #tpu.memory_space<vmem>>, vector<12x256xf32>
    %10 = vector.extract_strided_slice %8 {offsets = [0, 0, 0], sizes = [1, 4, 16], strides = [1, 1, 1]} : vector<2x4x18xf32> to vector<1x4x16xf32>
    %11 = vector.shape_cast %10 : vector<1x4x16xf32> to vector<4x16xf32>
    %12 = vector.extract_strided_slice %8 {offsets = [0, 0, 1], sizes = [1, 4, 16], strides = [1, 1, 1]} : vector<2x4x18xf32> to vector<1x4x16xf32>
    %13 = vector.shape_cast %12 : vector<1x4x16xf32> to vector<4x16xf32>
    %14 = vector.extract_strided_slice %8 {offsets = [0, 0, 2], sizes = [1, 4, 16], strides = [1, 1, 1]} : vector<2x4x18xf32> to vector<1x4x16xf32>
    %15 = vector.shape_cast %14 : vector<1x4x16xf32> to vector<4x16xf32>
    %16 = tpu.concatenate %11, %13, %15 in 0 : vector<4x16xf32>, vector<4x16xf32>, vector<4x16xf32> -> vector<12x16xf32>
    %cst_4 = arith.constant dense<0.000000e+00> : vector<16x256xf32>
    %17 = tpu.matmul %16, %9, %cst_4 {dimension_numbers = #tpu.dot_dimension_numbers<[0], [0], [1], [1], [0, 1, 1, 1], [], []>} : vector<12x16xf32>, vector<12x256xf32>, vector<16x256xf32> -> vector<16x256xf32>
    %18 = vector.extract_strided_slice %8 {offsets = [1, 0, 0], sizes = [1, 4, 16], strides = [1, 1, 1]} : vector<2x4x18xf32> to vector<1x4x16xf32>
    %19 = vector.shape_cast %18 : vector<1x4x16xf32> to vector<4x16xf32>
    %20 = vector.extract_strided_slice %8 {offsets = [1, 0, 1], sizes = [1, 4, 16], strides = [1, 1, 1]} : vector<2x4x18xf32> to vector<1x4x16xf32>
    %21 = vector.shape_cast %20 : vector<1x4x16xf32> to vector<4x16xf32>
    %22 = vector.extract_strided_slice %8 {offsets = [1, 0, 2], sizes = [1, 4, 16], strides = [1, 1, 1]} : vector<2x4x18xf32> to vector<1x4x16xf32>
    %23 = vector.shape_cast %22 : vector<1x4x16xf32> to vector<4x16xf32>
    %24 = tpu.concatenate %19, %21, %23 in 0 : vector<4x16xf32>, vector<4x16xf32>, vector<4x16xf32> -> vector<12x16xf32>
    %cst_5 = arith.constant dense<0.000000e+00> : vector<16x256xf32>
    %25 = tpu.matmul %24, %9, %cst_5 {dimension_numbers = #tpu.dot_dimension_numbers<[0], [0], [1], [1], [0, 1, 1, 1], [], []>} : vector<12x16xf32>, vector<12x256xf32>, vector<16x256xf32> -> vector<16x256xf32>
    %26 = tpu.concatenate %17, %25 in 0 : vector<16x256xf32>, vector<16x256xf32> -> vector<32x256xf32>
    %c0_6 = arith.constant 0 : index
    %c0_7 = arith.constant 0 : index
    %27 = vector.load %arg4[%c0_6, %c0_7] : memref<9x896xf32, #tpu.memory_space<vmem>>, vector<1x256xf32>
    %c1 = arith.constant 1 : index
    %c0_8 = arith.constant 0 : index
    %28 = vector.load %arg4[%c1, %c0_8] : memref<9x896xf32, #tpu.memory_space<vmem>>, vector<1x256xf32>
    %cst_9 = arith.constant dense<0.000000e+00> : vector<256xf32>
    %29 = vector.multi_reduction <add>, %26, %cst_9 [0] : vector<32x256xf32> to vector<256xf32>
    %30 = vector.shape_cast %29 : vector<256xf32> to vector<1x256xf32>
    %cst_10 = arith.constant 3.200000e+01 : f32
    %31 = vector.broadcast %cst_10 : f32 to vector<1x256xf32>
    %32 = arith.divf %30, %31 : vector<1x256xf32>
    %33 = arith.mulf %26, %26 : vector<32x256xf32>
    %cst_11 = arith.constant dense<0.000000e+00> : vector<256xf32>
    %34 = vector.multi_reduction <add>, %33, %cst_11 [0] : vector<32x256xf32> to vector<256xf32>
    %35 = vector.shape_cast %34 : vector<256xf32> to vector<1x256xf32>
    %cst_12 = arith.constant 3.200000e+01 : f32
    %36 = vector.broadcast %cst_12 : f32 to vector<1x256xf32>
    %37 = arith.divf %35, %36 : vector<1x256xf32>
    %38 = arith.mulf %32, %32 : vector<1x256xf32>
    %39 = arith.subf %37, %38 : vector<1x256xf32>
    %cst_13 = arith.constant 9.99999974E-6 : f32
    %40 = vector.broadcast %cst_13 : f32 to vector<1x256xf32>
    %41 = arith.addf %39, %40 : vector<1x256xf32>
    %42 = math.rsqrt %41 : vector<1x256xf32>
    %43 = arith.mulf %27, %42 : vector<1x256xf32>
    %44 = arith.mulf %32, %43 : vector<1x256xf32>
    %45 = arith.subf %28, %44 : vector<1x256xf32>
    %46 = vector.broadcast %43 : vector<1x256xf32> to vector<32x256xf32>
    %47 = arith.mulf %26, %46 : vector<32x256xf32>
    %48 = vector.broadcast %45 : vector<1x256xf32> to vector<32x256xf32>
    %49 = arith.addf %47, %48 : vector<32x256xf32>
    %50 = math.tanh %49 : vector<32x256xf32>
    %51 = vector.shape_cast %50 : vector<32x256xf32> to vector<2x16x256xf32>
    %c0_14 = arith.constant 0 : index
    %c0_15 = arith.constant 0 : index
    %52 = vector.load %arg2[%c0_14, %c0_15] : memref<768x128xf32, #tpu.memory_space<vmem>>, vector<768x128xf32>
    %c2 = arith.constant 2 : index
    %c0_16 = arith.constant 0 : index
    %53 = vector.load %arg4[%c2, %c0_16] : memref<9x896xf32, #tpu.memory_space<vmem>>, vector<1x128xf32>
    %c3 = arith.constant 3 : index
    %c0_17 = arith.constant 0 : index
    %54 = vector.load %arg4[%c3, %c0_17] : memref<9x896xf32, #tpu.memory_space<vmem>>, vector<1x128xf32>
    %cst_18 = arith.constant 0.000000e+00 : f32
    %55 = vector.broadcast %cst_18 : f32 to vector<2x1x256xf32>
    %56 = tpu.concatenate %55, %51, %55 in 1 : vector<2x1x256xf32>, vector<2x16x256xf32>, vector<2x1x256xf32> -> vector<2x18x256xf32>
    %57 = vector.extract_strided_slice %56 {offsets = [0, 0, 0], sizes = [2, 16, 256], strides = [1, 1, 1]} : vector<2x18x256xf32> to vector<2x16x256xf32>
    %58 = vector.extract_strided_slice %56 {offsets = [0, 1, 0], sizes = [2, 16, 256], strides = [1, 1, 1]} : vector<2x18x256xf32> to vector<2x16x256xf32>
    %59 = vector.extract_strided_slice %56 {offsets = [0, 2, 0], sizes = [2, 16, 256], strides = [1, 1, 1]} : vector<2x18x256xf32> to vector<2x16x256xf32>
    %60 = tpu.concatenate %57, %58, %59 in 2 : vector<2x16x256xf32>, vector<2x16x256xf32>, vector<2x16x256xf32> -> vector<2x16x768xf32>
    %61 = vector.shape_cast %60 : vector<2x16x768xf32> to vector<32x768xf32>
    %cst_19 = arith.constant dense<0.000000e+00> : vector<32x128xf32>
    %62 = tpu.matmul %61, %52, %cst_19 {dimension_numbers = #tpu.dot_dimension_numbers<[1], [0], [0], [1], [0, 0, 1, 1], [], []>} : vector<32x768xf32>, vector<768x128xf32>, vector<32x128xf32> -> vector<32x128xf32>
    %cst_20 = arith.constant dense<0.000000e+00> : vector<128xf32>
    %63 = vector.multi_reduction <add>, %62, %cst_20 [0] : vector<32x128xf32> to vector<128xf32>
    %64 = vector.shape_cast %63 : vector<128xf32> to vector<1x128xf32>
    %cst_21 = arith.constant 3.200000e+01 : f32
    %65 = vector.broadcast %cst_21 : f32 to vector<1x128xf32>
    %66 = arith.divf %64, %65 : vector<1x128xf32>
    %67 = arith.mulf %62, %62 : vector<32x128xf32>
    %cst_22 = arith.constant dense<0.000000e+00> : vector<128xf32>
    %68 = vector.multi_reduction <add>, %67, %cst_22 [0] : vector<32x128xf32> to vector<128xf32>
    %69 = vector.shape_cast %68 : vector<128xf32> to vector<1x128xf32>
    %cst_23 = arith.constant 3.200000e+01 : f32
    %70 = vector.broadcast %cst_23 : f32 to vector<1x128xf32>
    %71 = arith.divf %69, %70 : vector<1x128xf32>
    %72 = arith.mulf %66, %66 : vector<1x128xf32>
    %73 = arith.subf %71, %72 : vector<1x128xf32>
    %cst_24 = arith.constant 9.99999974E-6 : f32
    %74 = vector.broadcast %cst_24 : f32 to vector<1x128xf32>
    %75 = arith.addf %73, %74 : vector<1x128xf32>
    %76 = math.rsqrt %75 : vector<1x128xf32>
    %77 = arith.mulf %53, %76 : vector<1x128xf32>
    %78 = arith.mulf %66, %77 : vector<1x128xf32>
    %79 = arith.subf %54, %78 : vector<1x128xf32>
    %80 = vector.broadcast %77 : vector<1x128xf32> to vector<32x128xf32>
    %81 = arith.mulf %62, %80 : vector<32x128xf32>
    %82 = vector.broadcast %79 : vector<1x128xf32> to vector<32x128xf32>
    %83 = arith.addf %81, %82 : vector<32x128xf32>
    %84 = math.tanh %83 : vector<32x128xf32>
    %85 = vector.shape_cast %84 : vector<32x128xf32> to vector<2x16x128xf32>
    %c0_25 = arith.constant 0 : index
    %c0_26 = arith.constant 0 : index
    %86 = vector.load %arg3[%c0_25, %c0_26] : memref<384x64xf32, #tpu.memory_space<vmem>>, vector<384x64xf32>
    %c4 = arith.constant 4 : index
    %c0_27 = arith.constant 0 : index
    %87 = vector.load %arg4[%c4, %c0_27] : memref<9x896xf32, #tpu.memory_space<vmem>>, vector<1x64xf32>
    %c5 = arith.constant 5 : index
    %c0_28 = arith.constant 0 : index
    %88 = vector.load %arg4[%c5, %c0_28] : memref<9x896xf32, #tpu.memory_space<vmem>>, vector<1x64xf32>
    %cst_29 = arith.constant 0.000000e+00 : f32
    %89 = vector.broadcast %cst_29 : f32 to vector<2x1x128xf32>
    %90 = tpu.concatenate %89, %85, %89 in 1 : vector<2x1x128xf32>, vector<2x16x128xf32>, vector<2x1x128xf32> -> vector<2x18x128xf32>
    %91 = vector.extract_strided_slice %90 {offsets = [0, 0, 0], sizes = [2, 16, 128], strides = [1, 1, 1]} : vector<2x18x128xf32> to vector<2x16x128xf32>
    %92 = vector.extract_strided_slice %90 {offsets = [0, 1, 0], sizes = [2, 16, 128], strides = [1, 1, 1]} : vector<2x18x128xf32> to vector<2x16x128xf32>
    %93 = vector.extract_strided_slice %90 {offsets = [0, 2, 0], sizes = [2, 16, 128], strides = [1, 1, 1]} : vector<2x18x128xf32> to vector<2x16x128xf32>
    %94 = tpu.concatenate %91, %92, %93 in 2 : vector<2x16x128xf32>, vector<2x16x128xf32>, vector<2x16x128xf32> -> vector<2x16x384xf32>
    %95 = vector.shape_cast %94 : vector<2x16x384xf32> to vector<32x384xf32>
    %cst_30 = arith.constant dense<0.000000e+00> : vector<32x64xf32>
    %96 = tpu.matmul %95, %86, %cst_30 {dimension_numbers = #tpu.dot_dimension_numbers<[1], [0], [0], [1], [0, 0, 1, 1], [], []>} : vector<32x384xf32>, vector<384x64xf32>, vector<32x64xf32> -> vector<32x64xf32>
    %cst_31 = arith.constant dense<0.000000e+00> : vector<64xf32>
    %97 = vector.multi_reduction <add>, %96, %cst_31 [0] : vector<32x64xf32> to vector<64xf32>
    %98 = vector.shape_cast %97 : vector<64xf32> to vector<1x64xf32>
    %cst_32 = arith.constant 3.200000e+01 : f32
    %99 = vector.broadcast %cst_32 : f32 to vector<1x64xf32>
    %100 = arith.divf %98, %99 : vector<1x64xf32>
    %101 = arith.mulf %96, %96 : vector<32x64xf32>
    %cst_33 = arith.constant dense<0.000000e+00> : vector<64xf32>
    %102 = vector.multi_reduction <add>, %101, %cst_33 [0] : vector<32x64xf32> to vector<64xf32>
    %103 = vector.shape_cast %102 : vector<64xf32> to vector<1x64xf32>
    %cst_34 = arith.constant 3.200000e+01 : f32
    %104 = vector.broadcast %cst_34 : f32 to vector<1x64xf32>
    %105 = arith.divf %103, %104 : vector<1x64xf32>
    %106 = arith.mulf %100, %100 : vector<1x64xf32>
    %107 = arith.subf %105, %106 : vector<1x64xf32>
    %cst_35 = arith.constant 9.99999974E-6 : f32
    %108 = vector.broadcast %cst_35 : f32 to vector<1x64xf32>
    %109 = arith.addf %107, %108 : vector<1x64xf32>
    %110 = math.rsqrt %109 : vector<1x64xf32>
    %111 = arith.mulf %87, %110 : vector<1x64xf32>
    %112 = arith.mulf %100, %111 : vector<1x64xf32>
    %113 = arith.subf %88, %112 : vector<1x64xf32>
    %114 = vector.broadcast %111 : vector<1x64xf32> to vector<32x64xf32>
    %115 = arith.mulf %96, %114 : vector<32x64xf32>
    %116 = vector.broadcast %113 : vector<1x64xf32> to vector<32x64xf32>
    %117 = arith.addf %115, %116 : vector<32x64xf32>
    %118 = math.tanh %117 : vector<32x64xf32>
    %119 = vector.shape_cast %118 : vector<32x64xf32> to vector<2x16x64xf32>
    %c0_i32_36 = arith.constant 0 : i32
    %120 = tpu.memref_slice %arg12[%c0_i32_36] : memref<3x!tpu.dma_semaphore, #tpu.memory_space<semaphore_mem>> -> memref<1x!tpu.dma_semaphore, #tpu.memory_space<semaphore_mem>>
    %121 = tpu.memref_squeeze %120 : memref<1x!tpu.dma_semaphore, #tpu.memory_space<semaphore_mem>> -> memref<!tpu.dma_semaphore, #tpu.memory_space<semaphore_mem>>
    tpu.wait_dma2 semaphore(%121 : memref<!tpu.dma_semaphore, #tpu.memory_space<semaphore_mem>>) src(%arg5 : memref<16x896xf32, #tpu.memory_space<any>>) dst(%arg9 : memref<16x896xf32, #tpu.memory_space<vmem>>)
    %c0_37 = arith.constant 0 : index
    %c0_38 = arith.constant 0 : index
    %122 = vector.load %arg9[%c0_37, %c0_38] : memref<16x896xf32, #tpu.memory_space<vmem>>, vector<16x896xf32>
    %123 = vector.extract_strided_slice %119 {offsets = [0, 0, 0], sizes = [1, 16, 64], strides = [1, 1, 1]} : vector<2x16x64xf32> to vector<1x16x64xf32>
    %124 = vector.shape_cast %123 : vector<1x16x64xf32> to vector<16x64xf32>
    %cst_39 = arith.constant dense<0.000000e+00> : vector<64x896xf32>
    %125 = tpu.matmul %124, %122, %cst_39 {dimension_numbers = #tpu.dot_dimension_numbers<[0], [0], [1], [1], [0, 1, 1, 1], [], []>} : vector<16x64xf32>, vector<16x896xf32>, vector<64x896xf32> -> vector<64x896xf32>
    %126 = vector.extract_strided_slice %119 {offsets = [1, 0, 0], sizes = [1, 16, 64], strides = [1, 1, 1]} : vector<2x16x64xf32> to vector<1x16x64xf32>
    %127 = vector.shape_cast %126 : vector<1x16x64xf32> to vector<16x64xf32>
    %cst_40 = arith.constant dense<0.000000e+00> : vector<64x896xf32>
    %128 = tpu.matmul %127, %122, %cst_40 {dimension_numbers = #tpu.dot_dimension_numbers<[0], [0], [1], [1], [0, 1, 1, 1], [], []>} : vector<16x64xf32>, vector<16x896xf32>, vector<64x896xf32> -> vector<64x896xf32>
    %129 = tpu.concatenate %125, %128 in 0 : vector<64x896xf32>, vector<64x896xf32> -> vector<128x896xf32>
    %c6 = arith.constant 6 : index
    %c0_41 = arith.constant 0 : index
    %130 = vector.load %arg4[%c6, %c0_41] : memref<9x896xf32, #tpu.memory_space<vmem>>, vector<1x896xf32>
    %131 = vector.broadcast %130 : vector<1x896xf32> to vector<128x896xf32>
    %132 = arith.addf %129, %131 : vector<128x896xf32>
    %133 = math.tanh %132 : vector<128x896xf32>
    %c1_i32_42 = arith.constant 1 : i32
    %134 = tpu.memref_slice %arg12[%c1_i32_42] : memref<3x!tpu.dma_semaphore, #tpu.memory_space<semaphore_mem>> -> memref<1x!tpu.dma_semaphore, #tpu.memory_space<semaphore_mem>>
    %135 = tpu.memref_squeeze %134 : memref<1x!tpu.dma_semaphore, #tpu.memory_space<semaphore_mem>> -> memref<!tpu.dma_semaphore, #tpu.memory_space<semaphore_mem>>
    tpu.wait_dma2 semaphore(%135 : memref<!tpu.dma_semaphore, #tpu.memory_space<semaphore_mem>>) src(%arg6 : memref<896x512xf32, #tpu.memory_space<any>>) dst(%arg10 : memref<896x512xf32, #tpu.memory_space<vmem>>)
    %c0_43 = arith.constant 0 : index
    %c0_44 = arith.constant 0 : index
    %136 = vector.load %arg10[%c0_43, %c0_44] : memref<896x512xf32, #tpu.memory_space<vmem>>, vector<896x512xf32>
    %cst_45 = arith.constant dense<0.000000e+00> : vector<128x512xf32>
    %137 = tpu.matmul %133, %136, %cst_45 {dimension_numbers = #tpu.dot_dimension_numbers<[1], [0], [0], [1], [0, 0, 1, 1], [], []>} : vector<128x896xf32>, vector<896x512xf32>, vector<128x512xf32> -> vector<128x512xf32>
    %c7 = arith.constant 7 : index
    %c0_46 = arith.constant 0 : index
    %138 = vector.load %arg4[%c7, %c0_46] : memref<9x896xf32, #tpu.memory_space<vmem>>, vector<1x512xf32>
    %139 = vector.broadcast %138 : vector<1x512xf32> to vector<128x512xf32>
    %140 = arith.addf %137, %139 : vector<128x512xf32>
    %141 = math.tanh %140 : vector<128x512xf32>
    %c2_i32_47 = arith.constant 2 : i32
    %142 = tpu.memref_slice %arg12[%c2_i32_47] : memref<3x!tpu.dma_semaphore, #tpu.memory_space<semaphore_mem>> -> memref<1x!tpu.dma_semaphore, #tpu.memory_space<semaphore_mem>>
    %143 = tpu.memref_squeeze %142 : memref<1x!tpu.dma_semaphore, #tpu.memory_space<semaphore_mem>> -> memref<!tpu.dma_semaphore, #tpu.memory_space<semaphore_mem>>
    tpu.wait_dma2 semaphore(%143 : memref<!tpu.dma_semaphore, #tpu.memory_space<semaphore_mem>>) src(%arg7 : memref<512x8xf32, #tpu.memory_space<any>>) dst(%arg11 : memref<512x8xf32, #tpu.memory_space<vmem>>)
    %c0_48 = arith.constant 0 : index
    %c0_49 = arith.constant 0 : index
    %144 = vector.load %arg11[%c0_48, %c0_49] : memref<512x8xf32, #tpu.memory_space<vmem>>, vector<512x8xf32>
    %cst_50 = arith.constant dense<0.000000e+00> : vector<128x8xf32>
    %145 = tpu.matmul %141, %144, %cst_50 {dimension_numbers = #tpu.dot_dimension_numbers<[1], [0], [0], [1], [0, 0, 1, 1], [], []>} : vector<128x512xf32>, vector<512x8xf32>, vector<128x8xf32> -> vector<128x8xf32>
    %c8 = arith.constant 8 : index
    %c0_51 = arith.constant 0 : index
    %146 = vector.load %arg4[%c8, %c0_51] : memref<9x896xf32, #tpu.memory_space<vmem>>, vector<1x8xf32>
    %147 = vector.broadcast %146 : vector<1x8xf32> to vector<128x8xf32>
    %148 = arith.addf %145, %147 : vector<128x8xf32>
    %149 = math.tanh %148 : vector<128x8xf32>
    %150 = vector.shape_cast %149 : vector<128x8xf32> to vector<2x64x8xf32>
    %c0_52 = arith.constant 0 : index
    %c0_53 = arith.constant 0 : index
    %c0_54 = arith.constant 0 : index
    %151 = vector.load %arg8[%c0_52, %c0_53, %c0_54] : memref<2x64x8xf32, #tpu.memory_space<vmem>>, vector<2x64x8xf32>
    tpu.vector_store %arg8[%c0_52, %c0_53, %c0_54], %150 {strides = array<i32>} : memref<2x64x8xf32, #tpu.memory_space<vmem>>, vector<2x64x8xf32>,
    return
  }
}

</mosaic_0001>

<bundles_post_ra>
// kernel: encoder_forward.1
= control target key start
LH: loop header
LB: loop body
LE: loop exit
PB: predicated region body
PF: predicated region fallthrough
CT: control target
= control target key end

     0   :  { %13 = vsyncpa [#allocation7], 0  ;;  %s8365_s0 = inlined_call_operand.hbm [shape: f32[2,4,16], index: 0, kind: input, shape index: {}]   ;;  %s8366_s1 = inlined_call_operand.hbm [shape: f32[12,256], index: 1, kind: input, shape index: {}]   ;;  %s8367_s2 = inlined_call_operand.hbm [shape: f32[768,128], index: 2, kind: input, shape index: {}]   ;;  %s8368_s3 = inlined_call_operand.vmem [shape: f32[384,64], index: 3, kind: input, shape index: {}]   ;;  %s8369_s4 = inlined_call_operand.hbm [shape: f32[9,896], index: 4, kind: input, shape index: {}]   ;;  %s8370_s5 = inlined_call_operand.hbm [shape: f32[16,896], index: 5, kind: input, shape index: {}]   ;;  %s8371_s6 = inlined_call_operand.hbm [shape: f32[896,512], index: 6, kind: input, shape index: {}]   ;;  %s8372_s7 = inlined_call_operand.vmem [shape: f32[512,8], index: 7, kind: input, shape index: {}]   ;;  %s8373_s8 = inlined_call_operand.vmem [shape: f32[2,64,8], index: 8, kind: output, shape index: {}]  }
   0x1   :  { %14 = vsyncpa [#allocation9], 0 }
   0x2   :  { %15 = vsyncpa [#allocation12], 0  ;;  %s6169_s27 = smov [#allocation8]  }
   0x3   :  { %s33_s28 = sshll.u32 %s6169_s27, 4  ;;  %s34_s28 = int_to_ptr.vmem [resolvable:$true] %s33_s28 }
   0x4   :  { %s6045_s29 = scalar_lea.vmem %s34_s28, 512  ;;  %p6050_p1 = scmp.lt.s32.totalorder %s34_s28, %s34_s28 }
   0x5   :  { %p6046_p0 = scmp.ne.s32.totalorder %s34_s28, %s6045_s29  ;;  %p6051_p2 = scmp.lt.s32.totalorder %s6045_s29, %s6045_s29 }
   0x7   :  { %p6052_p3 = por %p6051_p2, %p6050_p1 }
   0x9   :  { %p6053_p4 = pnand %p6052_p3, %p6046_p0 }
   0xb   :  { %6056 = shalt.err (!%p6053_p4)
}
   0xc   :  { %s6170_s30 = smov 256   ;;  %s6171_s9 = smov 16  }
   0xd   :  { %39 = dma.hbm_to_vmem [thread:$0]  %s8366_s1, 512, %s34_s28, [#allocation9], %s6170_s30, %s6170_s30, %s6171_s9  }
   0xe   :  { %s6172_s12 = smov [#allocation6]  }
   0xf   :  { %s21_s13 = sshll.u32 %s6172_s12, 4  ;;  %s22_s13 = int_to_ptr.vmem [resolvable:$true] %s21_s13 }
  0x10   :  { %s6065_s14 = scalar_lea.vmem %s22_s13, 128  ;;  %p6070_p6 = scmp.lt.s32.totalorder %s22_s13, %s22_s13 }
  0x11   :  { %p6066_p5 = scmp.ne.s32.totalorder %s22_s13, %s6065_s14  ;;  %p6071_p7 = scmp.lt.s32.totalorder %s6065_s14, %s6065_s14 }
  0x13   :  { %p6072_p8 = por %p6071_p7, %p6070_p6 }
  0x15   :  { %p6073_p9 = pnand %p6072_p8, %p6066_p5 }
  0x17   :  { %6076 = shalt.err (!%p6073_p9)
}
  0x18   :  { %s6173_s15 = smov 64   ;;  %s6174_s16 = smov 4  }
  0x19   :  { %27 = dma.hbm_to_vmem [thread:$0]  %s8365_s0, 128, %s22_s13, [#allocation7], %s6173_s15, %s6173_s15, %s6174_s16  }
  0x1a   :  { %s6175_s19 = smov [#allocation10]  }
  0x1b   :  { %s45_s20 = sshll.u32 %s6175_s19, 4  ;;  %s46_s20 = int_to_ptr.vmem [resolvable:$true] %s45_s20 }
  0x1c   :  { %s6085_s1 = scalar_lea.vmem %s46_s20, 12288  ;;  %p6090_p11 = scmp.lt.s32.totalorder %s46_s20, %s46_s20 }
  0x1d   :  { %p6086_p10 = scmp.ne.s32.totalorder %s46_s20, %s6085_s1  ;;  %p6091_p12 = scmp.lt.s32.totalorder %s6085_s1, %s6085_s1 }
  0x1f   :  { %p6092_p13 = por %p6091_p12, %p6090_p11 }
  0x21   :  { %p6093_p0 = pnand %p6092_p13, %p6086_p10 }
  0x23   :  { %6096 = shalt.err (!%p6093_p0)
}
  0x24   :  { %s6176_s21 = smov 128   ;;  %s6177_s22 = smov 8  }
  0x25   :  { %51 = dma.hbm_to_vmem [thread:$0]  %s8367_s2, 12288, %s46_s20, [#allocation9], %s6176_s21, %s6176_s21, %s6177_s22  }
  0x26   :  { %s6178_s25 = smov [#allocation11]  }
  0x27   :  { %s59_s26 = sshll.u32 %s6178_s25, 4  ;;  %s60_s26 = int_to_ptr.vmem [resolvable:$true] %s59_s26 }
  0x28   :  { %s6105_s0 = scalar_lea.vmem %s60_s26, 1792  ;;  %p6110_p2 = scmp.lt.s32.totalorder %s60_s26, %s60_s26 }
  0x29   :  { %p6106_p1 = scmp.ne.s32.totalorder %s60_s26, %s6105_s0  ;;  %p6111_p3 = scmp.lt.s32.totalorder %s6105_s0, %s6105_s0 }
  0x2b   :  { %p6112_p4 = por %p6111_p3, %p6110_p2 }
  0x2d   :  { %p6113_p5 = pnand %p6112_p4, %p6106_p1 }
  0x2f   :  { %6116 = shalt.err (!%p6113_p5)
}
  0x30   :  { %s6179_s27 = smov 896   ;;  %s6180_s28 = smov 56  }
  0x31   :  { %65 = dma.hbm_to_vmem [thread:$0]  %s8369_s4, 1792, %s60_s26, [#allocation12], %s6179_s27, %s6179_s27, %s6180_s28  }
  0x32   :  { %6157 = dma.done.wait [#allocation7], 128  }
  0x33   :  { %6158 = vsyncadd [#allocation7], 4294967168 }
  0x34   :  { %6159 = dma.done.wait [#allocation9], 12800  }
  0x35   :  { %6160 = vsyncadd [#allocation9], 4294954496 }
  0x36   :  { %6161 = dma.done.wait [#allocation12], 1792  }
  0x37   :  { %6162 = vsyncadd [#allocation12], 4294965504  ;;  %s6181_s2 = smov [#allocation2]   ;;  %s6182_s10 = smov [#allocation3]  }
  0x38   :  { %s85_s9 = sshll.u32 %s6181_s2, 4  ;;  %s97_s11 = sshll.u32 %s6182_s10, 4  ;;  %s86_s9 = int_to_ptr.vmem [resolvable:$true] %s85_s9  ;;  %s98_s11 = int_to_ptr.vmem [resolvable:$true] %s97_s11 }
  0x39   :  { %s6125_s12 = scalar_lea.vmem %s86_s9, 1792  ;;  %p6130_p7 = scmp.lt.s32.totalorder %s86_s9, %s86_s9 }
  0x3a   :  { %p6126_p6 = scmp.ne.s32.totalorder %s86_s9, %s6125_s12  ;;  %p6131_p8 = scmp.lt.s32.totalorder %s6125_s12, %s6125_s12 }
  0x3c   :  { %p6132_p9 = por %p6131_p8, %p6130_p7 }
  0x3e   :  { %p6133_p10 = pnand %p6132_p9, %p6126_p6 }
  0x40   :  { %6136 = shalt.err (!%p6133_p10)  }
  0x41   :  { %88 = dma.hbm_to_vmem [thread:$0]  %s8370_s5, 1792, %s86_s9, [#allocation5] }
  0x42   :  { %s6145_s14 = scalar_lea.vmem %s98_s11, 57344  ;;  %p6150_p12 = scmp.lt.s32.totalorder %s98_s11, %s98_s11 }
  0x43   :  { %p6146_p11 = scmp.ne.s32.totalorder %s98_s11, %s6145_s14  ;;  %p6151_p13 = scmp.lt.s32.totalorder %s6145_s14, %s6145_s14 }
  0x45   :  { %p6152_p0 = por %p6151_p13, %p6150_p12 }
  0x47   :  { %p6153_p1 = pnand %p6152_p0, %p6146_p11 }
  0x49   :  { %6156 = shalt.err (!%p6153_p1)  }
  0x4a   :  { %100 = dma.hbm_to_vmem [thread:$0]  %s8371_s6, 57344, %s98_s11, [#allocation5 + $0x1]  ;;  %v6254_v0 = vld [vmem:[%s8372_s7] sm:$0xff]  ;;  %v6259_v1 = vld [vmem:[%s8372_s7 + $0x8] sm:$0xff]  ;;  %v6264_v2 = vld [vmem:[%s8372_s7 + $0x10] sm:$0xff] }
  0x4b   :  { %8447 = vst [vmem:[#allocation26_spill] sm:$0xff] %v6254_v0  ;;  %8448 = vst [vmem:[#allocation27_spill] sm:$0xff] %v6259_v1  ;;  %v6269_v3 = vld [vmem:[%s8372_s7 + $0x18] sm:$0xff]  ;;  %v6274_v4 = vld [vmem:[%s8372_s7 + $0x20] sm:$0xff]  ;;  %s6183_s29 = smov 1  }
  0x4c   :  { %8449 = vst [vmem:[#allocation28_spill] sm:$0xff] %v6264_v2  ;;  %8450 = vst [vmem:[#allocation29_spill] sm:$0xff] %v6269_v3  ;;  %v6279_v5 = vld [vmem:[%s8372_s7 + $0x28] sm:$0xff]  ;;  %v6284_v6 = vld [vmem:[%s8372_s7 + $0x30] sm:$0xff] }
  0x4d   :  { %8451 = vst [vmem:[#allocation30_spill] sm:$0xff] %v6274_v4  ;;  %8452 = vst [vmem:[#allocation31_spill] sm:$0xff] %v6279_v5  ;;  %v6289_v7 = vld [vmem:[%s8372_s7 + $0x38] sm:$0xff]  ;;  %v6294_v8 = vld [vmem:[%s8372_s7 + $0x40] sm:$0xff] }
  0x4e   :  { %8453 = vst [vmem:[#allocation32_spill] sm:$0xff] %v6284_v6  ;;  %8454 = vst [vmem:[#allocation33_spill] sm:$0xff] %v6289_v7  ;;  %v6299_v9 = vld [vmem:[%s8372_s7 + $0x48] sm:$0xff]  ;;  %v6304_v10 = vld [vmem:[%s8372_s7 + $0x50] sm:$0xff] }
  0x4f   :  { %8455 = vst [vmem:[#allocation34_spill] sm:$0xff] %v6294_v8  ;;  %8456 = vst [vmem:[#allocation35_spill] sm:$0xff] %v6299_v9  ;;  %v6309_v11 = vld [vmem:[%s8372_s7 + $0x58] sm:$0xff]  ;;  %v6314_v12 = vld [vmem:[%s8372_s7 + $0x60] sm:$0xff] }
  0x50   :  { %8457 = vst [vmem:[#allocation36_spill] sm:$0xff] %v6304_v10  ;;  %8458 = vst [vmem:[#allocation37_spill] sm:$0xff] %v6309_v11  ;;  %v6319_v13 = vld [vmem:[%s8372_s7 + $0x68] sm:$0xff]  ;;  %v6324_v14 = vld [vmem:[%s8372_s7 + $0x70] sm:$0xff] }
  0x51   :  { %8459 = vst [vmem:[#allocation38_spill] sm:$0xff] %v6314_v12  ;;  %8460 = vst [vmem:[#allocation39_spill] sm:$0xff] %v6319_v13  ;;  %v6329_v15 = vld [vmem:[%s8372_s7 + $0x78] sm:$0xff]  ;;  %v6334_v16 = vld [vmem:[%s8372_s7 + $0x80] sm:$0xff] }
  0x52   :  { %8461 = vst [vmem:[#allocation40_spill] sm:$0xff] %v6324_v14  ;;  %8462 = vst [vmem:[#allocation41_spill] sm:$0xff] %v6329_v15  ;;  %v6339_v17 = vld [vmem:[%s8372_s7 + $0x88] sm:$0xff]  ;;  %v6344_v18 = vld [vmem:[%s8372_s7 + $0x90] sm:$0xff] }
  0x53   :  { %8463 = vst [vmem:[#allocation42_spill] sm:$0xff] %v6334_v16  ;;  %8464 = vst [vmem:[#allocation43_spill] sm:$0xff] %v6339_v17  ;;  %v6349_v19 = vld [vmem:[%s8372_s7 + $0x98] sm:$0xff]  ;;  %v6354_v20 = vld [vmem:[%s8372_s7 + $0xa0] sm:$0xff] }
  0x54   :  { %8465 = vst [vmem:[#allocation44_spill] sm:$0xff] %v6344_v18  ;;  %8466 = vst [vmem:[#allocation45_spill] sm:$0xff] %v6349_v19  ;;  %v6359_v21 = vld [vmem:[%s8372_s7 + $0xa8] sm:$0xff]  ;;  %v6364_v22 = vld [vmem:[%s8372_s7 + $0xb0] sm:$0xff] }
  0x55   :  { %8467 = vst [vmem:[#allocation46_spill] sm:$0xff] %v6354_v20  ;;  %8468 = vst [vmem:[#allocation47_spill] sm:$0xff] %v6359_v21  ;;  %v6369_v23 = vld [vmem:[%s8372_s7 + $0xb8] sm:$0xff]  ;;  %v6374_v24 = vld [vmem:[%s8372_s7 + $0xc0] sm:$0xff] }
  0x56   :  { %8469 = vst [vmem:[#allocation48_spill] sm:$0xff] %v6364_v22  ;;  %8470 = vst [vmem:[#allocation49_spill] sm:$0xff] %v6369_v23  ;;  %v6379_v25 = vld [vmem:[%s8372_s7 + $0xc8] sm:$0xff]  ;;  %v6384_v26 = vld [vmem:[%s8372_s7 + $0xd0] sm:$0xff] }
  0x57   :  { %8471 = vst [vmem:[#allocation50_spill] sm:$0xff] %v6374_v24  ;;  %8472 = vst [vmem:[#allocation51_spill] sm:$0xff] %v6379_v25  ;;  %v6389_v27 = vld [vmem:[%s8372_s7 + $0xd8] sm:$0xff]  ;;  %v6394_v28 = vld [vmem:[%s8372_s7 + $0xe0] sm:$0xff] }
  0x58   :  { %8473 = vst [vmem:[#allocation52_spill] sm:$0xff] %v6384_v26  ;;  %8474 = vst [vmem:[#allocation53_spill] sm:$0xff] %v6389_v27  ;;  %v6399_v29 = vld [vmem:[%s8372_s7 + $0xe8] sm:$0xff]  ;;  %v6404_v30 = vld [vmem:[%s8372_s7 + $0xf0] sm:$0xff] }
  0x59   :  { %8475 = vst [vmem:[#allocation54_spill] sm:$0xff] %v6394_v28  ;;  %8476 = vst [vmem:[#allocation55_spill] sm:$0xff] %v6399_v29  ;;  %v6409_v31 = vld [vmem:[%s8372_s7 + $0xf8] sm:$0xff]  ;;  %v6414_v32 = vld [vmem:[%s8372_s7 + $0x100] sm:$0xff] }
  0x5a   :  { %8477 = vst [vmem:[#allocation56_spill] sm:$0xff] %v6404_v30  ;;  %8478 = vst [vmem:[#allocation57_spill] sm:$0xff] %v6409_v31  ;;  %v6419_v33 = vld [vmem:[%s8372_s7 + $0x108] sm:$0xff]  ;;  %v6424_v34 = vld [vmem:[%s8372_s7 + $0x110] sm:$0xff] }
  0x5b   :  { %8479 = vst [vmem:[#allocation58_spill] sm:$0xff] %v6414_v32  ;;  %8480 = vst [vmem:[#allocation59_spill] sm:$0xff] %v6419_v33  ;;  %v6429_v35 = vld [vmem:[%s8372_s7 + $0x118] sm:$0xff]  ;;  %v6434_v36 = vld [vmem:[%s8372_s7 + $0x120] sm:$0xff] }
  0x5c   :  { %8481 = vst [vmem:[#allocation60_spill] sm:$0xff] %v6424_v34  ;;  %8482 = vst [vmem:[#allocation61_spill] sm:$0xff] %v6429_v35  ;;  %v6439_v37 = vld [vmem:[%s8372_s7 + $0x128] sm:$0xff]  ;;  %v6444_v38 = vld [vmem:[%s8372_s7 + $0x130] sm:$0xff] }
  0x5d   :  { %8483 = vst [vmem:[#allocation62_spill] sm:$0xff] %v6434_v36  ;;  %8484 = vst [vmem:[#allocation63_spill] sm:$0xff] %v6439_v37  ;;  %v6449_v39 = vld [vmem:[%s8372_s7 + $0x138] sm:$0xff]  ;;  %v6454_v40 = vld [vmem:[%s8372_s7 + $0x140] sm:$0xff] }
  0x5e   :  { %8485 = vst [vmem:[#allocation64_spill] sm:$0xff] %v6444_v38  ;;  %8486 = vst [vmem:[#allocation65_spill] sm:$0xff] %v6449_v39  ;;  %v6459_v41 = vld [vmem:[%s8372_s7 + $0x148] sm:$0xff]  ;;  %v6464_v42 = vld [vmem:[%s8372_s7 + $0x150] sm:$0xff] }
  0x5f   :  { %8487 = vst [vmem:[#allocation66_spill] sm:$0xff] %v6454_v40  ;;  %8488 = vst [vmem:[#allocation67_spill] sm:$0xff] %v6459_v41  ;;  %v6469_v43 = vld [vmem:[%s8372_s7 + $0x158] sm:$0xff]  ;;  %v6474_v44 = vld [vmem:[%s8372_s7 + $0x160] sm:$0xff] }
  0x60   :  { %8489 = vst [vmem:[#allocation68_spill] sm:$0xff] %v6464_v42  ;;  %8490 = vst [vmem:[#allocation69_spill] sm:$0xff] %v6469_v43  ;;  %v6479_v45 = vld [vmem:[%s8372_s7 + $0x168] sm:$0xff]  ;;  %v6484_v46 = vld [vmem:[%s8372_s7 + $0x170] sm:$0xff] }
  0x61   :  { %8491 = vst [vmem:[#allocation70_spill] sm:$0xff] %v6474_v44  ;;  %8492 = vst [vmem:[#allocation71_spill] sm:$0xff] %v6479_v45  ;;  %v6489_v47 = vld [vmem:[%s8372_s7 + $0x178] sm:$0xff]  ;;  %v6494_v48 = vld [vmem:[%s8372_s7 + $0x180] sm:$0xff] }
  0x62   :  { %8493 = vst [vmem:[#allocation72_spill] sm:$0xff] %v6484_v46  ;;  %8494 = vst [vmem:[#allocation73_spill] sm:$0xff] %v6489_v47  ;;  %v6499_v49 = vld [vmem:[%s8372_s7 + $0x188] sm:$0xff]  ;;  %v6504_v50 = vld [vmem:[%s8372_s7 + $0x190] sm:$0xff] }
  0x63   :  { %8495 = vst [vmem:[#allocation74_spill] sm:$0xff] %v6494_v48  ;;  %8496 = vst [vmem:[#allocation75_spill] sm:$0xff] %v6499_v49  ;;  %v6509_v51 = vld [vmem:[%s8372_s7 + $0x198] sm:$0xff]  ;;  %v6514_v52 = vld [vmem:[%s8372_s7 + $0x1a0] sm:$0xff] }
  0x64   :  { %8497 = vst [vmem:[#allocation76_spill] sm:$0xff] %v6504_v50  ;;  %8498 = vst [vmem:[#allocation77_spill] sm:$0xff] %v6509_v51  ;;  %v6519_v53 = vld [vmem:[%s8372_s7 + $0x1a8] sm:$0xff]  ;;  %v6524_v54 = vld [vmem:[%s8372_s7 + $0x1b0] sm:$0xff] }
  0x65   :  { %8499 = vst [vmem:[#allocation78_spill] sm:$0xff] %v6514_v52  ;;  %8500 = vst [vmem:[#allocation79_spill] sm:$0xff] %v6519_v53  ;;  %v6529_v55 = vld [vmem:[%s8372_s7 + $0x1b8] sm:$0xff]  ;;  %v6534_v56 = vld [vmem:[%s8372_s7 + $0x1c0] sm:$0xff] }
  0x66   :  { %8501 = vst [vmem:[#allocation80_spill] sm:$0xff] %v6524_v54  ;;  %8502 = vst [vmem:[#allocation81_spill] sm:$0xff] %v6529_v55  ;;  %v6539_v57 = vld [vmem:[%s8372_s7 + $0x1c8] sm:$0xff]  ;;  %v6544_v58 = vld [vmem:[%s8372_s7 + $0x1d0] sm:$0xff] }
  0x67   :  { %8503 = vst [vmem:[#allocation82_spill] sm:$0xff] %v6534_v56  ;;  %8504 = vst [vmem:[#allocation83_spill] sm:$0xff] %v6539_v57  ;;  %v6549_v59 = vld [vmem:[%s8372_s7 + $0x1d8] sm:$0xff]  ;;  %v6554_v60 = vld [vmem:[%s8372_s7 + $0x1e0] sm:$0xff] }
  0x68   :  { %8505 = vst [vmem:[#allocation84_spill] sm:$0xff] %v6544_v58  ;;  %8506 = vst [vmem:[#allocation85_spill] sm:$0xff] %v6549_v59  ;;  %v6559_v61 = vld [vmem:[%s8372_s7 + $0x1e8] sm:$0xff]  ;;  %v6564_v62 = vld [vmem:[%s8372_s7 + $0x1f0] sm:$0xff] }
  0x69   :  { %8507 = vst [vmem:[#allocation86_spill] sm:$0xff] %v6554_v60  ;;  %8508 = vst [vmem:[#allocation87_spill] sm:$0xff] %v6559_v61  ;;  %v6569_v63 = vld [vmem:[%s8372_s7 + $0x1f8] sm:$0xff]  ;;  %v271_v32 = vld [vmem:[#allocation6] sm:$0xf] }
  0x6a   :  { %8509 = vst [vmem:[#allocation88_spill] sm:$0xff] %v6564_v62  ;;  %8510 = vst [vmem:[#allocation89_spill] sm:$0xff] %v6569_v63  ;;  %275 = vrot.lane.b32.xlu0 %v271_v32, %s6183_s29 }
  0x6b   :  { %270 = vsyncadd [#allocation5 + $0x2], 8192  ;;  %v272_v0 = vld [vmem:[#allocation6 + $0x4] sm:$0xf]  ;;  %vm281_vm0 = vcmask 7168   ;;  %vm284_vm1 = vcmask 138240  }
  0x6c   :  { %vm299_vm2 = vcmask 1043456   ;;  %v290_v33 = vld [vmem:[#allocation8 + $0x18] sm:$0xf]  ;;  %v289_v1 = vld [vmem:[#allocation8 + $0x10] sm:$0xf]  ;;  %v288_v49 = vld [vmem:[#allocation8 + $0x8] sm:$0xff] }
  0x6d   :  { %5056 = vmatprep.subr.msk.mxu0 %vm299_vm2, %v290_v33  ;;  %v287_v34 = vld [vmem:[#allocation8] sm:$0xff]  ;;  %5060 = vmatprep.subr.msk.mxu1 %vm299_vm2, %v290_v33  ;;  %s6185_s7 = smov 127   ;;  %s6186_s30 = smov 126   ;;  %vm333_vm3 = vcmask 97280   ;;  %v714_v35 = vld [vmem:[#allocation10 + $0xa8] sm:$0xff]  ;;  %v748_v3 = vld [vmem:[#allocation10 + $0x1b8] sm:$0xff] }
  0x6e   :  { %277 = vrot.lane.b32.xlu0 %v272_v0, %s6183_s29  ;;  %5057 = vmatpush1.msk.msra.mxu0 %vm299_vm2, %v289_v1  ;;  %v8374_v0 = vmov 0.0   ;;  %v696_v51 = vld [vmem:[#allocation10 + $0x18] sm:$0xff]  ;;  %v730_v19 = vld [vmem:[#allocation10 + $0x128] sm:$0xff]  ;;  %vm799_vm4 = vcmask 1040384   ;;  %vm840_vm6 = vcmask 1046528   ;;  %vm869_vm7 = vcmask 1045504  }
  0x6f   :  { %410 = vmatprep.mubr.f32.mxu0 %v8374_v0  ;;  %376 = vmatprep.subr.mxu0 %v288_v49  ;;  %vm6649_vm5 = vmneg %vm799_vm4  ;;  %vm1468_vm8 = vcmask 523264  }
  0x70   :  { %5061 = vmatpush1.msk.msra.mxu1 %vm299_vm2, %v289_v1  ;;  %377 = vmatpush1.msra.mxu0 %v287_v34 }
  0x71   :  { %500 = vmatprep.subr.mxu1 %v288_v49  ;;  %534 = vmatprep.mubr.f32.mxu1 %v8374_v0 }
  0x72   :  { %501 = vmatpush1.msra.mxu1 %v287_v34 }
  0xdc   :  { %v276_v48 = vpop.permute.xlu0 %275 }
  0xdd   :  { %v282_v16 = vsel %vm281_vm0, 0.0, %v276_v48 }
  0xde   :  { %v285_v17 = vsel %vm284_vm1, %v282_v16, 0.0 }
  0xdf   :  { %v292_v32 = vrot.slane %v285_v17, 4 }
  0xe0   :  { %v278_v2 = vpop.permute.xlu0 %277 }
  0xe1   :  { %v283_v48 = vsel %vm281_vm0, 0.0, %v278_v2  ;;  %293 = vrot.lane.b32.xlu1 %v292_v32, %s6185_s7 }
  0xe2   :  { %v286_v16 = vsel %vm284_vm1, %v283_v48, 0.0 }
  0xe3   :  { %v424_v33 = vrot.slane %v286_v16, 4 }
  0xe5   :  { %296 = vrot.lane.b32.xlu1 %v285_v17, %s6186_s30  ;;  %425 = vrot.lane.b32.xlu0 %v424_v33, %s6185_s7 }
  0xe9   :  { %428 = vrot.lane.b32.xlu1 %v286_v16, %s6186_s30 }
 0x153   :  { %v294_v50 = vpop.permute.xlu1 %293 }
 0x154   :  { %v300_v18 = vsel %vm299_vm2, %v285_v17, %v294_v50  ;;  %v708_v50 = vld [vmem:[#allocation10 + $0x78] sm:$0xff] }
 0x155   :  { %301 = vxpose.xlu0.b32.start [1/2] (short) (narrow) %v300_v18, 16  ;;  %v724_v18 = vld [vmem:[#allocation10 + $0xf8] sm:$0xff] }
 0x156   :  { %5143 = vmatprep.subr.mxu0 %v724_v18  ;;  %v720_v18 = vld [vmem:[#allocation10 + $0xd8] sm:$0xff] }
 0x157   :  { %v297_v1 = vpop.permute.xlu1 %296  ;;  %v426_v2 = vpop.permute.xlu0 %425 }
 0x158   :  { %v431_v32 = vsel %vm299_vm2, %v286_v16, %v426_v2  ;;  %v723_v16 = vld [vmem:[#allocation10 + $0xf0] sm:$0xff]  ;;  %v722_v2 = vld [vmem:[#allocation10 + $0xe8] sm:$0xff] }
 0x159   :  { %302 = vxpose.xlu0.b32.end [2/2] (short) (narrow) %v297_v1, 16  ;;  %432 = vxpose.xlu1.b32.start [1/2] (short) (narrow) %v431_v32, 16  ;;  %v707_v1 = vld [vmem:[#allocation10 + $0x70] sm:$0xff]  ;;  %v706_v32 = vld [vmem:[#allocation10 + $0x68] sm:$0xff] }
 0x15b   :  { %v429_v48 = vpop.permute.xlu1 %428 }
 0x15d   :  { %433 = vxpose.xlu1.b32.end [2/2] (short) (narrow) %v429_v48, 16  ;;  %v756_v48 = vld [vmem:[#allocation10 + $0x1f8] sm:$0xff] }
 0x15e   :  { %5187 = vmatprep.subr.mxu1 %v756_v48  ;;  %v753_v48 = vld [vmem:[#allocation10 + $0x1e0] sm:$0xff] }
 0x1d1   :  { %v317_v49 = vpop.trf.xlu0 }
 0x1d2   :  { %5058 = vmatmul.mubr.msk.f32.vlgmr.msra.gmra.mxu0 %vm333_vm3, %v317_v49  ;;  %v721_v49 = vld [vmem:[#allocation10 + $0xe0] sm:$0xff] }
 0x1d3   :  { %416 = vmatprep.mubr.f32.mxu0 %v8374_v0  ;;  %5144 = vmatpush3.msra.mxu0 %v708_v50  ;;  %v739_v50 = vld [vmem:[#allocation10 + $0x170] sm:$0xff] }
 0x1d4   :  { %5145 = vmatprep.subr.mxu0 %v723_v16  ;;  %v704_v16 = vld [vmem:[#allocation10 + $0x58] sm:$0xff] }
 0x1d5   :  { %v448_v34 = vpop.trf.xlu1  ;;  %v318_v33 = vpop.trf.xlu0  ;;  %5146 = vmatpush3.msra.mxu0 %v707_v1  ;;  %v754_v1 = vld [vmem:[#allocation10 + $0x1e8] sm:$0xff] }
 0x1d6   :  { %5059 = vmatmul.mubr.msk.f32.gmra.mxu0 %vm333_vm3, %v318_v33  ;;  %5062 = vmatmul.mubr.msk.f32.vlgmr.msra.gmra.mxu1 %vm333_vm3, %v448_v34  ;;  %v740_v34 = vld [vmem:[#allocation10 + $0x178] sm:$0xff]  ;;  %v705_v33 = vld [vmem:[#allocation10 + $0x60] sm:$0xff] }
 0x1d7   :  { %540 = vmatprep.mubr.f32.mxu1 %v8374_v0  ;;  %5147 = vmatprep.subr.mxu0 %v722_v2  ;;  %v719_v2 = vld [vmem:[#allocation10 + $0xd0] sm:$0xff]  ;;  %v738_v0 = vld [vmem:[#allocation10 + $0x168] sm:$0xff] }
 0x1d8   :  { %5148 = vmatpush3.msra.mxu0 %v706_v32  ;;  %5188 = vmatpush3.msra.mxu1 %v740_v34  ;;  %v703_v32 = vld [vmem:[#allocation10 + $0x50] sm:$0xff]  ;;  %v737_v34 = vld [vmem:[#allocation10 + $0x160] sm:$0xff] }
 0x1d9   :  { %v449_v17 = vpop.trf.xlu1  ;;  %5149 = vmatprep.subr.mxu0 %v721_v49  ;;  %v718_v49 = vld [vmem:[#allocation10 + $0xc8] sm:$0xff] }
 0x1da   :  { %5063 = vmatmul.mubr.msk.f32.gmra.mxu1 %vm333_vm3, %v449_v17  ;;  %v755_v17 = vld [vmem:[#allocation10 + $0x1f0] sm:$0xff]  ;;  %5150 = vmatpush3.msra.mxu0 %v705_v33  ;;  %v702_v33 = vld [vmem:[#allocation10 + $0x48] sm:$0xff] }
 0x1db   :  { %5189 = vmatprep.subr.mxu1 %v755_v17  ;;  %5151 = vmatprep.subr.mxu0 %v720_v18  ;;  %v752_v17 = vld [vmem:[#allocation10 + $0x1d8] sm:$0xff]  ;;  %v717_v18 = vld [vmem:[#allocation10 + $0xc0] sm:$0xff] }
 0x1dc   :  { %5190 = vmatpush3.msra.mxu1 %v739_v50  ;;  %5152 = vmatpush3.msra.mxu0 %v704_v16  ;;  %v736_v50 = vld [vmem:[#allocation10 + $0x158] sm:$0xff]  ;;  %v701_v16 = vld [vmem:[#allocation10 + $0x40] sm:$0xff] }
 0x1dd   :  { %5191 = vmatprep.subr.mxu1 %v754_v1  ;;  %5153 = vmatprep.subr.mxu0 %v719_v2  ;;  %v751_v1 = vld [vmem:[#allocation10 + $0x1d0] sm:$0xff] }
 0x1de   :  { %5192 = vmatpush3.msra.mxu1 %v738_v0  ;;  %5154 = vmatpush3.msra.mxu0 %v703_v32  ;;  %v716_v0 = vld [vmem:[#allocation10 + $0xb8] sm:$0xff]  ;;  %v735_v2 = vld [vmem:[#allocation10 + $0x150] sm:$0xff] }
 0x1df   :  { %5193 = vmatprep.subr.mxu1 %v753_v48  ;;  %5155 = vmatprep.subr.mxu0 %v718_v49  ;;  %v700_v32 = vld [vmem:[#allocation10 + $0x38] sm:$0xff]  ;;  %v750_v48 = vld [vmem:[#allocation10 + $0x1c8] sm:$0xff]  ;;  %v715_v49 = vld [vmem:[#allocation10 + $0xb0] sm:$0xff] }
 0x1e0   :  { %5194 = vmatpush3.msra.mxu1 %v737_v34  ;;  %5156 = vmatpush3.msra.mxu0 %v702_v33  ;;  %v734_v34 = vld [vmem:[#allocation10 + $0x148] sm:$0xff]  ;;  %v699_v33 = vld [vmem:[#allocation10 + $0x30] sm:$0xff] }
 0x1e1   :  { %5195 = vmatprep.subr.mxu1 %v752_v17  ;;  %5157 = vmatprep.subr.mxu0 %v717_v18  ;;  %v749_v17 = vld [vmem:[#allocation10 + $0x1c0] sm:$0xff] }
 0x1e2   :  { %5196 = vmatpush3.msra.mxu1 %v736_v50  ;;  %5158 = vmatpush3.msra.mxu0 %v701_v16  ;;  %v733_v18 = vld [vmem:[#allocation10 + $0x140] sm:$0xff]  ;;  %v698_v50 = vld [vmem:[#allocation10 + $0x28] sm:$0xff] }
 0x1e3   :  { %5197 = vmatprep.subr.mxu1 %v751_v1  ;;  %5159 = vmatprep.subr.mxu0 %v716_v0  ;;  %v713_v16 = vld [vmem:[#allocation10 + $0xa0] sm:$0xff]  ;;  %v732_v1 = vld [vmem:[#allocation10 + $0x138] sm:$0xff] }
 0x1e4   :  { %5198 = vmatpush3.msra.mxu1 %v735_v2  ;;  %5160 = vmatpush3.msra.mxu0 %v700_v32  ;;  %v697_v0 = vld [vmem:[#allocation10 + $0x20] sm:$0xff]  ;;  %v747_v2 = vld [vmem:[#allocation10 + $0x1b0] sm:$0xff]  ;;  %v712_v32 = vld [vmem:[#allocation10 + $0x98] sm:$0xff] }
 0x1e5   :  { %5199 = vmatprep.subr.mxu1 %v750_v48  ;;  %5161 = vmatprep.subr.mxu0 %v715_v49  ;;  %v731_v48 = vld [vmem:[#allocation10 + $0x130] sm:$0xff]  ;;  %v746_v49 = vld [vmem:[#allocation10 + $0x1a8] sm:$0xff] }
 0x1e6   :  { %5200 = vmatpush3.msra.mxu1 %v734_v34  ;;  %5162 = vmatpush3.msra.mxu0 %v699_v33  ;;  %v711_v34 = vld [vmem:[#allocation10 + $0x90] sm:$0xff] }
 0x1e7   :  { %5201 = vmatprep.subr.mxu1 %v749_v17  ;;  %5163 = vmatprep.subr.mxu0 %v714_v35  ;;  %v695_v33 = vld [vmem:[#allocation10 + $0x10] sm:$0xff]  ;;  %v745_v17 = vld [vmem:[#allocation10 + $0x1a0] sm:$0xff]  ;;  %v710_v35 = vld [vmem:[#allocation10 + $0x88] sm:$0xff] }
 0x1e8   :  { %5202 = vmatpush3.msra.mxu1 %v733_v18  ;;  %5164 = vmatpush3.msra.mxu0 %v698_v50  ;;  %v729_v18 = vld [vmem:[#allocation10 + $0x120] sm:$0xff]  ;;  %v744_v50 = vld [vmem:[#allocation10 + $0x198] sm:$0xff] }
 0x1e9   :  { %5203 = vmatprep.subr.mxu1 %v748_v3  ;;  %5165 = vmatprep.subr.mxu0 %v713_v16  ;;  %v694_v3 = vld [vmem:[#allocation10 + $0x8] sm:$0xff]  ;;  %v709_v16 = vld [vmem:[#allocation10 + $0x80] sm:$0xff] }
 0x1ea   :  { %5204 = vmatpush3.msra.mxu1 %v732_v1  ;;  %5166 = vmatpush3.msra.mxu0 %v697_v0  ;;  %v728_v1 = vld [vmem:[#allocation10 + $0x118] sm:$0xff]  ;;  %v693_v0 = vld [vmem:[#allocation10] sm:$0xff] }
 0x1eb   :  { %5205 = vmatprep.subr.mxu1 %v747_v2  ;;  %5167 = vmatprep.subr.mxu0 %v712_v32  ;;  %v743_v2 = vld [vmem:[#allocation10 + $0x190] sm:$0xff]  ;;  %v788_v32 = vld [vmem:[#allocation10 + $0x2f8] sm:$0xff] }
 0x1ec   :  { %5206 = vmatpush3.msra.mxu1 %v731_v48  ;;  %5168 = vmatpush3.msra.mxu0 %v696_v51  ;;  %v727_v51 = vld [vmem:[#allocation10 + $0x110] sm:$0xff]  ;;  %v726_v48 = vld [vmem:[#allocation10 + $0x108] sm:$0xff] }
 0x1ed   :  { %5207 = vmatprep.subr.mxu1 %v746_v49  ;;  %5169 = vmatprep.subr.mxu0 %v711_v34  ;;  %v741_v49 = vld [vmem:[#allocation10 + $0x180] sm:$0xff] }
 0x1ee   :  { %5208 = vmatpush3.msra.mxu1 %v730_v19  ;;  %5170 = vmatpush3.msra.mxu0 %v695_v33  ;;  %v742_v19 = vld [vmem:[#allocation10 + $0x188] sm:$0xff]  ;;  %v725_v34 = vld [vmem:[#allocation10 + $0x100] sm:$0xff] }
 0x1ef   :  { %5209 = vmatprep.subr.mxu1 %v745_v17  ;;  %5171 = vmatprep.subr.mxu0 %v710_v35 }
 0x1f0   :  { %5210 = vmatpush3.msra.mxu1 %v729_v18  ;;  %5172 = vmatpush3.msra.mxu0 %v694_v3 }
 0x1f1   :  { %5211 = vmatprep.subr.mxu1 %v744_v50  ;;  %5173 = vmatprep.subr.mxu0 %v709_v16 }
 0x1f2   :  { %5212 = vmatpush3.msra.mxu1 %v728_v1  ;;  %5174 = vmatpush3.msra.mxu0 %v693_v0 }
 0x1f3   :  { %5213 = vmatprep.subr.mxu1 %v743_v2  ;;  %5231 = vmatprep.subr.mxu0 %v788_v32 }
 0x1f4   :  { %5214 = vmatpush3.msra.mxu1 %v727_v51 }
 0x1f5   :  { %5215 = vmatprep.subr.mxu1 %v742_v19 }
 0x1f6   :  { %5216 = vmatpush3.msra.mxu1 %v726_v48 }
 0x1f7   :  { %5217 = vmatprep.subr.mxu1 %v741_v49 }
 0x1f8   :  { %5218 = vmatpush3.msra.mxu1 %v725_v34 }
 0x292   :  { %v6585_v33 = vpop.f32.mrf.mxu0 }
 0x293   :  { %v571_v3 = vmul.f32 %v6585_v33, %v6585_v33 }
 0x294   :  { %v6587_v17 = vpop.f32.mrf.mxu0 }
 0x295   :  { %v572_v1 = vmul.f32 %v6587_v17, %v6587_v17 }
 0x296   :  { %v6589_v35 = vpop.f32.mrf.mxu0  ;;  %v6591_v18 = vpop.f32.mrf.mxu1 }
 0x297   :  { %v550_v50 = vadd.f32 %v6589_v35, %v6585_v33  ;;  %v573_v16 = vmul.f32 %v6589_v35, %v6589_v35  ;;  %v575_v0 = vmul.f32 %v6591_v18, %v6591_v18 }
 0x298   :  { %v6603_v2 = vpop.f32.mrf.mxu0  ;;  %v6605_v51 = vpop.f32.mrf.mxu1 }
 0x299   :  { %v579_v32 = vadd.f32 %v573_v16, %v571_v3  ;;  %v551_v19 = vadd.f32 %v550_v50, %v6591_v18  ;;  %v559_v48 = vadd.f32 %v6603_v2, %v6587_v17  ;;  %v574_v49 = vmul.f32 %v6603_v2, %v6603_v2 }
 0x29a   :  { %v576_v34 = vmul.f32 %v6605_v51, %v6605_v51  ;;  %v6614_v36 = vpop.f32.mrf.mxu1 }
 0x29b   :  { %v580_v4 = vadd.f32 %v579_v32, %v575_v0  ;;  %v588_v52 = vadd.f32 %v574_v49, %v572_v1  ;;  %v560_v20 = vadd.f32 %v559_v48, %v6605_v51  ;;  %v552_v37 = vadd.f32 %v551_v19, %v6614_v36 }
 0x29c   :  { %v577_v3 = vmul.f32 %v6614_v36, %v6614_v36  ;;  %v6620_v50 = vpop.f32.mrf.mxu1 }
 0x29d   :  { %v589_v16 = vadd.f32 %v588_v52, %v576_v34  ;;  %v553_v5 = vrot.slane %v552_v37, 4  ;;  %v561_v53 = vadd.f32 %v560_v20, %v6620_v50  ;;  %v578_v21 = vmul.f32 %v6620_v50, %v6620_v50 }
 0x29e   :  { %v581_v38 = vadd.f32 %v580_v4, %v577_v3 }
 0x29f   :  { %v554_v6 = vadd.f32 %v553_v5, %v552_v37  ;;  %v562_v0 = vrot.slane %v561_v53, 4  ;;  %v590_v1 = vadd.f32 %v589_v16, %v578_v21 }
 0x2a0   :  { %v582_v32 = vrot.slane %v581_v38, 4 }
 0x2a1   :  { %v555_v48 = vrot.slane %v554_v6, 2  ;;  %v563_v49 = vadd.f32 %v562_v0, %v561_v53  ;;  %v591_v19 = vrot.slane %v590_v1, 4 }
 0x2a2   :  { %v583_v54 = vadd.f32 %v582_v32, %v581_v38 }
 0x2a3   :  { %v556_v22 = vadd.f32 %v555_v48, %v554_v6  ;;  %v564_v39 = vrot.slane %v563_v49, 2  ;;  %v592_v7 = vadd.f32 %v591_v19, %v590_v1 }
 0x2a4   :  { %v584_v55 = vrot.slane %v583_v54, 2 }
 0x2a5   :  { %v557_v52 = vrot.slane %v556_v22, 1  ;;  %v565_v34 = vadd.f32 %v564_v39, %v563_v49  ;;  %v593_v23 = vrot.slane %v592_v7, 2 }
 0x2a6   :  { %v585_v20 = vadd.f32 %v584_v55, %v583_v54 }
 0x2a7   :  { %v558_v40 = vadd.f32 %v557_v52, %v556_v22  ;;  %v566_v8 = vrot.slane %v565_v34, 1  ;;  %v594_v56 = vadd.f32 %v593_v23, %v592_v7  ;;  %v6187_v22 = vmov 1966171168  }
 0x2a8   :  { %v586_v4 = vrot.slane %v585_v20, 1  ;;  %v611_v54 = vunpack.c.l.s4 %v6187_v22  ;;  %v613_v7 = vlaneseq }
 0x2a9   :  { %v569_v5 = vmul.f32 0.03125, %v558_v40  ;;  %v567_v37 = vadd.f32 %v566_v8, %v565_v34  ;;  %v595_v21 = vrot.slane %v594_v56, 1  ;;  %v547_v34 = vld [vmem:[#allocation11] ss:$8 sm:$0x3] }
 0x2aa   :  { %v587_v3 = vadd.f32 %v586_v4, %v585_v20  ;;  %v612_v23 = vunpack.c.0.s8 %v611_v54  ;;  %v6625_v40 = vshrl.u32 %v613_v7, 7 }
 0x2ab   :  { %v599_v16 = vmul.f32 %v569_v5, %v569_v5  ;;  %v570_v53 = vmul.f32 0.03125, %v567_v37  ;;  %v596_v0 = vadd.f32 %v595_v21, %v594_v56 }
 0x2ac   :  { %v597_v38 = vmul.f32 0.03125, %v587_v3  ;;  %8511 = vst [vmem:[#allocation90_spill] sm:$0xff] %v6625_v40  ;;  %v615_v55 = vsub.s32 %v612_v23, %v6625_v40  ;;  %v6629_v4 = vsub.s32 0, %v6625_v40  ;;  %v6632_v37 = vsub.s32 1, %v6625_v40 }
 0x2ad   :  { %v598_v6 = vmul.f32 0.03125, %v596_v0  ;;  %v600_v32 = vmul.f32 %v570_v53, %v570_v53 }
 0x2ae   :  { %v601_v1 = vsub.f32 %v597_v38, %v599_v16  ;;  %8512 = vst [vmem:[#allocation91_spill] sm:$0xff] %v6629_v4  ;;  %8513 = vst [vmem:[#allocation92_spill] sm:$0xff] %v6632_v37 }
 0x2af   :  { %v602_v48 = vsub.f32 %v598_v6, %v600_v32 }
 0x2b0   :  { %v603_v19 = vadd.f32 1e-05, %v601_v1  ;;  %v549_v1 = vld [vmem:[#allocation11 + $0x1] ss:$8 sm:$0x3] }
 0x2b1   :  { %v604_v39 = vadd.f32 1e-05, %v602_v48 }
 0x2b2   :  { %5612 = vrsqrt.f32 %v603_v19 }
 0x2b3   :  { %5614 = vrsqrt.f32 %v604_v39 }
 0x2bf   :  { %v5613_v8 = vpop.eup %5612 }
 0x2c0   :  { %v5615_v49 = vpop.eup %5614 }
 0x2c1   :  { %v609_v56 = vcombine.low %v5613_v8, %v5615_v49 }
 0x2c3   :  { %v616_v52 = vrot.slane %v609_v56, %v615_v55 }
 0x2c5   :  { %v623_v20 = vrot.slane %v616_v52, %v615_v55 }
 0x2c7   :  { %v625_v21 = vmul.f32 %v623_v20, %v547_v34 }
 0x2c9   :  { %v630_v3 = vrot.slane %v625_v21, %v6629_v4  ;;  %v634_v16 = vrot.slane %v625_v21, %v6632_v37 }
 0x2cb   :  { %v637_v0 = vmul.f32 %v630_v3, %v569_v5  ;;  %v638_v38 = vmul.f32 %v634_v16, %v570_v53  ;;  %v665_v39 = vmul.f32 %v634_v16, %v6620_v50  ;;  %v659_v7 = vmul.f32 %v634_v16, %v6587_v17 }
 0x2cc   :  { %v658_v23 = vmul.f32 %v630_v3, %v6585_v33  ;;  %v661_v8 = vmul.f32 %v634_v16, %v6603_v2  ;;  %v660_v56 = vmul.f32 %v630_v3, %v6589_v35  ;;  %v662_v34 = vmul.f32 %v630_v3, %v6591_v18 }
 0x2cd   :  { %v641_v6 = vcombine.low %v637_v0, %v638_v38  ;;  %v664_v33 = vmul.f32 %v630_v3, %v6614_v36  ;;  %v772_v36 = vld [vmem:[#allocation10 + $0x278] sm:$0xff] }
 0x2cf   :  { %v648_v32 = vrot.slane %v641_v6, %v615_v55 }
 0x2d1   :  { %v655_v48 = vrot.slane %v648_v32, %v615_v55  ;;  %v663_v55 = vmul.f32 %v634_v16, %v6605_v51  ;;  %v787_v32 = vld [vmem:[#allocation10 + $0x2f0] sm:$0xff] }
 0x2d3   :  { %v657_v19 = vsub.f32 %v549_v1, %v655_v48 }
 0x2d5   :  { %v670_v22 = vrot.slane %v657_v19, %v6629_v4  ;;  %v674_v54 = vrot.slane %v657_v19, %v6632_v37  ;;  %v771_v19 = vld [vmem:[#allocation10 + $0x270] sm:$0xff] }
 0x2d7   :  { %v684_v49 = vadd.f32 %v674_v54, %v665_v39  ;;  %v678_v5 = vadd.f32 %v674_v54, %v659_v7  ;;  %v677_v53 = vadd.f32 %v670_v22, %v658_v23  ;;  %v680_v52 = vadd.f32 %v674_v54, %v661_v8 }
 0x2d8   :  { %v679_v50 = vadd.f32 %v670_v22, %v660_v56  ;;  %v682_v20 = vadd.f32 %v674_v54, %v663_v55  ;;  %v681_v17 = vadd.f32 %v670_v22, %v662_v34  ;;  %v683_v2 = vadd.f32 %v670_v22, %v664_v33 }
 0x2d9   :  { %5616 = vtanh.f32 %v684_v49  ;;  %v786_v49 = vld [vmem:[#allocation10 + $0x2e8] sm:$0xff] }
 0x2da   :  { %5618 = vtanh.f32 %v678_v5 }
 0x2db   :  { %5620 = vtanh.f32 %v677_v53 }
 0x2dc   :  { %5622 = vtanh.f32 %v680_v52 }
 0x2dd   :  { %5624 = vtanh.f32 %v679_v50  ;;  %v770_v50 = vld [vmem:[#allocation10 + $0x268] sm:$0xff] }
 0x2de   :  { %5626 = vtanh.f32 %v682_v20 }
 0x2df   :  { %5628 = vtanh.f32 %v681_v17 }
 0x2e0   :  { %5630 = vtanh.f32 %v683_v2 }
 0x2e6   :  { %v6646_v35 = vpop.eup %5616 }
 0x2e7   :  { %v5619_v51 = vpop.eup %5618  ;;  %v810_v7 = vrot.slane %v6646_v35, 7 }
 0x2e8   :  { %v5621_v18 = vpop.eup %5620  ;;  %v801_v16 = vrot.slane %v5619_v51, 7 }
 0x2e9   :  { %v5623_v0 = vpop.eup %5622  ;;  %v800_v38 = vrot.slane %v5621_v18, 7  ;;  %v785_v18 = vld [vmem:[#allocation10 + $0x2e0] sm:$0xff] }
 0x2ea   :  { %v5625_v3 = vpop.eup %5624  ;;  %5065 = vmatprep.mubr.msk.f32.mxu0 %vm6649_vm5, %v801_v16  ;;  %v804_v6 = vrot.slane %v5623_v0, 7  ;;  %v6656_v1 = vsel %vm799_vm4, 0.0, %v801_v16 }
 0x2eb   :  { %v5627_v48 = vpop.eup %5626  ;;  %5067 = vmatmul.mubr.msk.f32.vlgmr.msra.gmra.mxu0 %vm6649_vm5, %v800_v38  ;;  %v844_v39 = vrot.slane %v6656_v1, 1  ;;  %v802_v22 = vrot.slane %v5625_v3, 7  ;;  %v824_v54 = vsel %vm799_vm4, 0.0, %v800_v38  ;;  %v769_v3 = vld [vmem:[#allocation10 + $0x260] sm:$0xff] }
 0x2ec   :  { %v5629_v23 = vpop.eup %5628  ;;  %5232 = vmatpush3.msra.mxu0 %v772_v36  ;;  %v6664_v8 = vsel %vm799_vm4, %v801_v16, %v804_v6  ;;  %v841_v5 = vrot.slane %v824_v54, 1  ;;  %v807_v53 = vrot.slane %v5627_v48, 7  ;;  %v6667_v56 = vsel %vm799_vm4, %v804_v6, 0.0  ;;  %v784_v48 = vld [vmem:[#allocation10 + $0x2d8] sm:$0xff] }
 0x2ed   :  { %v845_v52 = vrot.slane %v6664_v8, 1  ;;  %967 = vmatprep.mubr.f32.mxu0 %v6664_v8  ;;  %5233 = vmatprep.subr.mxu0 %v787_v32  ;;  %v6672_v55 = vsel %vm799_vm4, %v800_v38, %v802_v22  ;;  %v849_v34 = vrot.slane %v6667_v56, 1  ;;  %v5631_v20 = vpop.eup %5630  ;;  %v806_v33 = vrot.slane %v5629_v23, 7 }
 0x2ee   :  { %5234 = vmatpush3.msra.mxu0 %v771_v19  ;;  %v842_v17 = vrot.slane %v6672_v55, 1  ;;  %v828_v2 = vsel %vm799_vm4, %v802_v22, 0.0  ;;  %v871_v51 = vrot.slane %v6672_v55, 2  ;;  %v6681_v0 = vsel %vm799_vm4, %v807_v53, %v810_v7 }
 0x2ef   :  { %v846_v35 = vsel %vm840_vm6, %v844_v39, %v845_v52  ;;  %5235 = vmatprep.subr.mxu0 %v786_v49  ;;  %968 = vmatmul.mubr.f32.gmra.mxu0 %v6672_v55  ;;  %v847_v16 = vrot.slane %v828_v2, 1  ;;  %v850_v36 = vsel %vm840_vm6, %v845_v52, %v849_v34  ;;  %v855_v6 = vrot.slane %v6681_v0, 1  ;;  %v768_v49 = vld [vmem:[#allocation10 + $0x258] sm:$0xff]  ;;  %v783_v34 = vld [vmem:[#allocation10 + $0x2d0] sm:$0xff] }
 0x2f0   :  { %1047 = vmatprep.mubr.f32.mxu1 %v846_v35  ;;  %v843_v38 = vsel %vm840_vm6, %v841_v5, %v842_v17  ;;  %5236 = vmatpush3.msra.mxu0 %v770_v50  ;;  %v6687_v32 = vsel %vm799_vm4, 0.0, %v807_v53  ;;  %v808_v22 = vrot.slane %v5631_v20, 7  ;;  %v826_v23 = vsel %vm799_vm4, 0.0, %v806_v33 }
 0x2f1   :  { %1048 = vmatmul.mubr.f32.vlgmr.msra.gmra.mxu1 %v843_v38  ;;  %5069 = vmatprep.mubr.msk.f32.mxu0 %vm6649_vm5, %v807_v53  ;;  %v848_v19 = vsel %vm840_vm6, %v842_v17, %v847_v16  ;;  %v854_v39 = vrot.slane %v6687_v32, 1  ;;  %v851_v5 = vrot.slane %v826_v23, 1  ;;  %v870_v52 = vrot.slane %v824_v54, 2  ;;  %v767_v16 = vld [vmem:[#allocation10 + $0x250] sm:$0xff] }
 0x2f2   :  { %1052 = vmatprep.mubr.f32.mxu1 %v850_v36  ;;  %5237 = vmatprep.subr.mxu0 %v785_v18  ;;  %v809_v55 = vsel %vm799_vm4, %v806_v33, %v808_v22  ;;  %v6696_v50 = vsel %vm799_vm4, %v810_v7, 0.0  ;;  %v830_v53 = vsel %vm799_vm4, %v808_v22, 0.0  ;;  %v876_v7 = vrot.slane %v828_v2, 2  ;;  %v782_v36 = vld [vmem:[#allocation10 + $0x2c8] sm:$0xff] }
 0x2f3   :  { %5238 = vmatpush3.msra.mxu0 %v769_v3  ;;  %v852_v20 = vrot.slane %v809_v55, 1  ;;  %v881_v17 = vrot.slane %v809_v55, 2  ;;  %v857_v35 = vrot.slane %v830_v53, 1  ;;  %v6702_v18 = vsel %vm869_vm7, %v870_v52, %v871_v51 }
 0x2f4   :  { %5239 = vmatprep.subr.mxu0 %v784_v48  ;;  %5071 = vmatmul.mubr.msk.f32.gmra.mxu0 %vm6649_vm5, %v806_v33  ;;  %v856_v54 = vsel %vm840_vm6, %v854_v39, %v855_v6  ;;  %v880_v38 = vrot.slane %v826_v23, 2  ;;  %v859_v3 = vrot.slane %v6696_v50, 1  ;;  %v886_v22 = vrot.slane %v830_v53, 2 }
 0x2f5   :  { %1053 = vmatmul.mubr.f32.gmra.mxu1 %v848_v19  ;;  %5240 = vmatpush3.msra.mxu0 %v768_v49  ;;  %v853_v33 = vsel %vm840_vm6, %v851_v5, %v852_v20  ;;  %v858_v48 = vsel %vm840_vm6, %v852_v20, %v857_v35  ;;  %v874_v52 = vrot.slane %v6664_v8, 2  ;;  %v766_v19 = vld [vmem:[#allocation10 + $0x248] sm:$0xff]  ;;  %v873_v39 = vrot.slane %v6656_v1, 2  ;;  %v781_v49 = vld [vmem:[#allocation10 + $0x2c0] sm:$0xff]  ;;  %v780_v8 = vld [vmem:[#allocation10 + $0x2b8] sm:$0xff] }
 0x2f6   :  { %977 = vmatprep.mubr.f32.mxu0 %v6681_v0  ;;  %1057 = vmatprep.mubr.f32.mxu1 %v856_v54  ;;  %v877_v2 = vsel %vm869_vm7, %v871_v51, %v876_v7  ;;  %v882_v23 = vsel %vm869_vm7, %v880_v38, %v881_v17  ;;  %v887_v54 = vsel %vm869_vm7, %v881_v17, %v886_v22  ;;  %v765_v5 = vld [vmem:[#allocation10 + $0x240] sm:$0xff]  ;;  %v779_v51 = vld [vmem:[#allocation10 + $0x2b0] sm:$0xff]  ;;  %v778_v17 = vld [vmem:[#allocation10 + $0x2a8] sm:$0xff] }
 0x2f7   :  { %5241 = vmatprep.subr.mxu0 %v783_v34  ;;  %v860_v53 = vsel %vm840_vm6, %v855_v6, %v859_v3  ;;  %v875_v1 = vsel %vm869_vm7, %v873_v39, %v874_v52  ;;  %v764_v34 = vld [vmem:[#allocation10 + $0x238] sm:$0xff]  ;;  %v763_v20 = vld [vmem:[#allocation10 + $0x230] sm:$0xff]  ;;  %v777_v35 = vld [vmem:[#allocation10 + $0x2a0] sm:$0xff]  ;;  %v884_v39 = vrot.slane %v6681_v0, 2 }
 0x2f8   :  { %5242 = vmatpush3.msra.mxu0 %v767_v16  ;;  %v761_v6 = vld [vmem:[#allocation10 + $0x220] sm:$0xff]  ;;  %v776_v16 = vld [vmem:[#allocation10 + $0x298] sm:$0xff]  ;;  %v775_v38 = vld [vmem:[#allocation10 + $0x290] sm:$0xff] }
 0x2f9   :  { %5243 = vmatprep.subr.mxu0 %v782_v36  ;;  %978 = vmatmul.mubr.f32.gmra.mxu0 %v809_v55  ;;  %v762_v55 = vld [vmem:[#allocation10 + $0x228] sm:$0xff]  ;;  %v760_v7 = vld [vmem:[#allocation10 + $0x218] sm:$0xff]  ;;  %v759_v36 = vld [vmem:[#allocation10 + $0x210] sm:$0xff] }
 0x2fa   :  { %1058 = vmatmul.mubr.f32.gmra.mxu1 %v853_v33  ;;  %5244 = vmatpush3.msra.mxu0 %v766_v19  ;;  %v774_v33 = vld [vmem:[#allocation10 + $0x288] sm:$0xff]  ;;  %v757_v22 = vld [vmem:[#allocation10 + $0x200] sm:$0xff]  ;;  %v878_v19 = vrot.slane %v6667_v56, 2 }
 0x2fb   :  { %1062 = vmatprep.mubr.f32.mxu1 %v860_v53  ;;  %5245 = vmatprep.subr.mxu0 %v781_v49  ;;  %v758_v3 = vld [vmem:[#allocation10 + $0x208] sm:$0xff]  ;;  %v1227_v0 = vld [vmem:[%s8368_s3 + $0xf8] sm:$0xff] }
 0x2fc   :  { %1132 = vmatprep.mubr.f32.mxu0 %v875_v1  ;;  %5246 = vmatpush3.msra.mxu0 %v765_v5  ;;  %v879_v49 = vsel %vm869_vm7, %v874_v52, %v878_v19  ;;  %v883_v5 = vrot.slane %v6687_v32, 2  ;;  %v1243_v32 = vld [vmem:[%s8368_s3 + $0x178] sm:$0xff]  ;;  %v1242_v52 = vld [vmem:[%s8368_s3 + $0x170] sm:$0xff]  ;;  %v1209_v1 = vld [vmem:[%s8368_s3 + $0x68] sm:$0xff] }
 0x2fd   :  { %5247 = vmatprep.subr.mxu0 %v780_v8  ;;  %v888_v8 = vrot.slane %v6696_v50, 2  ;;  %5275 = vmatprep.subr.mxu1 %v1227_v0  ;;  %v1211_v50 = vld [vmem:[%s8368_s3 + $0x78] sm:$0xff]  ;;  %v1233_v0 = vld [vmem:[%s8368_s3 + $0x128] sm:$0xff] }
 0x2fe   :  { %1063 = vmatmul.mubr.f32.gmra.mxu1 %v858_v48  ;;  %5248 = vmatpush3.msra.mxu0 %v764_v34  ;;  %v773_v48 = vld [vmem:[#allocation10 + $0x280] sm:$0xff]  ;;  %v885_v53 = vsel %vm869_vm7, %v883_v5, %v884_v39  ;;  %v1224_v34 = vld [vmem:[%s8368_s3 + $0xe0] sm:$0xff]  ;;  %v1218_v5 = vld [vmem:[%s8368_s3 + $0xb0] sm:$0xff] }
 0x2ff   :  { %5249 = vmatprep.subr.mxu0 %v779_v51  ;;  %v889_v56 = vsel %vm869_vm7, %v884_v39, %v888_v8  ;;  %5276 = vmatpush3.msra.mxu1 %v1211_v50  ;;  %v1240_v51 = vld [vmem:[%s8368_s3 + $0x160] sm:$0xff]  ;;  %v1219_v19 = vld [vmem:[%s8368_s3 + $0xb8] sm:$0xff]  ;;  %v1202_v8 = vld [vmem:[%s8368_s3 + $0x30] sm:$0xff] }
 0x300   :  { %5250 = vmatpush3.msra.mxu0 %v763_v20  ;;  %v1208_v20 = vld [vmem:[%s8368_s3 + $0x60] sm:$0xff]  ;;  %v1235_v39 = vld [vmem:[%s8368_s3 + $0x138] sm:$0xff] }
 0x301   :  { %5251 = vmatprep.subr.mxu0 %v778_v17  ;;  %v1223_v17 = vld [vmem:[%s8368_s3 + $0xd8] sm:$0xff]  ;;  %v1216_v50 = vld [vmem:[%s8368_s3 + $0xa0] sm:$0xff] }
 0x302   :  { %5252 = vmatpush3.msra.mxu0 %v762_v55  ;;  %v1239_v55 = vld [vmem:[%s8368_s3 + $0x158] sm:$0xff] }
 0x303   :  { %5253 = vmatprep.subr.mxu0 %v777_v35  ;;  %v1207_v35 = vld [vmem:[%s8368_s3 + $0x58] sm:$0xff] }
 0x304   :  { %5254 = vmatpush3.msra.mxu0 %v761_v6  ;;  %v1222_v6 = vld [vmem:[%s8368_s3 + $0xd0] sm:$0xff] }
 0x305   :  { %5255 = vmatprep.subr.mxu0 %v776_v16  ;;  %v1238_v16 = vld [vmem:[%s8368_s3 + $0x150] sm:$0xff] }
 0x306   :  { %5256 = vmatpush3.msra.mxu0 %v760_v7  ;;  %v1206_v7 = vld [vmem:[%s8368_s3 + $0x50] sm:$0xff] }
 0x307   :  { %5257 = vmatprep.subr.mxu0 %v775_v38  ;;  %v1221_v38 = vld [vmem:[%s8368_s3 + $0xc8] sm:$0xff] }
 0x308   :  { %5258 = vmatpush3.msra.mxu0 %v759_v36  ;;  %v1237_v36 = vld [vmem:[%s8368_s3 + $0x148] sm:$0xff] }
 0x309   :  { %5259 = vmatprep.subr.mxu0 %v774_v33  ;;  %v1205_v33 = vld [vmem:[%s8368_s3 + $0x48] sm:$0xff] }
 0x30a   :  { %5260 = vmatpush3.msra.mxu0 %v758_v3  ;;  %v1220_v3 = vld [vmem:[%s8368_s3 + $0xc0] sm:$0xff] }
 0x30b   :  { %5261 = vmatprep.subr.mxu0 %v773_v48  ;;  %v1236_v48 = vld [vmem:[%s8368_s3 + $0x140] sm:$0xff] }
 0x30c   :  { %5262 = vmatpush3.msra.mxu0 %v757_v22  ;;  %v1204_v22 = vld [vmem:[%s8368_s3 + $0x40] sm:$0xff] }
 0x30d   :  { %1133 = vmatmul.mubr.f32.vlgmr.msra.gmra.mxu0 %v6702_v18  ;;  %5519 = vmatprep.subr.mxu0 %v1243_v32  ;;  %v1226_v18 = vld [vmem:[%s8368_s3 + $0xf0] sm:$0xff] }
 0x30e   :  { %1137 = vmatprep.mubr.f32.mxu0 %v879_v49  ;;  %5520 = vmatpush3.msra.mxu0 %v1243_v32  ;;  %v1203_v49 = vld [vmem:[%s8368_s3 + $0x38] sm:$0xff]  ;;  %v1201_v32 = vld [vmem:[%s8368_s3 + $0x28] sm:$0xff] }
 0x30f   :  { %5277 = vmatprep.subr.mxu1 %v1226_v18  ;;  %5521 = vmatprep.subr.mxu0 %v1242_v52  ;;  %v1232_v18 = vld [vmem:[%s8368_s3 + $0x120] sm:$0xff] }
 0x310   :  { %5522 = vmatpush3.msra.mxu0 %v1242_v52  ;;  %v1200_v52 = vld [vmem:[%s8368_s3 + $0x20] sm:$0xff] }
 0x311   :  { %1138 = vmatmul.mubr.f32.gmra.mxu0 %v877_v2  ;;  %v1210_v2 = vld [vmem:[%s8368_s3 + $0x70] sm:$0xff] }
 0x312   :  { %1142 = vmatprep.mubr.f32.mxu0 %v885_v53  ;;  %5278 = vmatpush3.msra.mxu1 %v1210_v2  ;;  %v1234_v53 = vld [vmem:[%s8368_s3 + $0x130] sm:$0xff]  ;;  %v1215_v2 = vld [vmem:[%s8368_s3 + $0x98] sm:$0xff] }
 0x315   :  { %1143 = vmatmul.mubr.f32.gmra.mxu0 %v882_v23  ;;  %v1225_v23 = vld [vmem:[%s8368_s3 + $0xe8] sm:$0xff] }
 0x316   :  { %1147 = vmatprep.mubr.f32.mxu0 %v889_v56  ;;  %5279 = vmatprep.subr.mxu1 %v1225_v23  ;;  %v1217_v56 = vld [vmem:[%s8368_s3 + $0xa8] sm:$0xff]  ;;  %v1231_v23 = vld [vmem:[%s8368_s3 + $0x118] sm:$0xff] }
 0x317   :  { %5280 = vmatpush3.msra.mxu1 %v1209_v1  ;;  %v1214_v1 = vld [vmem:[%s8368_s3 + $0x90] sm:$0xff] }
 0x318   :  { %5281 = vmatprep.subr.mxu1 %v1224_v34  ;;  %v1230_v34 = vld [vmem:[%s8368_s3 + $0x110] sm:$0xff] }
 0x319   :  { %1148 = vmatmul.mubr.f32.gmra.mxu0 %v887_v54  ;;  %v1241_v54 = vld [vmem:[%s8368_s3 + $0x168] sm:$0xff]  ;;  %5282 = vmatpush3.msra.mxu1 %v1208_v20 }
 0x31a   :  { %5523 = vmatprep.subr.mxu0 %v1241_v54  ;;  %5283 = vmatprep.subr.mxu1 %v1223_v17  ;;  %v1213_v20 = vld [vmem:[%s8368_s3 + $0x88] sm:$0xff] }
 0x31b   :  { %5524 = vmatpush3.msra.mxu0 %v1241_v54  ;;  %5284 = vmatpush3.msra.mxu1 %v1207_v35  ;;  %v1199_v54 = vld [vmem:[%s8368_s3 + $0x18] sm:$0xff]  ;;  %v1229_v17 = vld [vmem:[%s8368_s3 + $0x108] sm:$0xff]  ;;  %v1212_v35 = vld [vmem:[%s8368_s3 + $0x80] sm:$0xff] }
 0x31c   :  { %5525 = vmatprep.subr.mxu0 %v1240_v51  ;;  %5285 = vmatprep.subr.mxu1 %v1222_v6  ;;  %v1228_v6 = vld [vmem:[%s8368_s3 + $0x100] sm:$0xff] }
 0x31d   :  { %5526 = vmatpush3.msra.mxu0 %v1240_v51  ;;  %5286 = vmatpush3.msra.mxu1 %v1206_v7  ;;  %v1198_v51 = vld [vmem:[%s8368_s3 + $0x10] sm:$0xff] }
 0x31e   :  { %5527 = vmatprep.subr.mxu0 %v1239_v55  ;;  %5287 = vmatprep.subr.mxu1 %v1221_v38 }
 0x31f   :  { %5528 = vmatpush3.msra.mxu0 %v1239_v55  ;;  %5288 = vmatpush3.msra.mxu1 %v1205_v33  ;;  %v1197_v55 = vld [vmem:[%s8368_s3 + $0x8] sm:$0xff] }
 0x320   :  { %5529 = vmatprep.subr.mxu0 %v1238_v16  ;;  %5289 = vmatprep.subr.mxu1 %v1220_v3 }
 0x321   :  { %5530 = vmatpush3.msra.mxu0 %v1238_v16  ;;  %5290 = vmatpush3.msra.mxu1 %v1204_v22  ;;  %v1196_v16 = vld [vmem:[%s8368_s3] sm:$0xff] }
 0x322   :  { %5531 = vmatprep.subr.mxu0 %v1237_v36  ;;  %5291 = vmatprep.subr.mxu1 %v1219_v19 }
 0x323   :  { %5532 = vmatpush3.msra.mxu0 %v1237_v36  ;;  %5292 = vmatpush3.msra.mxu1 %v1203_v49 }
 0x324   :  { %5533 = vmatprep.subr.mxu0 %v1236_v48  ;;  %5293 = vmatprep.subr.mxu1 %v1218_v5 }
 0x325   :  { %5534 = vmatpush3.msra.mxu0 %v1236_v48  ;;  %5294 = vmatpush3.msra.mxu1 %v1202_v8 }
 0x326   :  { %5535 = vmatprep.subr.mxu0 %v1235_v39  ;;  %5295 = vmatprep.subr.mxu1 %v1217_v56 }
 0x327   :  { %5536 = vmatpush3.msra.mxu0 %v1235_v39  ;;  %5296 = vmatpush3.msra.mxu1 %v1201_v32 }
 0x328   :  { %5537 = vmatprep.subr.mxu0 %v1234_v53  ;;  %5297 = vmatprep.subr.mxu1 %v1216_v50 }
 0x329   :  { %5538 = vmatpush3.msra.mxu0 %v1234_v53  ;;  %5298 = vmatpush3.msra.mxu1 %v1200_v52 }
 0x32a   :  { %5539 = vmatprep.subr.mxu0 %v1233_v0  ;;  %5299 = vmatprep.subr.mxu1 %v1215_v2 }
 0x32b   :  { %5540 = vmatpush3.msra.mxu0 %v1233_v0  ;;  %5300 = vmatpush3.msra.mxu1 %v1199_v54 }
 0x32c   :  { %5541 = vmatprep.subr.mxu0 %v1232_v18  ;;  %5301 = vmatprep.subr.mxu1 %v1214_v1 }
 0x32d   :  { %5542 = vmatpush3.msra.mxu0 %v1232_v18  ;;  %5302 = vmatpush3.msra.mxu1 %v1198_v51 }
 0x32e   :  { %5543 = vmatprep.subr.mxu0 %v1231_v23  ;;  %5303 = vmatprep.subr.mxu1 %v1213_v20 }
 0x32f   :  { %5544 = vmatpush3.msra.mxu0 %v1231_v23  ;;  %5304 = vmatpush3.msra.mxu1 %v1197_v55 }
 0x330   :  { %5545 = vmatprep.subr.mxu0 %v1230_v34  ;;  %5305 = vmatprep.subr.mxu1 %v1212_v35 }
 0x331   :  { %5546 = vmatpush3.msra.mxu0 %v1230_v34  ;;  %5306 = vmatpush3.msra.mxu1 %v1196_v16 }
 0x332   :  { %5547 = vmatprep.subr.mxu0 %v1229_v17 }
 0x333   :  { %5548 = vmatpush3.msra.mxu0 %v1229_v17 }
 0x334   :  { %5549 = vmatprep.subr.mxu0 %v1228_v6 }
 0x335   :  { %5550 = vmatpush3.msra.mxu0 %v1228_v6 }
 0x3ab   :  { %v5175_v7 = vpop.f32.mrf.mxu0 }
 0x3ad   :  { %v5176_v38 = vpop.f32.mrf.mxu0 }
 0x3ae   :  { %v5177_v54 = vadd.f32 %v5176_v38, %v5175_v7 }
 0x3af   :  { %v5178_v36 = vpop.f32.mrf.mxu0 }
 0x3b1   :  { %v5219_v33 = vpop.f32.mrf.mxu1  ;;  %v5179_v3 = vpop.f32.mrf.mxu0 }
 0x3b2   :  { %v5180_v2 = vadd.f32 %v5179_v3, %v5178_v36 }
 0x3b3   :  { %v5220_v48 = vpop.f32.mrf.mxu1 }
 0x3b4   :  { %v5181_v22 = vpop.f32.mrf.mxu0  ;;  %v5221_v23 = vadd.f32 %v5220_v48, %v5219_v33 }
 0x3b5   :  { %v5222_v19 = vpop.f32.mrf.mxu1 }
 0x3b6   :  { %v5182_v39 = vpop.f32.mrf.mxu0  ;;  %v1050_v6 = vadd.f32 %v5221_v23, %v5177_v54 }
 0x3b7   :  { %v5223_v49 = vpop.f32.mrf.mxu1  ;;  %v5183_v16 = vadd.f32 %v5182_v39, %v5181_v22 }
 0x3b8   :  { %v5224_v50 = vadd.f32 %v5223_v49, %v5222_v19 }
 0x3b9   :  { %v5184_v5 = vpop.f32.mrf.mxu0 }
 0x3ba   :  { %v5225_v53 = vpop.f32.mrf.mxu1  ;;  %v1055_v34 = vadd.f32 %v5224_v50, %v5180_v2 }
 0x3bb   :  { %v5185_v8 = vpop.f32.mrf.mxu0 }
 0x3bc   :  { %v5226_v56 = vpop.f32.mrf.mxu1  ;;  %v5186_v49 = vadd.f32 %v5185_v8, %v5184_v5 }
 0x3bd   :  { %v5227_v51 = vadd.f32 %v5226_v56, %v5225_v53 }
 0x3be   :  { %v5228_v18 = vpop.f32.mrf.mxu1 }
 0x3bf   :  { %v1060_v57 = vadd.f32 %v5227_v51, %v5183_v16  ;;  %v789_v16 = vld [vmem:[#allocation11 + $0x2] ss:$0 sm:$0xff] }
 0x3c0   :  { %v5229_v20 = vpop.f32.mrf.mxu1 }
 0x3c1   :  { %v5230_v41 = vadd.f32 %v5229_v20, %v5228_v18 }
 0x3c3   :  { %v1065_v7 = vadd.f32 %v5230_v41, %v5186_v49 }
 0x3cd   :  { %v5263_v0 = vpop.f32.mrf.mxu0 }
 0x3cf   :  { %v5264_v32 = vpop.f32.mrf.mxu0 }
 0x3d0   :  { %v5265_v17 = vadd.f32 %v5264_v32, %v5263_v0 }
 0x3d1   :  { %v5266_v52 = vpop.f32.mrf.mxu0 }
 0x3d2   :  { %v1135_v25 = vadd.f32 %v5265_v17, %v1050_v6 }
 0x3d3   :  { %v5267_v1 = vpop.f32.mrf.mxu0 }
 0x3d4   :  { %v5268_v55 = vadd.f32 %v5267_v1, %v5266_v52  ;;  %v1163_v3 = vmul.f32 %v1135_v25, %v1135_v25 }
 0x3d5   :  { %v5269_v35 = vpop.f32.mrf.mxu0 }
 0x3d6   :  { %v1140_v24 = vadd.f32 %v5268_v55, %v1055_v34 }
 0x3d7   :  { %v5270_v9 = vpop.f32.mrf.mxu0 }
 0x3d8   :  { %v5271_v19 = vadd.f32 %v5270_v9, %v5269_v35  ;;  %v1164_v36 = vmul.f32 %v1140_v24, %v1140_v24  ;;  %v1153_v48 = vadd.f32 %v1140_v24, %v1135_v25 }
 0x3d9   :  { %v5272_v42 = vpop.f32.mrf.mxu0 }
 0x3da   :  { %v1145_v33 = vadd.f32 %v5271_v19, %v1060_v57  ;;  %v1167_v0 = vadd.f32 %v1164_v36, %v1163_v3  ;;  %v790_v36 = vld [vmem:[#allocation11 + $0x3] ss:$0 sm:$0xff] }
 0x3db   :  { %v5273_v38 = vpop.f32.mrf.mxu0 }
 0x3dc   :  { %v1165_v53 = vmul.f32 %v1145_v33, %v1145_v33  ;;  %v5274_v56 = vadd.f32 %v5273_v38, %v5272_v42  ;;  %v1154_v32 = vadd.f32 %v1153_v48, %v1145_v33 }
 0x3de   :  { %v1150_v50 = vadd.f32 %v5274_v56, %v1065_v7  ;;  %v1168_v22 = vadd.f32 %v1167_v0, %v1165_v53 }
 0x3e0   :  { %v1155_v39 = vadd.f32 %v1154_v32, %v1150_v50  ;;  %v1166_v18 = vmul.f32 %v1150_v50, %v1150_v50 }
 0x3e2   :  { %v1156_v52 = vrot.slane %v1155_v39, 4  ;;  %v1169_v2 = vadd.f32 %v1168_v22, %v1166_v18 }
 0x3e4   :  { %v1157_v23 = vadd.f32 %v1156_v52, %v1155_v39  ;;  %v1170_v9 = vrot.slane %v1169_v2, 4 }
 0x3e6   :  { %v1158_v5 = vrot.slane %v1157_v23, 2  ;;  %v1171_v8 = vadd.f32 %v1170_v9, %v1169_v2 }
 0x3e8   :  { %v1159_v54 = vadd.f32 %v1158_v5, %v1157_v23  ;;  %v1172_v57 = vrot.slane %v1171_v8, 2 }
 0x3ea   :  { %v1160_v41 = vrot.slane %v1159_v54, 1  ;;  %v1173_v1 = vadd.f32 %v1172_v57, %v1171_v8 }
 0x3ec   :  { %v1161_v34 = vadd.f32 %v1160_v41, %v1159_v54  ;;  %v1174_v51 = vrot.slane %v1173_v1, 1 }
 0x3ee   :  { %v1162_v20 = vmul.f32 0.03125, %v1161_v34  ;;  %v1175_v42 = vadd.f32 %v1174_v51, %v1173_v1 }
 0x3f0   :  { %v1176_v17 = vmul.f32 0.03125, %v1175_v42  ;;  %v1177_v55 = vmul.f32 %v1162_v20, %v1162_v20 }
 0x3f2   :  { %v1178_v35 = vsub.f32 %v1176_v17, %v1177_v55 }
 0x3f4   :  { %v1179_v6 = vadd.f32 1e-05, %v1178_v35 }
 0x3f6   :  { %5632 = vrsqrt.f32 %v1179_v6 }
 0x403   :  { %v5633_v19 = vpop.eup %5632 }
 0x404   :  { %v1181_v49 = vmul.f32 %v5633_v19, %v789_v16 }
 0x406   :  { %v1182_v7 = vmul.f32 %v1181_v49, %v1162_v20  ;;  %v1187_v3 = vmul.f32 %v1181_v49, %v1150_v50  ;;  %v1184_v48 = vmul.f32 %v1181_v49, %v1135_v25  ;;  %v1185_v53 = vmul.f32 %v1181_v49, %v1140_v24 }
 0x407   :  { %v1186_v56 = vmul.f32 %v1181_v49, %v1145_v33 }
 0x408   :  { %v1183_v38 = vsub.f32 %v790_v36, %v1182_v7 }
 0x40a   :  { %v1191_v0 = vadd.f32 %v1187_v3, %v1183_v38  ;;  %v1188_v32 = vadd.f32 %v1184_v48, %v1183_v38  ;;  %v1189_v22 = vadd.f32 %v1185_v53, %v1183_v38  ;;  %v1190_v39 = vadd.f32 %v1186_v56, %v1183_v38 }
 0x40c   :  { %5634 = vtanh.f32 %v1191_v0 }
 0x40d   :  { %5636 = vtanh.f32 %v1188_v32 }
 0x40e   :  { %5638 = vtanh.f32 %v1189_v22 }
 0x40f   :  { %5640 = vtanh.f32 %v1190_v39 }
 0x419   :  { %v5635_v18 = vpop.eup %5634 }
 0x41a   :  { %v5637_v52 = vpop.eup %5636  ;;  %v1254_v2 = vrot.slane %v5635_v18, 7 }
 0x41b   :  { %v5639_v23 = vpop.eup %5638  ;;  %v1250_v9 = vrot.slane %v5637_v52, 7 }
 0x41c   :  { %v5641_v5 = vpop.eup %5640  ;;  %v1251_v8 = vrot.slane %v5639_v23, 7  ;;  %v1265_v24 = vsel %vm799_vm4, %v1254_v2, 0.0 }
 0x41d   :  { %v1262_v50 = vsel %vm799_vm4, 0.0, %v1250_v9  ;;  %v1253_v25 = vrot.slane %v5641_v5, 7  ;;  %v1292_v49 = vrot.slane %v1265_v24, 2  ;;  %v1278_v56 = vrot.slane %v1265_v24, 1 }
 0x41e   :  { %v1252_v33 = vsel %vm799_vm4, %v1250_v9, %v1251_v8  ;;  %v1270_v54 = vrot.slane %v1262_v50, 1  ;;  %v1284_v57 = vrot.slane %v1262_v50, 2  ;;  %v1264_v41 = vsel %vm799_vm4, %v1251_v8, 0.0 }
 0x41f   :  { %v1271_v1 = vrot.slane %v1252_v33, 1  ;;  %v1285_v34 = vrot.slane %v1252_v33, 2  ;;  %v1287_v51 = vrot.slane %v1264_v41, 2  ;;  %v1273_v20 = vrot.slane %v1264_v41, 1 }
 0x420   :  { %v1255_v42 = vsel %vm799_vm4, %v1253_v25, %v1254_v2  ;;  %v1263_v17 = vsel %vm799_vm4, 0.0, %v1253_v25 }
 0x421   :  { %v1272_v55 = vsel %vm840_vm6, %v1270_v54, %v1271_v1  ;;  %v1286_v35 = vsel %vm869_vm7, %v1284_v57, %v1285_v34  ;;  %v1288_v6 = vsel %vm869_vm7, %v1285_v34, %v1287_v51  ;;  %v1289_v16 = vrot.slane %v1263_v17, 2 }
 0x422   :  { %1362 = vmatprep.mubr.f32.mxu1 %v1272_v55  ;;  %5551 = vmatprep.mubr.f32.mxu0 %v1286_v35  ;;  %v1290_v19 = vrot.slane %v1255_v42, 2  ;;  %v1274_v36 = vsel %vm840_vm6, %v1271_v1, %v1273_v20  ;;  %v1275_v7 = vrot.slane %v1263_v17, 1  ;;  %v1276_v38 = vrot.slane %v1255_v42, 1 }
 0x423   :  { %5073 = vmatmul.mubr.msk.f32.vlgmr.msra.gmra.mxu1 %vm6649_vm5, %v1250_v9  ;;  %5552 = vmatmul.mubr.f32.vlgmr.msra.gmra.mxu0 %v1288_v6 }
 0x424   :  { %1367 = vmatprep.mubr.f32.mxu1 %v1274_v36  ;;  %v1291_v3 = vsel %vm869_vm7, %v1289_v16, %v1290_v19  ;;  %v1293_v48 = vsel %vm869_vm7, %v1290_v19, %v1292_v49  ;;  %v1277_v53 = vsel %vm840_vm6, %v1275_v7, %v1276_v38  ;;  %v1279_v0 = vsel %vm840_vm6, %v1276_v38, %v1278_v56 }
 0x425   :  { %5554 = vmatprep.mubr.f32.mxu0 %v1291_v3 }
 0x427   :  { %1368 = vmatmul.mubr.f32.gmra.mxu1 %v1252_v33  ;;  %5555 = vmatmul.mubr.f32.gmra.mxu0 %v1293_v48 }
 0x428   :  { %1372 = vmatprep.mubr.f32.mxu1 %v1277_v53 }
 0x42b   :  { %5075 = vmatmul.mubr.msk.f32.gmra.mxu1 %vm6649_vm5, %v1253_v25 }
 0x42c   :  { %1377 = vmatprep.mubr.f32.mxu1 %v1279_v0 }
 0x42f   :  { %1378 = vmatmul.mubr.f32.gmra.mxu1 %v1255_v42 }
 0x4e3   :  { %v5307_v32 = vpop.f32.mrf.mxu1  ;;  %v5553_v22 = vpop.f32.mrf.mxu0 }
 0x4e5   :  { %v5308_v39 = vpop.f32.mrf.mxu1  ;;  %v1449_v18 = vpop.f32.mrf.mxu0 }
 0x4e6   :  { %v5309_v2 = vadd.f32 %v5308_v39, %v5307_v32 }
 0x4e7   :  { %v5310_v52 = vpop.f32.mrf.mxu1  ;;  %v5556_v5 = vpop.f32.mrf.mxu0 }
 0x4e8   :  { %v1450_v50 = vadd.f32 %v5309_v2, %v1449_v18 }
 0x4e9   :  { %v5311_v23 = vpop.f32.mrf.mxu1  ;;  %v1459_v54 = vpop.f32.mrf.mxu0 }
 0x4ea   :  { %v5312_v9 = vadd.f32 %v5311_v23, %v5310_v52  ;;  %v1483_v41 = vmul.f32 %v1450_v50, %v1450_v50  ;;  %v1469_v51 = vsel %vm1468_vm8, %v1450_v50, 0.0 }
 0x4eb   :  { %v5313_v8 = vpop.f32.mrf.mxu1 }
 0x4ec   :  { %v1455_v24 = vadd.f32 %v5553_v22, %v5312_v9  ;;  %v1487_v16 = vsel %vm1468_vm8, %v1483_v41, 0.0 }
 0x4ed   :  { %v5314_v33 = vpop.f32.mrf.mxu1 }
 0x4ee   :  { %v1484_v21 = vmul.f32 %v1455_v24, %v1455_v24  ;;  %v5315_v25 = vadd.f32 %v5314_v33, %v5313_v8  ;;  %v1470_v1 = vsel %vm1468_vm8, %v1455_v24, 0.0 }
 0x4ef   :  { %v5316_v57 = vpop.f32.mrf.mxu1  ;;  %v1471_v6 = vadd.f32 %v1470_v1, %v1469_v51  ;;  %v1244_v51 = vld [vmem:[#allocation11 + $0x4] ss:$0 sm:$0xff] }
 0x4f0   :  { %v1460_v34 = vadd.f32 %v5315_v25, %v1459_v54  ;;  %v1488_v42 = vsel %vm1468_vm8, %v1484_v21, 0.0 }
 0x4f1   :  { %v5317_v20 = vpop.f32.mrf.mxu1  ;;  %v1489_v36 = vadd.f32 %v1488_v42, %v1487_v16 }
 0x4f2   :  { %v1472_v17 = vsel %vm1468_vm8, %v1460_v34, 0.0  ;;  %v1485_v55 = vmul.f32 %v1460_v34, %v1460_v34  ;;  %v5318_v35 = vadd.f32 %v5317_v20, %v5316_v57 }
 0x4f3   :  { %v1473_v7 = vadd.f32 %v1472_v17, %v1471_v6  ;;  %v1245_v17 = vld [vmem:[#allocation11 + $0x5] ss:$0 sm:$0xff] }
 0x4f4   :  { %v1490_v19 = vsel %vm1468_vm8, %v1485_v55, 0.0  ;;  %v1465_v49 = vadd.f32 %v5556_v5, %v5318_v35 }
 0x4f5   :  { %v1491_v48 = vadd.f32 %v1490_v19, %v1489_v36 }
 0x4f6   :  { %v1474_v38 = vsel %vm1468_vm8, %v1465_v49, 0.0  ;;  %v1486_v3 = vmul.f32 %v1465_v49, %v1465_v49 }
 0x4f7   :  { %v1475_v53 = vadd.f32 %v1474_v38, %v1473_v7 }
 0x4f8   :  { %v1492_v56 = vsel %vm1468_vm8, %v1486_v3, 0.0 }
 0x4f9   :  { %v1476_v0 = vrot.slane %v1475_v53, 4  ;;  %v1493_v32 = vadd.f32 %v1492_v56, %v1491_v48 }
 0x4fb   :  { %v1477_v22 = vadd.f32 %v1476_v0, %v1475_v53  ;;  %v1494_v39 = vrot.slane %v1493_v32, 4 }
 0x4fd   :  { %v1478_v18 = vrot.slane %v1477_v22, 2  ;;  %v1495_v52 = vadd.f32 %v1494_v39, %v1493_v32 }
 0x4ff   :  { %v1479_v2 = vadd.f32 %v1478_v18, %v1477_v22  ;;  %v1496_v23 = vrot.slane %v1495_v52, 2 }
 0x501   :  { %v1480_v9 = vrot.slane %v1479_v2, 1  ;;  %v1497_v8 = vadd.f32 %v1496_v23, %v1495_v52 }
 0x503   :  { %v1481_v5 = vadd.f32 %v1480_v9, %v1479_v2  ;;  %v1498_v33 = vrot.slane %v1497_v8, 1 }
 0x505   :  { %v1482_v21 = vmul.f32 0.03125, %v1481_v5  ;;  %v1499_v25 = vadd.f32 %v1498_v33, %v1497_v8 }
 0x507   :  { %v1500_v54 = vmul.f32 0.03125, %v1499_v25  ;;  %v1501_v57 = vmul.f32 %v1482_v21, %v1482_v21 }
 0x509   :  { %v1502_v41 = vsub.f32 %v1500_v54, %v1501_v57 }
 0x50b   :  { %v1503_v1 = vadd.f32 1e-05, %v1502_v41 }
 0x50d   :  { %5642 = vrsqrt.f32 %v1503_v1 }
 0x51a   :  { %v5643_v20 = vpop.eup %5642 }
 0x51b   :  { %v1505_v42 = vmul.f32 %v5643_v20, %v1244_v51 }
 0x51d   :  { %v1506_v55 = vmul.f32 %v1505_v42, %v1482_v21  ;;  %v1508_v6 = vmul.f32 %v1505_v42, %v1450_v50  ;;  %v1509_v16 = vmul.f32 %v1505_v42, %v1455_v24  ;;  %v1510_v19 = vmul.f32 %v1505_v42, %v1460_v34 }
 0x51e   :  { %v1511_v36 = vmul.f32 %v1505_v42, %v1465_v49 }
 0x51f   :  { %v1507_v35 = vsub.f32 %v1245_v17, %v1506_v55 }
 0x521   :  { %v1512_v7 = vadd.f32 %v1508_v6, %v1507_v35  ;;  %v1513_v38 = vadd.f32 %v1509_v16, %v1507_v35  ;;  %v1514_v3 = vadd.f32 %v1510_v19, %v1507_v35  ;;  %v1515_v48 = vadd.f32 %v1511_v36, %v1507_v35 }
 0x523   :  { %5644 = vtanh.f32 %v1512_v7 }
 0x524   :  { %5646 = vtanh.f32 %v1513_v38 }
 0x525   :  { %5648 = vtanh.f32 %v1514_v3 }
 0x526   :  { %5650 = vtanh.f32 %v1515_v48 }
 0x530   :  { %v5645_v53 = vpop.eup %5644 }
 0x531   :  { %v5647_v56 = vpop.eup %5646  ;;  %1538 = vxpose.xlu0.b32.start [1/2] (short) (narrow) %v5645_v53, 64 }
 0x532   :  { %v5649_v0 = vpop.eup %5648 }
 0x533   :  { %v5651_v32 = vpop.eup %5650  ;;  %2039 = vxpose.xlu1.b32.start [1/2] (short) (narrow) %v5649_v0, 64 }
 0x534   :  { %6163 = dma.done.wait [#allocation5], 1792 }
 0x535   :  { %6164 = vsyncadd [#allocation5], 4294965504  ;;  %v8516_v50 = vmov 0.0   ;;  %1539 = vxpose.xlu0.b32.end [2/2] (short) (narrow) %v5647_v56, 64  ;;  %v6896_v24 = vld [vmem:[#allocation2 + $0x40] sm:$0xff]  ;;  %v6898_v34 = vld [vmem:[#allocation2 + $0x38] sm:$0xff] }
 0x536   :  { %1659 = vmatprep.mubr.f32.mxu1 %v8516_v50  ;;  %1772 = vmatprep.mubr.f32.mxu0 %v8516_v50  ;;  %v1534_v49 = vld [vmem:[#allocation2 + $0x50] sm:$0xff]  ;;  %v6901_v22 = vld [vmem:[#allocation2 + $0x8] sm:$0xff]  ;;  %v6905_v18 = vld [vmem:[#allocation2] sm:$0xff]  ;;  %vm1570_vm9 = vcmask 130048   ;;  %v8377_v53 = vsub.s32 2, %v6625_v40  ;;  %v8376_v56 = vsub.s32 3, %v6625_v40 }
 0x537   :  { %2040 = vxpose.xlu1.b32.end [2/2] (short) (narrow) %v5651_v32, 64  ;;  %1623 = vmatprep.subr.mxu1 %v6896_v24  ;;  %v6903_v39 = vld [vmem:[#allocation2 + $0x48] sm:$0xff]  ;;  %v6909_v52 = vld [vmem:[#allocation2 + $0x18] sm:$0xff]  ;;  %v6911_v2 = vld [vmem:[#allocation2 + $0x10] sm:$0xff] }
 0x538   :  { %1736 = vmatprep.subr.mxu0 %v1534_v49  ;;  %1624 = vmatpush1.msra.mxu1 %v6898_v34  ;;  %v6917_v23 = vld [vmem:[#allocation2 + $0x68] sm:$0xff]  ;;  %v6934_v5 = vld [vmem:[#allocation2 + $0x30] sm:$0xff]  ;;  %v6936_v33 = vld [vmem:[#allocation2 + $0x60] sm:$0xff] }
 0x539   :  { %1737 = vmatpush1.msra.mxu0 %v6903_v39  ;;  %1625 = vmatprep.subr.mxu1 %v6901_v22  ;;  %v1535_v20 = vld [vmem:[#allocation2 + $0x58] sm:$0xff]  ;;  %v6976_v42 = vld [vmem:[#allocation2 + $0x28] sm:$0xff]  ;;  %v6981_v17 = vld [vmem:[#allocation2 + $0x20] sm:$0xff] }
 0x53a   :  { %1738 = vmatprep.subr.mxu0 %v6909_v52  ;;  %1626 = vmatpush1.msra.mxu1 %v6905_v18  ;;  %v2540_v38 = vld [vmem:[#allocation11 + $0x6] ss:$8 sm:$0xf] }
 0x53b   :  { %1739 = vmatpush1.msra.mxu0 %v6911_v2  ;;  %5589 = vmatprep.subr.mxu1 %v1534_v49  ;;  %v2541_v3 = vld [vmem:[#allocation11 + $0x6] ss:$8 sm:$0xf0] }
 0x53c   :  { %5557 = vmatprep.subr.mxu0 %v6917_v23  ;;  %v7097_v48 = vor.u32 %v2541_v3, %v2540_v38 }
 0x53e   :  { %v7103_v0 = vrot.slane %v7097_v48, %v6629_v4  ;;  %v7108_v32 = vrot.slane %v7097_v48, %v8377_v53 }
 0x5ad   :  { %v6920_v9 = vpop.trf.xlu0 }
 0x5ae   :  { %5076 = vmatmul.mubr.msk.f32.vlgmr.msra.gmra.mxu1 %vm1570_vm9, %v6920_v9  ;;  %5084 = vmatmul.mubr.msk.f32.vlgmr.msra.gmra.mxu0 %vm1570_vm9, %v6920_v9 }
 0x5af   :  { %5591 = vmatpush1.msra.mxu1 %v6903_v39  ;;  %1665 = vmatprep.mubr.f32.mxu1 %v8516_v50  ;;  %v6971_v51 = vpop.trf.xlu1 }
 0x5b0   :  { %1778 = vmatprep.mubr.f32.mxu0 %v8516_v50  ;;  %5590 = vmatprep.subr.mxu1 %v6909_v52 }
 0x5b1   :  { %v6930_v8 = vpop.trf.xlu0  ;;  %5592 = vmatpush1.msra.mxu1 %v6911_v2  ;;  %5558 = vmatpush3.msra.mxu0 %v6917_v23 }
 0x5b2   :  { %5077 = vmatmul.mubr.msk.f32.gmra.mxu1 %vm1570_vm9, %v6930_v8  ;;  %5085 = vmatmul.mubr.msk.f32.gmra.mxu0 %vm1570_vm9, %v6930_v8 }
 0x5b3   :  { %1671 = vmatprep.mubr.f32.mxu1 %v8516_v50  ;;  %1784 = vmatprep.mubr.f32.mxu0 %v8516_v50  ;;  %v6986_v55 = vpop.trf.xlu1 }
 0x5b4   :  { %5559 = vmatprep.subr.mxu0 %v6934_v5  ;;  %1849 = vmatprep.subr.mxu1 %v6936_v33 }
 0x5b5   :  { %v1556_v21 = vpop.trf.xlu0  ;;  %5560 = vmatpush3.msra.mxu0 %v6934_v5 }
 0x5b6   :  { %5078 = vmatmul.mubr.msk.f32.gmra.mxu1 %vm1570_vm9, %v1556_v21  ;;  %5086 = vmatmul.mubr.msk.f32.gmra.mxu0 %vm1570_vm9, %v1556_v21 }
 0x5b7   :  { %1677 = vmatprep.mubr.f32.mxu1 %v8516_v50  ;;  %1790 = vmatprep.mubr.f32.mxu0 %v8516_v50  ;;  %v7001_v35 = vpop.trf.xlu1 }
 0x5b8   :  { %2236 = vmatprep.subr.mxu0 %v1534_v49 }
 0x5b9   :  { %v1557_v25 = vpop.trf.xlu0 }
 0x5ba   :  { %5079 = vmatmul.mubr.msk.f32.gmra.mxu1 %vm1570_vm9, %v1557_v25  ;;  %5087 = vmatmul.mubr.msk.f32.gmra.mxu0 %vm1570_vm9, %v1557_v25 }
 0x5bb   :  { %1683 = vmatprep.mubr.f32.mxu1 %v8516_v50  ;;  %1796 = vmatprep.mubr.f32.mxu0 %v8516_v50  ;;  %v7013_v6 = vpop.trf.xlu1 }
 0x5bd   :  { %v1558_v54 = vpop.trf.xlu0 }
 0x5be   :  { %5080 = vmatmul.mubr.msk.f32.gmra.mxu1 %vm1570_vm9, %v1558_v54  ;;  %5088 = vmatmul.mubr.msk.f32.gmra.mxu0 %vm1570_vm9, %v1558_v54 }
 0x5bf   :  { %1689 = vmatprep.mubr.f32.mxu1 %v8516_v50  ;;  %1802 = vmatprep.mubr.f32.mxu0 %v8516_v50  ;;  %v2059_v16 = vpop.trf.xlu1 }
 0x5c1   :  { %v1559_v57 = vpop.trf.xlu0 }
 0x5c2   :  { %5081 = vmatmul.mubr.msk.f32.gmra.mxu1 %vm1570_vm9, %v1559_v57  ;;  %5089 = vmatmul.mubr.msk.f32.gmra.mxu0 %vm1570_vm9, %v1559_v57 }
 0x5c3   :  { %1695 = vmatprep.mubr.f32.mxu1 %v8516_v50  ;;  %1808 = vmatprep.mubr.f32.mxu0 %v8516_v50  ;;  %v2060_v19 = vpop.trf.xlu1 }
 0x5c5   :  { %v1560_v41 = vpop.trf.xlu0 }
 0x5c6   :  { %5082 = vmatmul.mubr.msk.f32.gmra.mxu1 %vm1570_vm9, %v1560_v41  ;;  %5090 = vmatmul.mubr.msk.f32.gmra.mxu0 %vm1570_vm9, %v1560_v41 }
 0x5c7   :  { %5561 = vmatprep.mubr.msk.f32.mxu0 %vm1570_vm9, %v6920_v9  ;;  %1701 = vmatprep.mubr.f32.mxu1 %v8516_v50  ;;  %v2061_v36 = vpop.trf.xlu1 }
 0x5c9   :  { %v1561_v1 = vpop.trf.xlu0 }
 0x5ca   :  { %5083 = vmatmul.mubr.msk.f32.gmra.mxu1 %vm1570_vm9, %v1561_v1  ;;  %5562 = vmatmul.mubr.msk.f32.vlgmr.msra.gmra.mxu0 %vm1570_vm9, %v6930_v8 }
 0x5cb   :  { %5564 = vmatprep.mubr.msk.f32.mxu0 %vm1570_vm9, %v1556_v21  ;;  %1814 = vmatprep.mubr.f32.mxu1 %v8516_v50  ;;  %v2062_v7 = vpop.trf.xlu1 }
 0x5cc   :  { %2237 = vmatpush1.msra.mxu0 %v6903_v39 }
 0x5cd   :  { %2238 = vmatprep.subr.mxu0 %v6909_v52 }
 0x5ce   :  { %5091 = vmatmul.mubr.msk.f32.vlgmr.msra.gmra.mxu1 %vm1570_vm9, %v1561_v1  ;;  %5565 = vmatmul.mubr.msk.f32.gmra.mxu0 %vm1570_vm9, %v1557_v25 }
 0x5cf   :  { %1850 = vmatpush1.msra.mxu1 %v1535_v20  ;;  %5567 = vmatprep.mubr.msk.f32.mxu0 %vm1570_vm9, %v1558_v54 }
 0x5d0   :  { %1851 = vmatprep.subr.mxu1 %v6976_v42  ;;  %1885 = vmatprep.mubr.f32.mxu1 %v8516_v50 }
 0x5d1   :  { %1852 = vmatpush1.msra.mxu1 %v6981_v17  ;;  %2239 = vmatpush1.msra.mxu0 %v6911_v2 }
 0x5d2   :  { %2123 = vmatprep.subr.mxu1 %v6896_v24  ;;  %5092 = vmatmul.mubr.msk.f32.vlgmr.msra.gmra.mxu1 %vm1570_vm9, %v6920_v9  ;;  %v7112_v24 = vrot.slane %v7097_v48, %v6632_v37 }
 0x5d3   :  { %5568 = vmatmul.mubr.msk.f32.gmra.mxu0 %vm1570_vm9, %v1559_v57  ;;  %2124 = vmatpush1.msra.mxu1 %v6898_v34  ;;  %v7117_v34 = vrot.slane %v7097_v48, %v8376_v56 }
 0x5d4   :  { %5570 = vmatprep.mubr.msk.f32.mxu0 %vm1570_vm9, %v1560_v41  ;;  %1891 = vmatprep.mubr.f32.mxu1 %v8516_v50 }
 0x5d5   :  { %2125 = vmatprep.subr.mxu1 %v6901_v22  ;;  %5573 = vmatprep.subr.mxu0 %v6917_v23 }
 0x5d6   :  { %5093 = vmatmul.mubr.msk.f32.gmra.mxu1 %vm1570_vm9, %v6930_v8 }
 0x5d7   :  { %5571 = vmatmul.mubr.msk.f32.gmra.mxu0 %vm1570_vm9, %v1561_v1  ;;  %1897 = vmatprep.mubr.f32.mxu1 %v8516_v50 }
 0x5d8   :  { %2272 = vmatprep.mubr.f32.mxu0 %v8516_v50  ;;  %2126 = vmatpush1.msra.mxu1 %v6905_v18 }
 0x5d9   :  { %2349 = vmatprep.subr.mxu1 %v6936_v33 }
 0x5da   :  { %5094 = vmatmul.mubr.msk.f32.gmra.mxu1 %vm1570_vm9, %v1556_v21 }
 0x5db   :  { %5116 = vmatmul.mubr.msk.f32.vlgmr.msra.gmra.mxu0 %vm1570_vm9, %v6971_v51  ;;  %1903 = vmatprep.mubr.f32.mxu1 %v8516_v50 }
 0x5dc   :  { %2278 = vmatprep.mubr.f32.mxu0 %v8516_v50  ;;  %5574 = vmatpush3.msra.mxu0 %v6917_v23 }
 0x5dd   :  { %5575 = vmatprep.subr.mxu0 %v6934_v5 }
 0x5de   :  { %5095 = vmatmul.mubr.msk.f32.gmra.mxu1 %vm1570_vm9, %v1557_v25  ;;  %5576 = vmatpush3.msra.mxu0 %v6934_v5 }
 0x5df   :  { %5117 = vmatmul.mubr.msk.f32.gmra.mxu0 %vm1570_vm9, %v6986_v55  ;;  %1909 = vmatprep.mubr.f32.mxu1 %v8516_v50 }
 0x5e0   :  { %2284 = vmatprep.mubr.f32.mxu0 %v8516_v50 }
 0x5e2   :  { %5096 = vmatmul.mubr.msk.f32.gmra.mxu1 %vm1570_vm9, %v1558_v54 }
 0x5e3   :  { %5118 = vmatmul.mubr.msk.f32.gmra.mxu0 %vm1570_vm9, %v7001_v35  ;;  %1915 = vmatprep.mubr.f32.mxu1 %v8516_v50 }
 0x5e4   :  { %2290 = vmatprep.mubr.f32.mxu0 %v8516_v50 }
 0x5e6   :  { %5097 = vmatmul.mubr.msk.f32.gmra.mxu1 %vm1570_vm9, %v1559_v57 }
 0x5e7   :  { %5119 = vmatmul.mubr.msk.f32.gmra.mxu0 %vm1570_vm9, %v7013_v6  ;;  %1921 = vmatprep.mubr.f32.mxu1 %v8516_v50 }
 0x5e8   :  { %2296 = vmatprep.mubr.f32.mxu0 %v8516_v50 }
 0x5ea   :  { %5098 = vmatmul.mubr.msk.f32.gmra.mxu1 %vm1570_vm9, %v1560_v41 }
 0x5eb   :  { %5120 = vmatmul.mubr.msk.f32.gmra.mxu0 %vm1570_vm9, %v2059_v16  ;;  %1927 = vmatprep.mubr.f32.mxu1 %v8516_v50 }
 0x5ec   :  { %2302 = vmatprep.mubr.f32.mxu0 %v8516_v50 }
 0x5ee   :  { %5099 = vmatmul.mubr.msk.f32.gmra.mxu1 %vm1570_vm9, %v1561_v1 }
 0x5ef   :  { %5121 = vmatmul.mubr.msk.f32.gmra.mxu0 %vm1570_vm9, %v2060_v19  ;;  %2159 = vmatprep.mubr.f32.mxu1 %v8516_v50 }
 0x5f0   :  { %2308 = vmatprep.mubr.f32.mxu0 %v8516_v50 }
 0x5f2   :  { %5108 = vmatmul.mubr.msk.f32.vlgmr.msra.gmra.mxu1 %vm1570_vm9, %v6971_v51 }
 0x5f3   :  { %5122 = vmatmul.mubr.msk.f32.gmra.mxu0 %vm1570_vm9, %v2061_v36  ;;  %2350 = vmatpush1.msra.mxu1 %v1535_v20 }
 0x5f4   :  { %2165 = vmatprep.mubr.f32.mxu1 %v8516_v50  ;;  %2314 = vmatprep.mubr.f32.mxu0 %v8516_v50 }
 0x5f5   :  { %2351 = vmatprep.subr.mxu1 %v6976_v42 }
 0x5f6   :  { %5109 = vmatmul.mubr.msk.f32.gmra.mxu1 %vm1570_vm9, %v6986_v55 }
 0x5f7   :  { %5123 = vmatmul.mubr.msk.f32.gmra.mxu0 %vm1570_vm9, %v2062_v7  ;;  %2171 = vmatprep.mubr.f32.mxu1 %v8516_v50 }
 0x5f8   :  { %5577 = vmatprep.mubr.msk.f32.mxu0 %vm1570_vm9, %v6971_v51  ;;  %2352 = vmatpush1.msra.mxu1 %v6981_v17 }
 0x5fa   :  { %5110 = vmatmul.mubr.msk.f32.gmra.mxu1 %vm1570_vm9, %v7001_v35 }
 0x5fb   :  { %5578 = vmatmul.mubr.msk.f32.vlgmr.msra.gmra.mxu0 %vm1570_vm9, %v6986_v55  ;;  %2177 = vmatprep.mubr.f32.mxu1 %v8516_v50 }
 0x5fc   :  { %5580 = vmatprep.mubr.msk.f32.mxu0 %vm1570_vm9, %v7001_v35 }
 0x5fe   :  { %5111 = vmatmul.mubr.msk.f32.gmra.mxu1 %vm1570_vm9, %v7013_v6 }
 0x5ff   :  { %5581 = vmatmul.mubr.msk.f32.gmra.mxu0 %vm1570_vm9, %v7013_v6  ;;  %2183 = vmatprep.mubr.f32.mxu1 %v8516_v50 }
 0x600   :  { %5583 = vmatprep.mubr.msk.f32.mxu0 %vm1570_vm9, %v2059_v16 }
 0x602   :  { %5112 = vmatmul.mubr.msk.f32.gmra.mxu1 %vm1570_vm9, %v2059_v16 }
 0x603   :  { %5584 = vmatmul.mubr.msk.f32.gmra.mxu0 %vm1570_vm9, %v2060_v19  ;;  %2189 = vmatprep.mubr.f32.mxu1 %v8516_v50 }
 0x604   :  { %5586 = vmatprep.mubr.msk.f32.mxu0 %vm1570_vm9, %v2061_v36 }
 0x606   :  { %5113 = vmatmul.mubr.msk.f32.gmra.mxu1 %vm1570_vm9, %v2060_v19 }
 0x607   :  { %2195 = vmatprep.mubr.f32.mxu1 %v8516_v50  ;;  %5587 = vmatmul.mubr.msk.f32.gmra.mxu0 %vm1570_vm9, %v2062_v7 }
 0x60a   :  { %5114 = vmatmul.mubr.msk.f32.gmra.mxu1 %vm1570_vm9, %v2061_v36 }
 0x60b   :  { %2201 = vmatprep.mubr.f32.mxu1 %v8516_v50 }
 0x60e   :  { %5115 = vmatmul.mubr.msk.f32.gmra.mxu1 %vm1570_vm9, %v2062_v7 }
 0x60f   :  { %2385 = vmatprep.mubr.f32.mxu1 %v8516_v50 }
 0x612   :  { %5124 = vmatmul.mubr.msk.f32.vlgmr.msra.gmra.mxu1 %vm1570_vm9, %v6971_v51 }
 0x613   :  { %2391 = vmatprep.mubr.f32.mxu1 %v8516_v50 }
 0x616   :  { %5125 = vmatmul.mubr.msk.f32.gmra.mxu1 %vm1570_vm9, %v6986_v55 }
 0x617   :  { %2397 = vmatprep.mubr.f32.mxu1 %v8516_v50 }
 0x61a   :  { %5126 = vmatmul.mubr.msk.f32.gmra.mxu1 %vm1570_vm9, %v7001_v35 }
 0x61b   :  { %2403 = vmatprep.mubr.f32.mxu1 %v8516_v50 }
 0x61e   :  { %5127 = vmatmul.mubr.msk.f32.gmra.mxu1 %vm1570_vm9, %v7013_v6 }
 0x61f   :  { %2409 = vmatprep.mubr.f32.mxu1 %v8516_v50 }
 0x622   :  { %5128 = vmatmul.mubr.msk.f32.gmra.mxu1 %vm1570_vm9, %v2059_v16 }
 0x623   :  { %2415 = vmatprep.mubr.f32.mxu1 %v8516_v50 }
 0x626   :  { %5129 = vmatmul.mubr.msk.f32.gmra.mxu1 %vm1570_vm9, %v2060_v19 }
 0x627   :  { %2421 = vmatprep.mubr.f32.mxu1 %v8516_v50 }
 0x62a   :  { %5130 = vmatmul.mubr.msk.f32.gmra.mxu1 %vm1570_vm9, %v2061_v36 }
 0x62b   :  { %2427 = vmatprep.mubr.f32.mxu1 %v8516_v50 }
 0x62e   :  { %5131 = vmatmul.mubr.msk.f32.gmra.mxu1 %vm1570_vm9, %v2062_v7 }
 0x66e   :  { %v1661_v49 = vpop.f32.mrf.mxu1  ;;  %v1774_v22 = vpop.f32.mrf.mxu0 }
 0x66f   :  { %v2579_v39 = vadd.f32 %v7103_v0, %v1661_v49  ;;  %v2581_v18 = vadd.f32 %v7108_v32, %v1774_v22 }
 0x670   :  { %v1663_v52 = vpop.f32.mrf.mxu1  ;;  %v1776_v2 = vpop.f32.mrf.mxu0 }
 0x671   :  { %5652 = vtanh.f32 %v2579_v39  ;;  %v2580_v23 = vadd.f32 %v7112_v24, %v1663_v52  ;;  %v2582_v9 = vadd.f32 %v7117_v34, %v1776_v2 }
 0x672   :  { %5654 = vtanh.f32 %v2581_v18  ;;  %v1667_v8 = vpop.f32.mrf.mxu1  ;;  %v1780_v5 = vpop.f32.mrf.mxu0 }
 0x673   :  { %5656 = vtanh.f32 %v2580_v23  ;;  %v2586_v33 = vadd.f32 %v7103_v0, %v1667_v8  ;;  %v2588_v21 = vadd.f32 %v7108_v32, %v1780_v5 }
 0x674   :  { %5658 = vtanh.f32 %v2582_v9  ;;  %v1669_v25 = vpop.f32.mrf.mxu1  ;;  %v1782_v54 = vpop.f32.mrf.mxu0 }
 0x675   :  { %5660 = vtanh.f32 %v2586_v33  ;;  %v2587_v57 = vadd.f32 %v7112_v24, %v1669_v25  ;;  %v2589_v41 = vadd.f32 %v7117_v34, %v1782_v54 }
 0x676   :  { %5662 = vtanh.f32 %v2588_v21  ;;  %v1673_v1 = vpop.f32.mrf.mxu1  ;;  %v1786_v51 = vpop.f32.mrf.mxu0 }
 0x677   :  { %5664 = vtanh.f32 %v2587_v57  ;;  %v2593_v20 = vadd.f32 %v7103_v0, %v1673_v1  ;;  %v2595_v42 = vadd.f32 %v7108_v32, %v1786_v51 }
 0x678   :  { %5666 = vtanh.f32 %v2589_v41  ;;  %v1675_v17 = vpop.f32.mrf.mxu1  ;;  %v1788_v55 = vpop.f32.mrf.mxu0 }
 0x679   :  { %5668 = vtanh.f32 %v2593_v20  ;;  %v2594_v35 = vadd.f32 %v7112_v24, %v1675_v17  ;;  %v2596_v6 = vadd.f32 %v7117_v34, %v1788_v55  ;;  %v2570_v17 = vsub.s32 6, %v6625_v40 }
 0x67a   :  { %5670 = vtanh.f32 %v2595_v42  ;;  %v1679_v16 = vpop.f32.mrf.mxu1  ;;  %v1792_v19 = vpop.f32.mrf.mxu0 }
 0x67b   :  { %5672 = vtanh.f32 %v2594_v35  ;;  %v2600_v36 = vadd.f32 %v7103_v0, %v1679_v16  ;;  %v2602_v7 = vadd.f32 %v7108_v32, %v1792_v19 }
 0x67c   :  { %5674 = vtanh.f32 %v2596_v6  ;;  %v1681_v38 = vpop.f32.mrf.mxu1  ;;  %v1794_v3 = vpop.f32.mrf.mxu0 }
 0x67d   :  { %5676 = vtanh.f32 %v2600_v36  ;;  %v2601_v49 = vadd.f32 %v7112_v24, %v1681_v38  ;;  %v2603_v22 = vadd.f32 %v7117_v34, %v1794_v3 }
 0x67e   :  { %v7135_v39 = vpop.eup %5652  ;;  %5678 = vtanh.f32 %v2602_v7  ;;  %v1685_v18 = vpop.f32.mrf.mxu1 }
 0x67f   :  { %v1798_v52 = vpop.f32.mrf.mxu0  ;;  %v7137_v2 = vpop.eup %5654  ;;  %5680 = vtanh.f32 %v2601_v49  ;;  %v2607_v23 = vadd.f32 %v7103_v0, %v1685_v18 }
 0x680   :  { %v2609_v9 = vadd.f32 %v7108_v32, %v1798_v52  ;;  %v7141_v8 = vpop.eup %5656  ;;  %5682 = vtanh.f32 %v2603_v22  ;;  %v1687_v5 = vpop.f32.mrf.mxu1  ;;  %v7167_v52 = vrot.slane %v7097_v48, %v2570_v17 }
 0x681   :  { %8517 = vst [vmem:[#allocation93_spill] sm:$0xff] %v7141_v8  ;;  %v1800_v33 = vpop.f32.mrf.mxu0  ;;  %v7143_v21 = vpop.eup %5658  ;;  %5684 = vtanh.f32 %v2607_v23  ;;  %v2608_v25 = vadd.f32 %v7112_v24, %v1687_v5 }
 0x682   :  { %8518 = vst [vmem:[#allocation94_spill] sm:$0xff] %v7143_v21  ;;  %v2610_v54 = vadd.f32 %v7117_v34, %v1800_v33  ;;  %v7147_v57 = vpop.eup %5660  ;;  %5686 = vtanh.f32 %v2609_v9  ;;  %v1691_v41 = vpop.f32.mrf.mxu1 }
 0x683   :  { %v1804_v1 = vpop.f32.mrf.mxu0  ;;  %v7149_v51 = vpop.eup %5662  ;;  %5688 = vtanh.f32 %v2608_v25  ;;  %v2614_v20 = vadd.f32 %v7103_v0, %v1691_v41 }
 0x684   :  { %v2616_v42 = vadd.f32 %v7108_v32, %v1804_v1  ;;  %v7154_v55 = vpop.eup %5664  ;;  %5690 = vtanh.f32 %v2610_v54  ;;  %v1693_v35 = vpop.f32.mrf.mxu1 }
 0x685   :  { %v1806_v6 = vpop.f32.mrf.mxu0  ;;  %v7156_v16 = vpop.eup %5666  ;;  %5692 = vtanh.f32 %v2614_v20  ;;  %v2615_v19 = vadd.f32 %v7112_v24, %v1693_v35 }
 0x686   :  { %v2617_v36 = vadd.f32 %v7117_v34, %v1806_v6  ;;  %v7160_v7 = vpop.eup %5668  ;;  %5694 = vtanh.f32 %v2616_v42  ;;  %v1697_v38 = vpop.f32.mrf.mxu1  ;;  %v2562_v6 = vsub.s32 4, %v6625_v40 }
 0x687   :  { %v1810_v3 = vpop.f32.mrf.mxu0  ;;  %v7162_v49 = vpop.eup %5670  ;;  %5696 = vtanh.f32 %v2615_v19  ;;  %v2621_v22 = vadd.f32 %v7103_v0, %v1697_v38 }
 0x688   :  { %v2623_v18 = vadd.f32 %v7108_v32, %v1810_v3  ;;  %v7169_v23 = vpop.eup %5672  ;;  %5698 = vtanh.f32 %v2617_v36  ;;  %v1699_v9 = vpop.f32.mrf.mxu1 }
 0x689   :  { %v1812_v5 = vpop.f32.mrf.mxu0  ;;  %v7171_v33 = vpop.eup %5674  ;;  %5700 = vtanh.f32 %v2621_v22  ;;  %v2622_v25 = vadd.f32 %v7112_v24, %v1699_v9  ;;  %v2566_v9 = vsub.s32 5, %v6625_v40 }
 0x68a   :  { %v2624_v54 = vadd.f32 %v7117_v34, %v1812_v5  ;;  %v7175_v41 = vpop.eup %5676  ;;  %5702 = vtanh.f32 %v2623_v18  ;;  %v1703_v1 = vpop.f32.mrf.mxu1 }
 0x68b   :  { %v5563_v20 = vpop.f32.mrf.mxu0  ;;  %v7177_v42 = vpop.eup %5678  ;;  %5704 = vtanh.f32 %v2622_v25  ;;  %v2628_v17 = vadd.f32 %v7103_v0, %v1703_v1 }
 0x68c   :  { %v2592_v35 = vadd.f32 %v5563_v20, %v7167_v52  ;;  %v7182_v19 = vpop.eup %5680  ;;  %5706 = vtanh.f32 %v2624_v54  ;;  %v1705_v36 = vpop.f32.mrf.mxu1 }
 0x68d   :  { %v2000_v38 = vpop.f32.mrf.mxu0  ;;  %v7184_v3 = vpop.eup %5682  ;;  %5708 = vtanh.f32 %v2628_v17  ;;  %v2629_v22 = vadd.f32 %v7112_v24, %v1705_v36  ;;  %v7196_v17 = vrot.slane %v7097_v48, %v2562_v6 }
 0x68e   :  { %v2585_v18 = vadd.f32 %v7167_v52, %v2000_v38  ;;  %v7189_v5 = vpop.eup %5684  ;;  %5710 = vtanh.f32 %v2592_v35  ;;  %v1816_v25 = vpop.f32.mrf.mxu1 }
 0x68f   :  { %v5566_v1 = vpop.f32.mrf.mxu0  ;;  %v7191_v20 = vpop.eup %5686  ;;  %5712 = vtanh.f32 %v2629_v22  ;;  %v2630_v54 = vadd.f32 %v7108_v32, %v1816_v25  ;;  %v7205_v22 = vrot.slane %v7097_v48, %v2566_v9 }
 0x690   :  { %v2606_v56 = vadd.f32 %v5566_v1, %v7167_v52  ;;  %v7198_v36 = vpop.eup %5688  ;;  %5714 = vtanh.f32 %v2585_v18  ;;  %v1818_v38 = vpop.f32.mrf.mxu1 }
 0x691   :  { %v2010_v53 = vpop.f32.mrf.mxu0  ;;  %v7200_v10 = vpop.eup %5690  ;;  %5716 = vtanh.f32 %v2630_v54  ;;  %v2631_v35 = vadd.f32 %v7117_v34, %v1818_v38 }
 0x692   :  { %v2599_v58 = vadd.f32 %v7167_v52, %v2010_v53  ;;  %v7207_v25 = vpop.eup %5692  ;;  %5718 = vtanh.f32 %v2606_v56  ;;  %v1887_v6 = vpop.f32.mrf.mxu1 }
 0x693   :  { %v7209_v1 = vpop.eup %5694  ;;  %5720 = vtanh.f32 %v2631_v35  ;;  %v2583_v18 = vadd.f32 %v7196_v17, %v1887_v6  ;;  %v5569_v26 = vpop.f32.mrf.mxu0 }
 0x694   :  { %v7212_v43 = vpop.eup %5696  ;;  %5722 = vtanh.f32 %v2599_v58  ;;  %v2620_v54 = vadd.f32 %v5569_v26, %v7167_v52  ;;  %v1889_v38 = vpop.f32.mrf.mxu1 }
 0x695   :  { %v7215_v53 = vpop.eup %5698  ;;  %5724 = vtanh.f32 %v2583_v18  ;;  %v2584_v48 = vadd.f32 %v7205_v22, %v1889_v38  ;;  %v2020_v9 = vpop.f32.mrf.mxu0 }
 0x696   :  { %v7218_v56 = vpop.eup %5700  ;;  %5726 = vtanh.f32 %v2620_v54  ;;  %v2613_v35 = vadd.f32 %v7167_v52, %v2020_v9  ;;  %v1893_v11 = vpop.f32.mrf.mxu1 }
 0x697   :  { %v7221_v6 = vpop.eup %5702  ;;  %5728 = vtanh.f32 %v2584_v48  ;;  %v2590_v58 = vadd.f32 %v7196_v17, %v1893_v11  ;;  %v5572_v59 = vpop.f32.mrf.mxu0 }
 0x698   :  { %v7224_v26 = vpop.eup %5704  ;;  %5730 = vtanh.f32 %v2613_v35  ;;  %v2634_v18 = vadd.f32 %v5572_v59, %v7167_v52  ;;  %v1895_v27 = vpop.f32.mrf.mxu1 }
 0x699   :  { %v7227_v38 = vpop.eup %5706  ;;  %5732 = vtanh.f32 %v2590_v58  ;;  %v2591_v54 = vadd.f32 %v7205_v22, %v1895_v27  ;;  %v2030_v44 = vpop.f32.mrf.mxu0 }
 0x69a   :  { %v7230_v9 = vpop.eup %5708  ;;  %5734 = vtanh.f32 %v2634_v18  ;;  %v2627_v48 = vadd.f32 %v7167_v52, %v2030_v44  ;;  %v1899_v12 = vpop.f32.mrf.mxu1 }
 0x69b   :  { %v7233_v11 = vpop.eup %5710  ;;  %5736 = vtanh.f32 %v2591_v54  ;;  %v2597_v35 = vadd.f32 %v7196_v17, %v1899_v12  ;;  %v2274_v60 = vpop.f32.mrf.mxu0 }
 0x69c   :  { %8519 = vst [vmem:[#allocation95_spill] sm:$0xff] %v7233_v11  ;;  %v7236_v59 = vpop.eup %5712  ;;  %5738 = vtanh.f32 %v2627_v48  ;;  %v2637_v58 = vadd.f32 %v7108_v32, %v2274_v60  ;;  %v1901_v28 = vpop.f32.mrf.mxu1 }
 0x69d   :  { %v7239_v27 = vpop.eup %5714  ;;  %5740 = vtanh.f32 %v2597_v35  ;;  %v2598_v18 = vadd.f32 %v7205_v22, %v1901_v28  ;;  %v2276_v45 = vpop.f32.mrf.mxu0 }
 0x69e   :  { %8520 = vst [vmem:[#allocation96_spill] sm:$0xff] %v7239_v27  ;;  %v7242_v44 = vpop.eup %5716  ;;  %5742 = vtanh.f32 %v2637_v58  ;;  %v2638_v54 = vadd.f32 %v7117_v34, %v2276_v45  ;;  %v1905_v13 = vpop.f32.mrf.mxu1 }
 0x69f   :  { %v7245_v12 = vpop.eup %5718  ;;  %5744 = vtanh.f32 %v2598_v18  ;;  %v2604_v48 = vadd.f32 %v7196_v17, %v1905_v13  ;;  %v2280_v61 = vpop.f32.mrf.mxu0 }
 0x6a0   :  { %8521 = vst [vmem:[#allocation97_spill] sm:$0xff] %v7245_v12  ;;  %v7248_v60 = vpop.eup %5720  ;;  %5746 = vtanh.f32 %v2638_v54  ;;  %v2644_v35 = vadd.f32 %v7108_v32, %v2280_v61  ;;  %v1907_v29 = vpop.f32.mrf.mxu1 }
 0x6a1   :  { %v7251_v28 = vpop.eup %5722  ;;  %5748 = vtanh.f32 %v2604_v48  ;;  %v2605_v58 = vadd.f32 %v7205_v22, %v1907_v29  ;;  %v2282_v46 = vpop.f32.mrf.mxu0 }
 0x6a2   :  { %8522 = vst [vmem:[#allocation98_spill] sm:$0xff] %v7251_v28  ;;  %v7254_v45 = vpop.eup %5724  ;;  %5750 = vtanh.f32 %v2644_v35  ;;  %v2645_v18 = vadd.f32 %v7117_v34, %v2282_v46  ;;  %v1911_v14 = vpop.f32.mrf.mxu1 }
 0x6a3   :  { %8523 = vst [vmem:[#allocation99_spill] sm:$0xff] %v7254_v45  ;;  %v7257_v13 = vpop.eup %5726  ;;  %5752 = vtanh.f32 %v2605_v58  ;;  %v2611_v54 = vadd.f32 %v7196_v17, %v1911_v14  ;;  %v2286_v62 = vpop.f32.mrf.mxu0 }
 0x6a4   :  { %8524 = vst [vmem:[#allocation100_spill] sm:$0xff] %v7257_v13  ;;  %v7260_v61 = vpop.eup %5728  ;;  %5754 = vtanh.f32 %v2645_v18  ;;  %v2651_v48 = vadd.f32 %v7108_v32, %v2286_v62  ;;  %v1913_v30 = vpop.f32.mrf.mxu1 }
 0x6a5   :  { %8525 = vst [vmem:[#allocation101_spill] sm:$0xff] %v7260_v61  ;;  %v7263_v29 = vpop.eup %5730  ;;  %5756 = vtanh.f32 %v2611_v54  ;;  %v2612_v35 = vadd.f32 %v7205_v22, %v1913_v30  ;;  %v2288_v47 = vpop.f32.mrf.mxu0 }
 0x6a6   :  { %8526 = vst [vmem:[#allocation102_spill] sm:$0xff] %v7263_v29  ;;  %v7266_v46 = vpop.eup %5732  ;;  %5758 = vtanh.f32 %v2651_v48  ;;  %v2652_v58 = vadd.f32 %v7117_v34, %v2288_v47  ;;  %v1917_v15 = vpop.f32.mrf.mxu1 }
 0x6a7   :  { %8527 = vst [vmem:[#allocation103_spill] sm:$0xff] %v7266_v46  ;;  %v7269_v14 = vpop.eup %5734  ;;  %5760 = vtanh.f32 %v2612_v35  ;;  %v2618_v18 = vadd.f32 %v7196_v17, %v1917_v15  ;;  %v2292_v63 = vpop.f32.mrf.mxu0 }
 0x6a8   :  { %8528 = vst [vmem:[#allocation104_spill] sm:$0xff] %v7269_v14  ;;  %v7272_v62 = vpop.eup %5736  ;;  %5762 = vtanh.f32 %v2652_v58  ;;  %v2658_v54 = vadd.f32 %v7108_v32, %v2292_v63  ;;  %v1919_v31 = vpop.f32.mrf.mxu1 }
 0x6a9   :  { %8529 = vst [vmem:[#allocation105_spill] sm:$0xff] %v7272_v62  ;;  %v7275_v30 = vpop.eup %5738  ;;  %5764 = vtanh.f32 %v2618_v18  ;;  %v2619_v48 = vadd.f32 %v7205_v22, %v1919_v31  ;;  %v2294_v40 = vpop.f32.mrf.mxu0 }
 0x6aa   :  { %8530 = vst [vmem:[#allocation106_spill] sm:$0xff] %v7275_v30  ;;  %v7278_v47 = vpop.eup %5740  ;;  %5766 = vtanh.f32 %v2658_v54  ;;  %v2659_v35 = vadd.f32 %v7117_v34, %v2294_v40  ;;  %v1923_v37 = vpop.f32.mrf.mxu1 }
 0x6ab   :  { %8531 = vst [vmem:[#allocation107_spill] sm:$0xff] %v7278_v47  ;;  %v7281_v15 = vpop.eup %5742  ;;  %5768 = vtanh.f32 %v2619_v48  ;;  %v2625_v58 = vadd.f32 %v7196_v17, %v1923_v37  ;;  %v2298_v4 = vpop.f32.mrf.mxu0 }
 0x6ac   :  { %v7284_v63 = vpop.eup %5744  ;;  %5770 = vtanh.f32 %v2659_v35  ;;  %v2665_v18 = vadd.f32 %v7108_v32, %v2298_v4  ;;  %v1925_v14 = vpop.f32.mrf.mxu1 }
 0x6ad   :  { %8532 = vst [vmem:[#allocation108_spill] sm:$0xff] %v7284_v63  ;;  %v7287_v31 = vpop.eup %5746  ;;  %5772 = vtanh.f32 %v2625_v58  ;;  %v2626_v54 = vadd.f32 %v7205_v22, %v1925_v14  ;;  %v2300_v30 = vpop.f32.mrf.mxu0 }
 0x6ae   :  { %v7290_v40 = vpop.eup %5748  ;;  %5774 = vtanh.f32 %v2665_v18  ;;  %v2666_v48 = vadd.f32 %v7117_v34, %v2300_v30  ;;  %v1929_v13 = vpop.f32.mrf.mxu1 }
 0x6af   :  { %8533 = vst [vmem:[#allocation109_spill] sm:$0xff] %v7290_v40  ;;  %v7293_v37 = vpop.eup %5750  ;;  %5776 = vtanh.f32 %v2626_v54  ;;  %v2632_v35 = vadd.f32 %v7196_v17, %v1929_v13  ;;  %v2304_v29 = vpop.f32.mrf.mxu0 }
 0x6b0   :  { %v7296_v4 = vpop.eup %5752  ;;  %5778 = vtanh.f32 %v2666_v48  ;;  %v2672_v58 = vadd.f32 %v7108_v32, %v2304_v29  ;;  %v1931_v12 = vpop.f32.mrf.mxu1 }
 0x6b1   :  { %8534 = vst [vmem:[#allocation110_spill] sm:$0xff] %v7296_v4  ;;  %v7299_v14 = vpop.eup %5754  ;;  %5780 = vtanh.f32 %v2632_v35  ;;  %v2633_v18 = vadd.f32 %v7205_v22, %v1931_v12  ;;  %v2306_v40 = vpop.f32.mrf.mxu0 }
 0x6b2   :  { %v7302_v30 = vpop.eup %5756  ;;  %5782 = vtanh.f32 %v2672_v58  ;;  %v2673_v54 = vadd.f32 %v7117_v34, %v2306_v40  ;;  %v2161_v28 = vpop.f32.mrf.mxu1 }
 0x6b3   :  { %8535 = vst [vmem:[#allocation111_spill] sm:$0xff] %v7302_v30  ;;  %v7305_v13 = vpop.eup %5758  ;;  %5784 = vtanh.f32 %v2633_v18  ;;  %v2635_v48 = vadd.f32 %v7103_v0, %v2161_v28  ;;  %v2310_v4 = vpop.f32.mrf.mxu0 }
 0x6b4   :  { %v7308_v29 = vpop.eup %5760  ;;  %5786 = vtanh.f32 %v2673_v54  ;;  %v2679_v35 = vadd.f32 %v7108_v32, %v2310_v4  ;;  %v2163_v47 = vpop.f32.mrf.mxu1 }
 0x6b5   :  { %8536 = vst [vmem:[#allocation112_spill] sm:$0xff] %v7308_v29  ;;  %v7311_v12 = vpop.eup %5762  ;;  %5788 = vtanh.f32 %v2635_v48  ;;  %v2636_v58 = vadd.f32 %v7112_v24, %v2163_v47  ;;  %v2312_v30 = vpop.f32.mrf.mxu0 }
 0x6b6   :  { %v7314_v40 = vpop.eup %5764  ;;  %5790 = vtanh.f32 %v2679_v35  ;;  %v2680_v18 = vadd.f32 %v7117_v34, %v2312_v30  ;;  %v2167_v63 = vpop.f32.mrf.mxu1 }
 0x6b7   :  { %8537 = vst [vmem:[#allocation113_spill] sm:$0xff] %v7314_v40  ;;  %v7317_v28 = vpop.eup %5766  ;;  %5792 = vtanh.f32 %v2636_v58  ;;  %v2642_v54 = vadd.f32 %v7103_v0, %v2167_v63  ;;  %v2316_v29 = vpop.f32.mrf.mxu0 }
 0x6b8   :  { %v7320_v4 = vpop.eup %5768  ;;  %5794 = vtanh.f32 %v2680_v18  ;;  %v2686_v48 = vadd.f32 %v7108_v32, %v2316_v29  ;;  %v2169_v11 = vpop.f32.mrf.mxu1 }
 0x6b9   :  { %8538 = vst [vmem:[#allocation114_spill] sm:$0xff] %v7320_v4  ;;  %v7323_v47 = vpop.eup %5770  ;;  %5796 = vtanh.f32 %v2642_v54  ;;  %v2643_v35 = vadd.f32 %v7112_v24, %v2169_v11  ;;  %v2318_v40 = vpop.f32.mrf.mxu0 }
 0x6ba   :  { %v7326_v30 = vpop.eup %5772  ;;  %5798 = vtanh.f32 %v2686_v48  ;;  %v2687_v58 = vadd.f32 %v7117_v34, %v2318_v40  ;;  %v2173_v46 = vpop.f32.mrf.mxu1 }
 0x6bb   :  { %8539 = vst [vmem:[#allocation115_spill] sm:$0xff] %v7326_v30  ;;  %v7329_v63 = vpop.eup %5774  ;;  %5800 = vtanh.f32 %v2643_v35  ;;  %v2649_v18 = vadd.f32 %v7103_v0, %v2173_v46  ;;  %v5579_v4 = vpop.f32.mrf.mxu0 }
 0x6bc   :  { %8540 = vst [vmem:[#allocation116_spill] sm:$0xff] %v7329_v63  ;;  %v7332_v32 = vpop.eup %5776  ;;  %5802 = vtanh.f32 %v2687_v58  ;;  %v2648_v29 = vadd.f32 %v5579_v4, %v7167_v52  ;;  %v2175_v54 = vpop.f32.mrf.mxu1 }
 0x6bd   :  { %8541 = vst [vmem:[#allocation117_spill] sm:$0xff] %v7332_v32  ;;  %v7335_v11 = vpop.eup %5778  ;;  %5804 = vtanh.f32 %v2649_v18  ;;  %v2650_v48 = vadd.f32 %v7112_v24, %v2175_v54  ;;  %v2500_v30 = vpop.f32.mrf.mxu0 }
 0x6be   :  { %8542 = vst [vmem:[#allocation118_spill] sm:$0xff] %v7335_v11  ;;  %v7338_v34 = vpop.eup %5780  ;;  %5806 = vtanh.f32 %v2648_v29  ;;  %v2641_v40 = vadd.f32 %v7167_v52, %v2500_v30  ;;  %v2179_v35 = vpop.f32.mrf.mxu1 }
 0x6bf   :  { %8543 = vst [vmem:[#allocation119_spill] sm:$0xff] %v7338_v34  ;;  %v7341_v46 = vpop.eup %5782  ;;  %5808 = vtanh.f32 %v2650_v48  ;;  %v2656_v58 = vadd.f32 %v7103_v0, %v2179_v35  ;;  %v5582_v32 = vpop.f32.mrf.mxu0 }
 0x6c0   :  { %8544 = vst [vmem:[#allocation120_spill] sm:$0xff] %v7341_v46  ;;  %v7344_v4 = vpop.eup %5784  ;;  %5810 = vtanh.f32 %v2641_v40  ;;  %v2662_v18 = vadd.f32 %v5582_v32, %v7167_v52  ;;  %v2181_v62 = vpop.f32.mrf.mxu1 }
 0x6c1   :  { %8545 = vst [vmem:[#allocation121_spill] sm:$0xff] %v7344_v4  ;;  %v7347_v54 = vpop.eup %5786  ;;  %5812 = vtanh.f32 %v2656_v58  ;;  %v2657_v29 = vadd.f32 %v7112_v24, %v2181_v62  ;;  %v2510_v34 = vpop.f32.mrf.mxu0 }
 0x6c2   :  { %8546 = vst [vmem:[#allocation122_spill] sm:$0xff] %v7347_v54  ;;  %v7350_v30 = vpop.eup %5788  ;;  %5814 = vtanh.f32 %v2662_v18  ;;  %v2655_v48 = vadd.f32 %v7167_v52, %v2510_v34  ;;  %v2185_v27 = vpop.f32.mrf.mxu1 }
 0x6c3   :  { %v7353_v35 = vpop.eup %5790  ;;  %5816 = vtanh.f32 %v2657_v29  ;;  %v2663_v40 = vadd.f32 %v7103_v0, %v2185_v27  ;;  %v5585_v4 = vpop.f32.mrf.mxu0 }
 0x6c4   :  { %8547 = vst [vmem:[#allocation123_spill] sm:$0xff] %v7353_v35  ;;  %v7356_v32 = vpop.eup %5792  ;;  %5818 = vtanh.f32 %v2655_v48  ;;  %v2187_v50 = vpop.f32.mrf.mxu1  ;;  %v2676_v58 = vadd.f32 %v5585_v4, %v7167_v52 }
 0x6c5   :  { %v7359_v62 = vpop.eup %5794  ;;  %5820 = vtanh.f32 %v2663_v40  ;;  %v2664_v18 = vadd.f32 %v7112_v24, %v2187_v50  ;;  %v2520_v45 = vpop.f32.mrf.mxu0 }
 0x6c6   :  { %8548 = vst [vmem:[#allocation124_spill] sm:$0xff] %v7359_v62  ;;  %v7362_v34 = vpop.eup %5796  ;;  %5822 = vtanh.f32 %v2676_v58  ;;  %v2191_v61 = vpop.f32.mrf.mxu1  ;;  %v2669_v29 = vadd.f32 %v7167_v52, %v2520_v45 }
 0x6c7   :  { %v7365_v27 = vpop.eup %5798  ;;  %5824 = vtanh.f32 %v2664_v18  ;;  %v2670_v48 = vadd.f32 %v7103_v0, %v2191_v61  ;;  %v5588_v35 = vpop.f32.mrf.mxu0 }
 0x6c8   :  { %8549 = vst [vmem:[#allocation125_spill] sm:$0xff] %v7365_v27  ;;  %v7368_v46 = vpop.eup %5800  ;;  %5826 = vtanh.f32 %v2669_v29  ;;  %v2193_v4 = vpop.f32.mrf.mxu1  ;;  %v2690_v40 = vadd.f32 %v5588_v35, %v7167_v52 }
 0x6c9   :  { %v7371_v50 = vpop.eup %5802  ;;  %5828 = vtanh.f32 %v2670_v48  ;;  %v2671_v58 = vadd.f32 %v7112_v24, %v2193_v4  ;;  %v2530_v62 = vpop.f32.mrf.mxu0 }
 0x6ca   :  { %8550 = vst [vmem:[#allocation126_spill] sm:$0xff] %v7371_v50  ;;  %v7374_v54 = vpop.eup %5804  ;;  %v2197_v45 = vpop.f32.mrf.mxu1  ;;  %5830 = vtanh.f32 %v2690_v40  ;;  %v2683_v18 = vadd.f32 %v7167_v52, %v2530_v62 }
 0x6cb   :  { %v7377_v61 = vpop.eup %5806  ;;  %5832 = vtanh.f32 %v2671_v58  ;;  %v2677_v29 = vadd.f32 %v7103_v0, %v2197_v45 }
 0x6cc   :  { %8551 = vst [vmem:[#allocation127_spill] sm:$0xff] %v7377_v61  ;;  %v7380_v27 = vpop.eup %5808  ;;  %v2199_v35 = vpop.f32.mrf.mxu1  ;;  %5834 = vtanh.f32 %v2683_v18 }
 0x6cd   :  { %v7382_v50 = vpop.eup %5810  ;;  %5836 = vtanh.f32 %v2677_v29  ;;  %v2678_v48 = vadd.f32 %v7112_v24, %v2199_v35 }
 0x6ce   :  { %8552 = vst [vmem:[#allocation128_spill] sm:$0xff] %v7382_v50  ;;  %v7385_v4 = vpop.eup %5812  ;;  %v2203_v63 = vpop.f32.mrf.mxu1 }
 0x6cf   :  { %v7387_v40 = vpop.eup %5814  ;;  %5838 = vtanh.f32 %v2678_v48  ;;  %v2684_v52 = vadd.f32 %v7103_v0, %v2203_v63 }
 0x6d0   :  { %8553 = vst [vmem:[#allocation129_spill] sm:$0xff] %v7387_v40  ;;  %v7390_v62 = vpop.eup %5816  ;;  %v2205_v58 = vpop.f32.mrf.mxu1 }
 0x6d1   :  { %v7392_v45 = vpop.eup %5818  ;;  %5840 = vtanh.f32 %v2684_v52  ;;  %v2685_v18 = vadd.f32 %v7112_v24, %v2205_v58 }
 0x6d2   :  { %8554 = vst [vmem:[#allocation130_spill] sm:$0xff] %v7392_v45  ;;  %v7395_v61 = vpop.eup %5820  ;;  %v2387_v29 = vpop.f32.mrf.mxu1 }
 0x6d3   :  { %v7397_v35 = vpop.eup %5822  ;;  %5842 = vtanh.f32 %v2685_v18  ;;  %v2639_v50 = vadd.f32 %v7196_v17, %v2387_v29 }
 0x6d4   :  { %8555 = vst [vmem:[#allocation131_spill] sm:$0xff] %v7397_v35  ;;  %v7400_v40 = vpop.eup %5824  ;;  %v2389_v48 = vpop.f32.mrf.mxu1 }
 0x6d5   :  { %v7402_v0 = vpop.eup %5826  ;;  %5844 = vtanh.f32 %v2639_v50  ;;  %v2640_v63 = vadd.f32 %v7205_v22, %v2389_v48 }
 0x6d6   :  { %8556 = vst [vmem:[#allocation132_spill] sm:$0xff] %v7402_v0  ;;  %v7405_v45 = vpop.eup %5828  ;;  %v2393_v52 = vpop.f32.mrf.mxu1 }
 0x6d7   :  { %8557 = vst [vmem:[#allocation133_spill] sm:$0xff] %v7405_v45  ;;  %v7407_v24 = vpop.eup %5830  ;;  %5846 = vtanh.f32 %v2640_v63  ;;  %v2646_v58 = vadd.f32 %v7196_v17, %v2393_v52 }
 0x6d8   :  { %8558 = vst [vmem:[#allocation134_spill] sm:$0xff] %v7407_v24  ;;  %v7410_v35 = vpop.eup %5832  ;;  %v2395_v18 = vpop.f32.mrf.mxu1 }
 0x6d9   :  { %8559 = vst [vmem:[#allocation135_spill] sm:$0xff] %v7410_v35  ;;  %v7412_v29 = vpop.eup %5834  ;;  %5848 = vtanh.f32 %v2646_v58  ;;  %v2647_v11 = vadd.f32 %v7205_v22, %v2395_v18 }
 0x6da   :  { %8560 = vst [vmem:[#allocation136_spill] sm:$0xff] %v7412_v29  ;;  %v7415_v0 = vpop.eup %5836  ;;  %v2399_v50 = vpop.f32.mrf.mxu1 }
 0x6db   :  { %8561 = vst [vmem:[#allocation137_spill] sm:$0xff] %v7415_v0  ;;  %5850 = vtanh.f32 %v2647_v11  ;;  %v2653_v48 = vadd.f32 %v7196_v17, %v2399_v50 }
 0x6dc   :  { %v7418_v45 = vpop.eup %5838  ;;  %v2401_v24 = vpop.f32.mrf.mxu1 }
 0x6dd   :  { %8562 = vst [vmem:[#allocation138_spill] sm:$0xff] %v7418_v45  ;;  %5852 = vtanh.f32 %v2653_v48  ;;  %v2654_v63 = vadd.f32 %v7205_v22, %v2401_v24 }
 0x6de   :  { %v7421_v52 = vpop.eup %5840  ;;  %v2405_v35 = vpop.f32.mrf.mxu1 }
 0x6df   :  { %8563 = vst [vmem:[#allocation139_spill] sm:$0xff] %v7421_v52  ;;  %5854 = vtanh.f32 %v2654_v63  ;;  %v2660_v58 = vadd.f32 %v7196_v17, %v2405_v35 }
 0x6e0   :  { %v7424_v29 = vpop.eup %5842  ;;  %v2407_v18 = vpop.f32.mrf.mxu1 }
 0x6e1   :  { %8564 = vst [vmem:[#allocation140_spill] sm:$0xff] %v7424_v29  ;;  %5856 = vtanh.f32 %v2660_v58  ;;  %v2661_v11 = vadd.f32 %v7205_v22, %v2407_v18 }
 0x6e2   :  { %v7427_v0 = vpop.eup %5844  ;;  %v2411_v50 = vpop.f32.mrf.mxu1 }
 0x6e3   :  { %8565 = vst [vmem:[#allocation141_spill] sm:$0xff] %v7427_v0  ;;  %5858 = vtanh.f32 %v2661_v11  ;;  %v2667_v48 = vadd.f32 %v7196_v17, %v2411_v50 }
 0x6e4   :  { %v7430_v45 = vpop.eup %5846  ;;  %v2413_v24 = vpop.f32.mrf.mxu1 }
 0x6e5   :  { %8566 = vst [vmem:[#allocation142_spill] sm:$0xff] %v7430_v45  ;;  %5860 = vtanh.f32 %v2667_v48  ;;  %v2668_v63 = vadd.f32 %v7205_v22, %v2413_v24 }
 0x6e6   :  { %v7433_v52 = vpop.eup %5848  ;;  %v2417_v35 = vpop.f32.mrf.mxu1 }
 0x6e7   :  { %8567 = vst [vmem:[#allocation143_spill] sm:$0xff] %v7433_v52  ;;  %5862 = vtanh.f32 %v2668_v63  ;;  %v2674_v58 = vadd.f32 %v7196_v17, %v2417_v35 }
 0x6e8   :  { %v7436_v29 = vpop.eup %5850  ;;  %v2419_v18 = vpop.f32.mrf.mxu1 }
 0x6e9   :  { %8568 = vst [vmem:[#allocation144_spill] sm:$0xff] %v7436_v29  ;;  %5864 = vtanh.f32 %v2674_v58  ;;  %v2675_v11 = vadd.f32 %v7205_v22, %v2419_v18 }
 0x6ea   :  { %v7439_v0 = vpop.eup %5852  ;;  %v2423_v50 = vpop.f32.mrf.mxu1 }
 0x6eb   :  { %8569 = vst [vmem:[#allocation145_spill] sm:$0xff] %v7439_v0  ;;  %5866 = vtanh.f32 %v2675_v11  ;;  %v2681_v48 = vadd.f32 %v7196_v17, %v2423_v50 }
 0x6ec   :  { %v7442_v45 = vpop.eup %5854  ;;  %v2425_v24 = vpop.f32.mrf.mxu1 }
 0x6ed   :  { %8570 = vst [vmem:[#allocation146_spill] sm:$0xff] %v7442_v45  ;;  %5868 = vtanh.f32 %v2681_v48  ;;  %v2682_v63 = vadd.f32 %v7205_v22, %v2425_v24 }
 0x6ee   :  { %v7445_v52 = vpop.eup %5856  ;;  %v2429_v35 = vpop.f32.mrf.mxu1 }
 0x6ef   :  { %8571 = vst [vmem:[#allocation147_spill] sm:$0xff] %v7445_v52  ;;  %5870 = vtanh.f32 %v2682_v63  ;;  %v2688_v58 = vadd.f32 %v7196_v17, %v2429_v35 }
 0x6f0   :  { %v7448_v29 = vpop.eup %5858  ;;  %v2431_v18 = vpop.f32.mrf.mxu1 }
 0x6f1   :  { %8572 = vst [vmem:[#allocation148_spill] sm:$0xff] %v7448_v29  ;;  %5872 = vtanh.f32 %v2688_v58  ;;  %v2689_v11 = vadd.f32 %v7205_v22, %v2431_v18 }
 0x6f2   :  { %v7451_v0 = vpop.eup %5860 }
 0x6f3   :  { %8573 = vst [vmem:[#allocation149_spill] sm:$0xff] %v7451_v0  ;;  %5874 = vtanh.f32 %v2689_v11 }
 0x6f4   :  { %v7453_v50 = vpop.eup %5862 }
 0x6f5   :  { %8574 = vst [vmem:[#allocation150_spill] sm:$0xff] %v7453_v50 }
 0x6f6   :  { %v7455_v48 = vpop.eup %5864 }
 0x6f7   :  { %8575 = vst [vmem:[#allocation151_spill] sm:$0xff] %v7455_v48 }
 0x6f8   :  { %v7457_v24 = vpop.eup %5866 }
 0x6f9   :  { %8576 = vst [vmem:[#allocation152_spill] sm:$0xff] %v7457_v24 }
 0x6fa   :  { %v7459_v52 = vpop.eup %5868 }
 0x6fb   :  { %8577 = vst [vmem:[#allocation153_spill] sm:$0xff] %v7459_v52 }
 0x6fc   :  { %v7461_v63 = vpop.eup %5870 }
 0x6fd   :  { %8578 = vst [vmem:[#allocation154_spill] sm:$0xff] %v7461_v63 }
 0x6fe   :  { %v7463_v17 = vpop.eup %5872 }
 0x6ff   :  { %8579 = vst [vmem:[#allocation155_spill] sm:$0xff] %v7463_v17 }
 0x700   :  { %v7465_v35 = vpop.eup %5874 }
 0x701   :  { %8580 = vst [vmem:[#allocation156_spill] sm:$0xff] %v7465_v35 }
 0x702   :  { %6165 = dma.done.wait [#allocation5 + $0x1], 57344 }
 0x703   :  { %6166 = vsyncadd [#allocation5 + $0x1], 4294909952  ;;  %3342 = vmatprep.mubr.f32.mxu1 %v7141_v8  ;;  %3503 = vmatprep.mubr.f32.mxu0 %v7143_v21  ;;  %v2868_v22 = vld [vmem:[#allocation3 + $0x1e8] sm:$0xff]  ;;  %v2867_v58 = vld [vmem:[#allocation3 + $0x1e0] sm:$0xff] }
 0x704   :  { %v2996_v18 = vld [vmem:[#allocation3 + $0x5e8] sm:$0xff]  ;;  %3278 = vmatprep.subr.mxu1 %v2868_v22  ;;  %v2995_v48 = vld [vmem:[#allocation3 + $0x5e0] sm:$0xff] }
 0x705   :  { %3439 = vmatprep.subr.mxu0 %v2996_v18  ;;  %v2864_v11 = vld [vmem:[#allocation3 + $0x1c8] sm:$0xff]  ;;  %v2863_v52 = vld [vmem:[#allocation3 + $0x1c0] sm:$0xff]  ;;  %3279 = vmatpush1.msra.mxu1 %v2867_v58 }
 0x706   :  { %3440 = vmatpush1.msra.mxu0 %v2995_v48  ;;  %v2992_v63 = vld [vmem:[#allocation3 + $0x5c8] sm:$0xff]  ;;  %v2991_v24 = vld [vmem:[#allocation3 + $0x5c0] sm:$0xff]  ;;  %3280 = vmatprep.subr.mxu1 %v2864_v11 }
 0x707   :  { %v2860_v17 = vld [vmem:[#allocation3 + $0x1a8] sm:$0xff]  ;;  %3441 = vmatprep.subr.mxu0 %v2992_v63  ;;  %v2859_v35 = vld [vmem:[#allocation3 + $0x1a0] sm:$0xff]  ;;  %3281 = vmatpush1.msra.mxu1 %v2863_v52 }
 0x708   :  { %v2988_v0 = vld [vmem:[#allocation3 + $0x5a8] sm:$0xff]  ;;  %3442 = vmatpush1.msra.mxu0 %v2991_v24  ;;  %v2987_v8 = vld [vmem:[#allocation3 + $0x5a0] sm:$0xff]  ;;  %3282 = vmatprep.subr.mxu1 %v2860_v17 }
 0x709   :  { %v2856_v21 = vld [vmem:[#allocation3 + $0x188] sm:$0xff]  ;;  %3443 = vmatprep.subr.mxu0 %v2988_v0  ;;  %v2855_v22 = vld [vmem:[#allocation3 + $0x180] sm:$0xff]  ;;  %3283 = vmatpush1.msra.mxu1 %v2859_v35 }
 0x70a   :  { %v2984_v50 = vld [vmem:[#allocation3 + $0x588] sm:$0xff]  ;;  %v2983_v18 = vld [vmem:[#allocation3 + $0x580] sm:$0xff]  ;;  %3444 = vmatpush1.msra.mxu0 %v2987_v8  ;;  %3284 = vmatprep.subr.mxu1 %v2856_v21 }
 0x70b   :  { %v2852_v58 = vld [vmem:[#allocation3 + $0x168] sm:$0xff]  ;;  %3445 = vmatprep.subr.mxu0 %v2984_v50  ;;  %v2851_v29 = vld [vmem:[#allocation3 + $0x160] sm:$0xff]  ;;  %3285 = vmatpush1.msra.mxu1 %v2855_v22 }
 0x70c   :  { %v2980_v48 = vld [vmem:[#allocation3 + $0x568] sm:$0xff]  ;;  %v2979_v11 = vld [vmem:[#allocation3 + $0x560] sm:$0xff]  ;;  %3446 = vmatpush1.msra.mxu0 %v2983_v18  ;;  %3286 = vmatprep.subr.mxu1 %v2852_v58 }
 0x70d   :  { %v2848_v63 = vld [vmem:[#allocation3 + $0x148] sm:$0xff]  ;;  %3447 = vmatprep.subr.mxu0 %v2980_v48  ;;  %v2847_v24 = vld [vmem:[#allocation3 + $0x140] sm:$0xff]  ;;  %3287 = vmatpush1.msra.mxu1 %v2851_v29 }
 0x70e   :  { %v2976_v52 = vld [vmem:[#allocation3 + $0x548] sm:$0xff]  ;;  %v2975_v45 = vld [vmem:[#allocation3 + $0x540] sm:$0xff]  ;;  %3448 = vmatpush1.msra.mxu0 %v2979_v11  ;;  %3288 = vmatprep.subr.mxu1 %v2848_v63 }
 0x70f   :  { %v2844_v0 = vld [vmem:[#allocation3 + $0x128] sm:$0xff]  ;;  %3449 = vmatprep.subr.mxu0 %v2976_v52  ;;  %v2843_v8 = vld [vmem:[#allocation3 + $0x120] sm:$0xff]  ;;  %3289 = vmatpush1.msra.mxu1 %v2847_v24 }
 0x710   :  { %v2972_v17 = vld [vmem:[#allocation3 + $0x528] sm:$0xff]  ;;  %v2971_v35 = vld [vmem:[#allocation3 + $0x520] sm:$0xff]  ;;  %3450 = vmatpush1.msra.mxu0 %v2975_v45  ;;  %3290 = vmatprep.subr.mxu1 %v2844_v0 }
 0x711   :  { %v2840_v21 = vld [vmem:[#allocation3 + $0x108] sm:$0xff]  ;;  %3451 = vmatprep.subr.mxu0 %v2972_v17  ;;  %v2839_v22 = vld [vmem:[#allocation3 + $0x100] sm:$0xff]  ;;  %3291 = vmatpush1.msra.mxu1 %v2843_v8 }
 0x712   :  { %v2968_v50 = vld [vmem:[#allocation3 + $0x508] sm:$0xff]  ;;  %v2967_v18 = vld [vmem:[#allocation3 + $0x500] sm:$0xff]  ;;  %3452 = vmatpush1.msra.mxu0 %v2971_v35  ;;  %3292 = vmatprep.subr.mxu1 %v2840_v21 }
 0x713   :  { %v2836_v58 = vld [vmem:[#allocation3 + $0xe8] sm:$0xff]  ;;  %3453 = vmatprep.subr.mxu0 %v2968_v50  ;;  %v2835_v29 = vld [vmem:[#allocation3 + $0xe0] sm:$0xff]  ;;  %3293 = vmatpush1.msra.mxu1 %v2839_v22 }
 0x714   :  { %v2964_v48 = vld [vmem:[#allocation3 + $0x4e8] sm:$0xff]  ;;  %v2963_v11 = vld [vmem:[#allocation3 + $0x4e0] sm:$0xff]  ;;  %3454 = vmatpush1.msra.mxu0 %v2967_v18  ;;  %3294 = vmatprep.subr.mxu1 %v2836_v58 }
 0x715   :  { %v2832_v63 = vld [vmem:[#allocation3 + $0xc8] sm:$0xff]  ;;  %3455 = vmatprep.subr.mxu0 %v2964_v48  ;;  %v2831_v45 = vld [vmem:[#allocation3 + $0xc0] sm:$0xff]  ;;  %3295 = vmatpush1.msra.mxu1 %v2835_v29 }
 0x716   :  { %v2960_v52 = vld [vmem:[#allocation3 + $0x4c8] sm:$0xff]  ;;  %v2959_v24 = vld [vmem:[#allocation3 + $0x4c0] sm:$0xff]  ;;  %3456 = vmatpush1.msra.mxu0 %v2963_v11  ;;  %3296 = vmatprep.subr.mxu1 %v2832_v63 }
 0x717   :  { %v2828_v0 = vld [vmem:[#allocation3 + $0xa8] sm:$0xff]  ;;  %3457 = vmatprep.subr.mxu0 %v2960_v52  ;;  %v2827_v8 = vld [vmem:[#allocation3 + $0xa0] sm:$0xff]  ;;  %3297 = vmatpush1.msra.mxu1 %v2831_v45 }
 0x718   :  { %v2956_v17 = vld [vmem:[#allocation3 + $0x4a8] sm:$0xff]  ;;  %v2955_v35 = vld [vmem:[#allocation3 + $0x4a0] sm:$0xff]  ;;  %3458 = vmatpush1.msra.mxu0 %v2959_v24  ;;  %3298 = vmatprep.subr.mxu1 %v2828_v0 }
 0x719   :  { %v2824_v21 = vld [vmem:[#allocation3 + $0x88] sm:$0xff]  ;;  %3459 = vmatprep.subr.mxu0 %v2956_v17  ;;  %v2823_v22 = vld [vmem:[#allocation3 + $0x80] sm:$0xff]  ;;  %3299 = vmatpush1.msra.mxu1 %v2827_v8 }
 0x71a   :  { %v2952_v50 = vld [vmem:[#allocation3 + $0x488] sm:$0xff]  ;;  %v2951_v18 = vld [vmem:[#allocation3 + $0x480] sm:$0xff]  ;;  %3460 = vmatpush1.msra.mxu0 %v2955_v35  ;;  %3300 = vmatprep.subr.mxu1 %v2824_v21 }
 0x71b   :  { %v2820_v58 = vld [vmem:[#allocation3 + $0x68] sm:$0xff]  ;;  %3461 = vmatprep.subr.mxu0 %v2952_v50  ;;  %v2819_v29 = vld [vmem:[#allocation3 + $0x60] sm:$0xff]  ;;  %3301 = vmatpush1.msra.mxu1 %v2823_v22 }
 0x71c   :  { %v2948_v48 = vld [vmem:[#allocation3 + $0x468] sm:$0xff]  ;;  %v2947_v11 = vld [vmem:[#allocation3 + $0x460] sm:$0xff]  ;;  %3462 = vmatpush1.msra.mxu0 %v2951_v18  ;;  %3302 = vmatprep.subr.mxu1 %v2820_v58 }
 0x71d   :  { %v2816_v63 = vld [vmem:[#allocation3 + $0x48] sm:$0xff]  ;;  %3463 = vmatprep.subr.mxu0 %v2948_v48  ;;  %v2815_v45 = vld [vmem:[#allocation3 + $0x40] sm:$0xff]  ;;  %3303 = vmatpush1.msra.mxu1 %v2819_v29 }
 0x71e   :  { %v2944_v52 = vld [vmem:[#allocation3 + $0x448] sm:$0xff]  ;;  %v2943_v24 = vld [vmem:[#allocation3 + $0x440] sm:$0xff]  ;;  %3464 = vmatpush1.msra.mxu0 %v2947_v11  ;;  %3304 = vmatprep.subr.mxu1 %v2816_v63 }
 0x71f   :  { %v2812_v0 = vld [vmem:[#allocation3 + $0x28] sm:$0xff]  ;;  %3465 = vmatprep.subr.mxu0 %v2944_v52  ;;  %v2811_v8 = vld [vmem:[#allocation3 + $0x20] sm:$0xff]  ;;  %3305 = vmatpush1.msra.mxu1 %v2815_v45 }
 0x720   :  { %v2940_v17 = vld [vmem:[#allocation3 + $0x428] sm:$0xff]  ;;  %v2939_v35 = vld [vmem:[#allocation3 + $0x420] sm:$0xff]  ;;  %3466 = vmatpush1.msra.mxu0 %v2943_v24  ;;  %3306 = vmatprep.subr.mxu1 %v2812_v0 }
 0x721   :  { %v2808_v21 = vld [vmem:[#allocation3 + $0x8] sm:$0xff]  ;;  %3467 = vmatprep.subr.mxu0 %v2940_v17  ;;  %v2807_v22 = vld [vmem:[#allocation3] sm:$0xff]  ;;  %3307 = vmatpush1.msra.mxu1 %v2811_v8 }
 0x722   :  { %v2936_v50 = vld [vmem:[#allocation3 + $0x408] sm:$0xff]  ;;  %v2935_v18 = vld [vmem:[#allocation3 + $0x400] sm:$0xff]  ;;  %3468 = vmatpush1.msra.mxu0 %v2939_v35  ;;  %3308 = vmatprep.subr.mxu1 %v2808_v21 }
 0x723   :  { %v2932_v58 = vld [vmem:[#allocation3 + $0x3e8] sm:$0xff]  ;;  %3469 = vmatprep.subr.mxu0 %v2936_v50  ;;  %v2931_v29 = vld [vmem:[#allocation3 + $0x3e0] sm:$0xff]  ;;  %3309 = vmatpush1.msra.mxu1 %v2807_v22 }
 0x724   :  { %v3060_v48 = vld [vmem:[#allocation3 + $0x7e8] sm:$0xff]  ;;  %v3059_v11 = vld [vmem:[#allocation3 + $0x7e0] sm:$0xff]  ;;  %3470 = vmatpush1.msra.mxu0 %v2935_v18  ;;  %3310 = vmatprep.subr.mxu1 %v2932_v58 }
 0x725   :  { %v2928_v63 = vld [vmem:[#allocation3 + $0x3c8] sm:$0xff]  ;;  %3471 = vmatprep.subr.mxu0 %v3060_v48  ;;  %v2927_v45 = vld [vmem:[#allocation3 + $0x3c0] sm:$0xff]  ;;  %3311 = vmatpush2.msra.mxu1 %v2931_v29 }
 0x726   :  { %v3056_v52 = vld [vmem:[#allocation3 + $0x7c8] sm:$0xff]  ;;  %v3055_v24 = vld [vmem:[#allocation3 + $0x7c0] sm:$0xff]  ;;  %3472 = vmatpush2.msra.mxu0 %v3059_v11  ;;  %3312 = vmatprep.subr.mxu1 %v2928_v63 }
 0x727   :  { %v2924_v0 = vld [vmem:[#allocation3 + $0x3a8] sm:$0xff]  ;;  %3473 = vmatprep.subr.mxu0 %v3056_v52  ;;  %v2923_v8 = vld [vmem:[#allocation3 + $0x3a0] sm:$0xff]  ;;  %3313 = vmatpush2.msra.mxu1 %v2927_v45 }
 0x728   :  { %v3052_v17 = vld [vmem:[#allocation3 + $0x7a8] sm:$0xff]  ;;  %v3051_v35 = vld [vmem:[#allocation3 + $0x7a0] sm:$0xff]  ;;  %3474 = vmatpush2.msra.mxu0 %v3055_v24  ;;  %3314 = vmatprep.subr.mxu1 %v2924_v0 }
 0x729   :  { %v2920_v21 = vld [vmem:[#allocation3 + $0x388] sm:$0xff]  ;;  %3475 = vmatprep.subr.mxu0 %v3052_v17  ;;  %v2919_v22 = vld [vmem:[#allocation3 + $0x380] sm:$0xff]  ;;  %3315 = vmatpush2.msra.mxu1 %v2923_v8 }
 0x72a   :  { %v3048_v50 = vld [vmem:[#allocation3 + $0x788] sm:$0xff]  ;;  %v3047_v18 = vld [vmem:[#allocation3 + $0x780] sm:$0xff]  ;;  %3476 = vmatpush2.msra.mxu0 %v3051_v35  ;;  %3316 = vmatprep.subr.mxu1 %v2920_v21 }
 0x72b   :  { %v2916_v58 = vld [vmem:[#allocation3 + $0x368] sm:$0xff]  ;;  %3477 = vmatprep.subr.mxu0 %v3048_v50  ;;  %v2915_v29 = vld [vmem:[#allocation3 + $0x360] sm:$0xff]  ;;  %3317 = vmatpush2.msra.mxu1 %v2919_v22 }
 0x72c   :  { %v3044_v48 = vld [vmem:[#allocation3 + $0x768] sm:$0xff]  ;;  %v3043_v11 = vld [vmem:[#allocation3 + $0x760] sm:$0xff]  ;;  %3478 = vmatpush2.msra.mxu0 %v3047_v18  ;;  %3318 = vmatprep.subr.mxu1 %v2916_v58 }
 0x72d   :  { %v2912_v63 = vld [vmem:[#allocation3 + $0x348] sm:$0xff]  ;;  %3479 = vmatprep.subr.mxu0 %v3044_v48  ;;  %v2911_v45 = vld [vmem:[#allocation3 + $0x340] sm:$0xff]  ;;  %3319 = vmatpush2.msra.mxu1 %v2915_v29 }
 0x72e   :  { %v3040_v52 = vld [vmem:[#allocation3 + $0x748] sm:$0xff]  ;;  %v3039_v24 = vld [vmem:[#allocation3 + $0x740] sm:$0xff]  ;;  %3480 = vmatpush2.msra.mxu0 %v3043_v11  ;;  %3320 = vmatprep.subr.mxu1 %v2912_v63 }
 0x72f   :  { %v2908_v0 = vld [vmem:[#allocation3 + $0x328] sm:$0xff]  ;;  %3481 = vmatprep.subr.mxu0 %v3040_v52  ;;  %v2907_v8 = vld [vmem:[#allocation3 + $0x320] sm:$0xff]  ;;  %3321 = vmatpush2.msra.mxu1 %v2911_v45 }
 0x730   :  { %v3036_v17 = vld [vmem:[#allocation3 + $0x728] sm:$0xff]  ;;  %v3035_v35 = vld [vmem:[#allocation3 + $0x720] sm:$0xff]  ;;  %3482 = vmatpush2.msra.mxu0 %v3039_v24  ;;  %3322 = vmatprep.subr.mxu1 %v2908_v0 }
 0x731   :  { %v2904_v21 = vld [vmem:[#allocation3 + $0x308] sm:$0xff]  ;;  %3483 = vmatprep.subr.mxu0 %v3036_v17  ;;  %v2903_v22 = vld [vmem:[#allocation3 + $0x300] sm:$0xff]  ;;  %3323 = vmatpush2.msra.mxu1 %v2907_v8 }
 0x732   :  { %v3032_v50 = vld [vmem:[#allocation3 + $0x708] sm:$0xff]  ;;  %v3031_v18 = vld [vmem:[#allocation3 + $0x700] sm:$0xff]  ;;  %3484 = vmatpush2.msra.mxu0 %v3035_v35  ;;  %3324 = vmatprep.subr.mxu1 %v2904_v21 }
 0x733   :  { %v2900_v58 = vld [vmem:[#allocation3 + $0x2e8] sm:$0xff]  ;;  %3485 = vmatprep.subr.mxu0 %v3032_v50  ;;  %v2899_v29 = vld [vmem:[#allocation3 + $0x2e0] sm:$0xff]  ;;  %3325 = vmatpush2.msra.mxu1 %v2903_v22 }
 0x734   :  { %v3028_v48 = vld [vmem:[#allocation3 + $0x6e8] sm:$0xff]  ;;  %v3027_v11 = vld [vmem:[#allocation3 + $0x6e0] sm:$0xff]  ;;  %3486 = vmatpush2.msra.mxu0 %v3031_v18  ;;  %3326 = vmatprep.subr.mxu1 %v2900_v58 }
 0x735   :  { %v2896_v63 = vld [vmem:[#allocation3 + $0x2c8] sm:$0xff]  ;;  %3487 = vmatprep.subr.mxu0 %v3028_v48  ;;  %v2895_v45 = vld [vmem:[#allocation3 + $0x2c0] sm:$0xff]  ;;  %3327 = vmatpush2.msra.mxu1 %v2899_v29 }
 0x736   :  { %v3024_v52 = vld [vmem:[#allocation3 + $0x6c8] sm:$0xff]  ;;  %v3023_v24 = vld [vmem:[#allocation3 + $0x6c0] sm:$0xff]  ;;  %3488 = vmatpush2.msra.mxu0 %v3027_v11  ;;  %3328 = vmatprep.subr.mxu1 %v2896_v63 }
 0x737   :  { %v2892_v0 = vld [vmem:[#allocation3 + $0x2a8] sm:$0xff]  ;;  %3489 = vmatprep.subr.mxu0 %v3024_v52  ;;  %v2891_v8 = vld [vmem:[#allocation3 + $0x2a0] sm:$0xff]  ;;  %3329 = vmatpush2.msra.mxu1 %v2895_v45 }
 0x738   :  { %v3020_v17 = vld [vmem:[#allocation3 + $0x6a8] sm:$0xff]  ;;  %v3019_v35 = vld [vmem:[#allocation3 + $0x6a0] sm:$0xff]  ;;  %3490 = vmatpush2.msra.mxu0 %v3023_v24  ;;  %3330 = vmatprep.subr.mxu1 %v2892_v0 }
 0x739   :  { %v2888_v21 = vld [vmem:[#allocation3 + $0x288] sm:$0xff]  ;;  %3491 = vmatprep.subr.mxu0 %v3020_v17  ;;  %v2887_v22 = vld [vmem:[#allocation3 + $0x280] sm:$0xff]  ;;  %3331 = vmatpush2.msra.mxu1 %v2891_v8 }
 0x73a   :  { %v3016_v50 = vld [vmem:[#allocation3 + $0x688] sm:$0xff]  ;;  %v3015_v18 = vld [vmem:[#allocation3 + $0x680] sm:$0xff]  ;;  %3492 = vmatpush2.msra.mxu0 %v3019_v35  ;;  %3332 = vmatprep.subr.mxu1 %v2888_v21 }
 0x73b   :  { %v2884_v58 = vld [vmem:[#allocation3 + $0x268] sm:$0xff]  ;;  %3493 = vmatprep.subr.mxu0 %v3016_v50  ;;  %v2883_v29 = vld [vmem:[#allocation3 + $0x260] sm:$0xff]  ;;  %3333 = vmatpush2.msra.mxu1 %v2887_v22 }
 0x73c   :  { %v3012_v48 = vld [vmem:[#allocation3 + $0x668] sm:$0xff]  ;;  %v3011_v11 = vld [vmem:[#allocation3 + $0x660] sm:$0xff]  ;;  %3494 = vmatpush2.msra.mxu0 %v3015_v18  ;;  %3334 = vmatprep.subr.mxu1 %v2884_v58 }
 0x73d   :  { %v2880_v63 = vld [vmem:[#allocation3 + $0x248] sm:$0xff]  ;;  %3495 = vmatprep.subr.mxu0 %v3012_v48  ;;  %v2879_v45 = vld [vmem:[#allocation3 + $0x240] sm:$0xff]  ;;  %3335 = vmatpush2.msra.mxu1 %v2883_v29 }
 0x73e   :  { %v3008_v52 = vld [vmem:[#allocation3 + $0x648] sm:$0xff]  ;;  %v3007_v24 = vld [vmem:[#allocation3 + $0x640] sm:$0xff]  ;;  %3496 = vmatpush2.msra.mxu0 %v3011_v11  ;;  %3336 = vmatprep.subr.mxu1 %v2880_v63 }
 0x73f   :  { %v2876_v0 = vld [vmem:[#allocation3 + $0x228] sm:$0xff]  ;;  %3497 = vmatprep.subr.mxu0 %v3008_v52  ;;  %v2875_v8 = vld [vmem:[#allocation3 + $0x220] sm:$0xff]  ;;  %3337 = vmatpush2.msra.mxu1 %v2879_v45 }
 0x740   :  { %v3004_v17 = vld [vmem:[#allocation3 + $0x628] sm:$0xff]  ;;  %v3003_v35 = vld [vmem:[#allocation3 + $0x620] sm:$0xff]  ;;  %3498 = vmatpush2.msra.mxu0 %v3007_v24  ;;  %3338 = vmatprep.subr.mxu1 %v2876_v0 }
 0x741   :  { %v2872_v21 = vld [vmem:[#allocation3 + $0x208] sm:$0xff]  ;;  %3499 = vmatprep.subr.mxu0 %v3004_v17  ;;  %v2871_v22 = vld [vmem:[#allocation3 + $0x200] sm:$0xff]  ;;  %3339 = vmatpush2.msra.mxu1 %v2875_v8 }
 0x742   :  { %v3000_v50 = vld [vmem:[#allocation3 + $0x608] sm:$0xff]  ;;  %v2999_v18 = vld [vmem:[#allocation3 + $0x600] sm:$0xff]  ;;  %3500 = vmatpush2.msra.mxu0 %v3003_v35  ;;  %3340 = vmatprep.subr.mxu1 %v2872_v21 }
 0x743   :  { %v3124_v58 = vld [vmem:[#allocation3 + $0x9e8] sm:$0xff]  ;;  %3501 = vmatprep.subr.mxu0 %v3000_v50  ;;  %v3123_v48 = vld [vmem:[#allocation3 + $0x9e0] sm:$0xff]  ;;  %3341 = vmatpush2.msra.mxu1 %v2871_v22 }
 0x744   :  { %3502 = vmatpush2.msra.mxu0 %v2999_v18  ;;  %v3120_v29 = vld [vmem:[#allocation3 + $0x9c8] sm:$0xff]  ;;  %3343 = vmatmul.mubr.f32.vlgmr.msra.gmra.mxu1 %v7135_v39  ;;  %v3119_v63 = vld [vmem:[#allocation3 + $0x9c0] sm:$0xff] }
 0x745   :  { %v3252_v11 = vld [vmem:[#allocation3 + $0xde8] sm:$0xff]  ;;  %3600 = vmatprep.subr.mxu1 %v3124_v58  ;;  %3504 = vmatmul.mubr.f32.vlgmr.msra.gmra.mxu0 %v7137_v2  ;;  %v3251_v52 = vld [vmem:[#allocation3 + $0xde0] sm:$0xff] }
 0x746   :  { %3601 = vmatpush1.msra.mxu1 %v3123_v48  ;;  %3761 = vmatprep.subr.mxu0 %v3252_v11  ;;  %v3116_v45 = vld [vmem:[#allocation3 + $0x9a8] sm:$0xff]  ;;  %v3115_v24 = vld [vmem:[#allocation3 + $0x9a0] sm:$0xff] }
 0x747   :  { %3602 = vmatprep.subr.mxu1 %v3120_v29  ;;  %3348 = vmatprep.mubr.f32.mxu1 %v7154_v55  ;;  %v3112_v0 = vld [vmem:[#allocation3 + $0x988] sm:$0xff]  ;;  %v3111_v8 = vld [vmem:[#allocation3 + $0x980] sm:$0xff] }
 0x748   :  { %3603 = vmatpush1.msra.mxu1 %v3119_v63  ;;  %3762 = vmatpush1.msra.mxu0 %v3251_v52  ;;  %v3248_v17 = vld [vmem:[#allocation3 + $0xdc8] sm:$0xff]  ;;  %v3247_v35 = vld [vmem:[#allocation3 + $0xdc0] sm:$0xff] }
 0x749   :  { %3349 = vmatmul.mubr.f32.gmra.mxu1 %v7147_v57  ;;  %3509 = vmatprep.mubr.f32.mxu0 %v7156_v16  ;;  %v3108_v21 = vld [vmem:[#allocation3 + $0x968] sm:$0xff]  ;;  %v3107_v50 = vld [vmem:[#allocation3 + $0x960] sm:$0xff] }
 0x74a   :  { %3604 = vmatprep.subr.mxu1 %v3116_v45  ;;  %3510 = vmatmul.mubr.f32.gmra.mxu0 %v7149_v51  ;;  %v3104_v22 = vld [vmem:[#allocation3 + $0x948] sm:$0xff]  ;;  %v3103_v58 = vld [vmem:[#allocation3 + $0x940] sm:$0xff] }
 0x74b   :  { %3605 = vmatpush1.msra.mxu1 %v3115_v24  ;;  %3763 = vmatprep.subr.mxu0 %v3248_v17  ;;  %v3244_v18 = vld [vmem:[#allocation3 + $0xda8] sm:$0xff]  ;;  %v3243_v48 = vld [vmem:[#allocation3 + $0xda0] sm:$0xff] }
 0x74c   :  { %3606 = vmatprep.subr.mxu1 %v3112_v0  ;;  %3354 = vmatprep.mubr.f32.mxu1 %v7169_v23  ;;  %v3100_v29 = vld [vmem:[#allocation3 + $0x928] sm:$0xff]  ;;  %v3099_v11 = vld [vmem:[#allocation3 + $0x920] sm:$0xff] }
 0x74d   :  { %3607 = vmatpush1.msra.mxu1 %v3111_v8  ;;  %3764 = vmatpush1.msra.mxu0 %v3247_v35  ;;  %v3096_v63 = vld [vmem:[#allocation3 + $0x908] sm:$0xff]  ;;  %v3095_v45 = vld [vmem:[#allocation3 + $0x900] sm:$0xff] }
 0x74e   :  { %3355 = vmatmul.mubr.f32.gmra.mxu1 %v7160_v7  ;;  %3515 = vmatprep.mubr.f32.mxu0 %v7171_v33  ;;  %v3240_v52 = vld [vmem:[#allocation3 + $0xd88] sm:$0xff]  ;;  %v3239_v24 = vld [vmem:[#allocation3 + $0xd80] sm:$0xff] }
 0x74f   :  { %3608 = vmatprep.subr.mxu1 %v3108_v21  ;;  %3516 = vmatmul.mubr.f32.gmra.mxu0 %v7162_v49  ;;  %v3092_v0 = vld [vmem:[#allocation3 + $0x8e8] sm:$0xff]  ;;  %v3091_v17 = vld [vmem:[#allocation3 + $0x8e0] sm:$0xff] }
 0x750   :  { %3609 = vmatpush1.msra.mxu1 %v3107_v50  ;;  %3765 = vmatprep.subr.mxu0 %v3244_v18  ;;  %v3088_v8 = vld [vmem:[#allocation3 + $0x8c8] sm:$0xff]  ;;  %v3087_v21 = vld [vmem:[#allocation3 + $0x8c0] sm:$0xff] }
 0x751   :  { %3610 = vmatprep.subr.mxu1 %v3104_v22  ;;  %3360 = vmatprep.mubr.f32.mxu1 %v7182_v19  ;;  %v3236_v35 = vld [vmem:[#allocation3 + $0xd68] sm:$0xff]  ;;  %v3235_v50 = vld [vmem:[#allocation3 + $0xd60] sm:$0xff] }
 0x752   :  { %3611 = vmatpush1.msra.mxu1 %v3103_v58  ;;  %3766 = vmatpush1.msra.mxu0 %v3243_v48  ;;  %v3084_v22 = vld [vmem:[#allocation3 + $0x8a8] sm:$0xff]  ;;  %v3083_v18 = vld [vmem:[#allocation3 + $0x8a0] sm:$0xff] }
 0x753   :  { %3361 = vmatmul.mubr.f32.gmra.mxu1 %v7175_v41  ;;  %3521 = vmatprep.mubr.f32.mxu0 %v7184_v3  ;;  %v3080_v58 = vld [vmem:[#allocation3 + $0x888] sm:$0xff] }
 0x754   :  { %3612 = vmatprep.subr.mxu1 %v3100_v29  ;;  %3522 = vmatmul.mubr.f32.gmra.mxu0 %v7177_v42  ;;  %v3232_v48 = vld [vmem:[#allocation3 + $0xd48] sm:$0xff]  ;;  %v3079_v29 = vld [vmem:[#allocation3 + $0x880] sm:$0xff] }
 0x755   :  { %3613 = vmatpush1.msra.mxu1 %v3099_v11  ;;  %3767 = vmatprep.subr.mxu0 %v3240_v52  ;;  %v3231_v11 = vld [vmem:[#allocation3 + $0xd40] sm:$0xff] }
 0x756   :  { %3614 = vmatprep.subr.mxu1 %v3096_v63  ;;  %3366 = vmatprep.mubr.f32.mxu1 %v7198_v36  ;;  %v3076_v63 = vld [vmem:[#allocation3 + $0x868] sm:$0xff]  ;;  %v3075_v52 = vld [vmem:[#allocation3 + $0x860] sm:$0xff] }
 0x757   :  { %3615 = vmatpush1.msra.mxu1 %v3095_v45  ;;  %3768 = vmatpush1.msra.mxu0 %v3239_v24  ;;  %v3072_v45 = vld [vmem:[#allocation3 + $0x848] sm:$0xff] }
 0x758   :  { %3367 = vmatmul.mubr.f32.gmra.mxu1 %v7189_v5  ;;  %3527 = vmatprep.mubr.f32.mxu0 %v7200_v10  ;;  %v3228_v24 = vld [vmem:[#allocation3 + $0xd28] sm:$0xff] }
 0x759   :  { %3616 = vmatprep.subr.mxu1 %v3092_v0  ;;  %3528 = vmatmul.mubr.f32.gmra.mxu0 %v7191_v20  ;;  %v3071_v0 = vld [vmem:[#allocation3 + $0x840] sm:$0xff] }
 0x75a   :  { %3617 = vmatpush1.msra.mxu1 %v3091_v17  ;;  %3769 = vmatprep.subr.mxu0 %v3236_v35  ;;  %v3227_v17 = vld [vmem:[#allocation3 + $0xd20] sm:$0xff] }
 0x75b   :  { %3618 = vmatprep.subr.mxu1 %v3088_v8  ;;  %3372 = vmatprep.mubr.f32.mxu1 %v7212_v43  ;;  %v3068_v8 = vld [vmem:[#allocation3 + $0x828] sm:$0xff]  ;;  %v3067_v35 = vld [vmem:[#allocation3 + $0x820] sm:$0xff] }
 0x75c   :  { %3619 = vmatpush1.msra.mxu1 %v3087_v21  ;;  %3770 = vmatpush1.msra.mxu0 %v3235_v50  ;;  %v3064_v21 = vld [vmem:[#allocation3 + $0x808] sm:$0xff] }
 0x75d   :  { %3373 = vmatmul.mubr.f32.gmra.mxu1 %v7207_v25  ;;  %3533 = vmatprep.mubr.f32.mxu0 %v7215_v53  ;;  %v3224_v50 = vld [vmem:[#allocation3 + $0xd08] sm:$0xff] }
 0x75e   :  { %3620 = vmatprep.subr.mxu1 %v3084_v22  ;;  %3534 = vmatmul.mubr.f32.gmra.mxu0 %v7209_v1  ;;  %v3063_v22 = vld [vmem:[#allocation3 + $0x800] sm:$0xff] }
 0x75f   :  { %3621 = vmatpush1.msra.mxu1 %v3083_v18  ;;  %3771 = vmatprep.subr.mxu0 %v3232_v48  ;;  %v3223_v18 = vld [vmem:[#allocation3 + $0xd00] sm:$0xff] }
 0x760   :  { %3622 = vmatprep.subr.mxu1 %v3080_v58  ;;  %3378 = vmatprep.mubr.f32.mxu1 %v7224_v26  ;;  %v3188_v58 = vld [vmem:[#allocation3 + $0xbe8] sm:$0xff]  ;;  %v3187_v48 = vld [vmem:[#allocation3 + $0xbe0] sm:$0xff] }
 0x761   :  { %3623 = vmatpush1.msra.mxu1 %v3079_v29  ;;  %3772 = vmatpush1.msra.mxu0 %v3231_v11  ;;  %v3184_v29 = vld [vmem:[#allocation3 + $0xbc8] sm:$0xff] }
 0x762   :  { %3379 = vmatmul.mubr.f32.gmra.mxu1 %v7218_v56  ;;  %3539 = vmatprep.mubr.f32.mxu0 %v7227_v38  ;;  %v3220_v11 = vld [vmem:[#allocation3 + $0xce8] sm:$0xff] }
 0x763   :  { %3624 = vmatprep.subr.mxu1 %v3076_v63  ;;  %3540 = vmatmul.mubr.f32.gmra.mxu0 %v7221_v6  ;;  %v3183_v63 = vld [vmem:[#allocation3 + $0xbc0] sm:$0xff] }
 0x764   :  { %3625 = vmatpush1.msra.mxu1 %v3075_v52  ;;  %3773 = vmatprep.subr.mxu0 %v3228_v24  ;;  %v3219_v52 = vld [vmem:[#allocation3 + $0xce0] sm:$0xff] }
 0x765   :  { %3626 = vmatprep.subr.mxu1 %v3072_v45  ;;  %3384 = vmatprep.mubr.f32.mxu1 %v7236_v59  ;;  %v3180_v45 = vld [vmem:[#allocation3 + $0xba8] sm:$0xff]  ;;  %v3179_v24 = vld [vmem:[#allocation3 + $0xba0] sm:$0xff] }
 0x766   :  { %3627 = vmatpush1.msra.mxu1 %v3071_v0  ;;  %3774 = vmatpush1.msra.mxu0 %v3227_v17  ;;  %v3176_v0 = vld [vmem:[#allocation3 + $0xb88] sm:$0xff] }
 0x767   :  { %3385 = vmatmul.mubr.f32.gmra.mxu1 %v7230_v9  ;;  %3545 = vmatprep.mubr.f32.mxu0 %v7248_v60  ;;  %v3216_v17 = vld [vmem:[#allocation3 + $0xcc8] sm:$0xff] }
 0x768   :  { %3628 = vmatprep.subr.mxu1 %v3068_v8  ;;  %3546 = vmatmul.mubr.f32.gmra.mxu0 %v7242_v44  ;;  %v3175_v8 = vld [vmem:[#allocation3 + $0xb80] sm:$0xff] }
 0x769   :  { %3629 = vmatpush1.msra.mxu1 %v3067_v35  ;;  %3775 = vmatprep.subr.mxu0 %v3224_v50  ;;  %v3215_v35 = vld [vmem:[#allocation3 + $0xcc0] sm:$0xff] }
 0x76a   :  { %3630 = vmatprep.subr.mxu1 %v3064_v21  ;;  %3390 = vmatprep.mubr.f32.mxu1 %v7356_v32  ;;  %v3172_v21 = vld [vmem:[#allocation3 + $0xb68] sm:$0xff]  ;;  %v3171_v50 = vld [vmem:[#allocation3 + $0xb60] sm:$0xff] }
 0x76b   :  { %3631 = vmatpush1.msra.mxu1 %v3063_v22  ;;  %3776 = vmatpush1.msra.mxu0 %v3223_v18  ;;  %v3168_v22 = vld [vmem:[#allocation3 + $0xb48] sm:$0xff] }
 0x76c   :  { %3391 = vmatmul.mubr.f32.gmra.mxu1 %v7350_v30  ;;  %3551 = vmatprep.mubr.f32.mxu0 %v7287_v31  ;;  %v3212_v18 = vld [vmem:[#allocation3 + $0xca8] sm:$0xff] }
 0x76d   :  { %3632 = vmatprep.subr.mxu1 %v3188_v58  ;;  %3552 = vmatmul.mubr.f32.gmra.mxu0 %v7281_v15  ;;  %v3167_v58 = vld [vmem:[#allocation3 + $0xb40] sm:$0xff] }
 0x76e   :  { %3633 = vmatpush2.msra.mxu1 %v3187_v48  ;;  %3777 = vmatprep.subr.mxu0 %v3220_v11  ;;  %v3211_v48 = vld [vmem:[#allocation3 + $0xca0] sm:$0xff] }
 0x76f   :  { %3634 = vmatprep.subr.mxu1 %v3184_v29  ;;  %3396 = vmatprep.mubr.f32.mxu1 %v7368_v46  ;;  %v3164_v29 = vld [vmem:[#allocation3 + $0xb28] sm:$0xff]  ;;  %v3163_v11 = vld [vmem:[#allocation3 + $0xb20] sm:$0xff] }
 0x770   :  { %3635 = vmatpush2.msra.mxu1 %v3183_v63  ;;  %3778 = vmatpush1.msra.mxu0 %v3219_v52  ;;  %v3160_v63 = vld [vmem:[#allocation3 + $0xb08] sm:$0xff] }
 0x771   :  { %3397 = vmatmul.mubr.f32.gmra.mxu1 %v7362_v34  ;;  %3557 = vmatprep.mubr.f32.mxu0 %v7299_v14  ;;  %v3208_v52 = vld [vmem:[#allocation3 + $0xc88] sm:$0xff] }
 0x772   :  { %3636 = vmatprep.subr.mxu1 %v3180_v45  ;;  %3558 = vmatmul.mubr.f32.gmra.mxu0 %v7293_v37  ;;  %v3159_v45 = vld [vmem:[#allocation3 + $0xb00] sm:$0xff] }
 0x773   :  { %3637 = vmatpush2.msra.mxu1 %v3179_v24  ;;  %3779 = vmatprep.subr.mxu0 %v3216_v17  ;;  %v3207_v24 = vld [vmem:[#allocation3 + $0xc80] sm:$0xff] }
 0x774   :  { %3638 = vmatprep.subr.mxu1 %v3176_v0  ;;  %3402 = vmatprep.mubr.f32.mxu1 %v7380_v27  ;;  %v3156_v0 = vld [vmem:[#allocation3 + $0xae8] sm:$0xff]  ;;  %v3155_v17 = vld [vmem:[#allocation3 + $0xae0] sm:$0xff] }
 0x775   :  { %3639 = vmatpush2.msra.mxu1 %v3175_v8  ;;  %3780 = vmatpush1.msra.mxu0 %v3215_v35  ;;  %v3152_v8 = vld [vmem:[#allocation3 + $0xac8] sm:$0xff] }
 0x776   :  { %3403 = vmatmul.mubr.f32.gmra.mxu1 %v7374_v54  ;;  %3563 = vmatprep.mubr.f32.mxu0 %v7311_v12  ;;  %v3204_v35 = vld [vmem:[#allocation3 + $0xc68] sm:$0xff] }
 0x777   :  { %3640 = vmatprep.subr.mxu1 %v3172_v21  ;;  %3564 = vmatmul.mubr.f32.gmra.mxu0 %v7305_v13  ;;  %v8581_v21 = vld [vmem:[#allocation118_spill] sm:$0xff] }
 0x778   :  { %3641 = vmatpush2.msra.mxu1 %v3171_v50  ;;  %3781 = vmatprep.subr.mxu0 %v3212_v18  ;;  %v3151_v50 = vld [vmem:[#allocation3 + $0xac0] sm:$0xff] }
 0x779   :  { %3642 = vmatprep.subr.mxu1 %v3168_v22  ;;  %3408 = vmatprep.mubr.f32.mxu1 %v7390_v62  ;;  %v8582_v22 = vld [vmem:[#allocation116_spill] sm:$0xff]  ;;  %v3203_v18 = vld [vmem:[#allocation3 + $0xc60] sm:$0xff] }
 0x77a   :  { %3643 = vmatpush2.msra.mxu1 %v3167_v58  ;;  %3782 = vmatpush1.msra.mxu0 %v3211_v48  ;;  %v3148_v58 = vld [vmem:[#allocation3 + $0xaa8] sm:$0xff]  ;;  %v8583_v48 = vld [vmem:[#allocation135_spill] sm:$0xff] }
 0x77b   :  { %3409 = vmatmul.mubr.f32.gmra.mxu1 %v7385_v4  ;;  %3569 = vmatprep.mubr.f32.mxu0 %v7323_v47 }
 0x77c   :  { %3644 = vmatprep.subr.mxu1 %v3164_v29  ;;  %3570 = vmatmul.mubr.f32.gmra.mxu0 %v7317_v28  ;;  %v3147_v29 = vld [vmem:[#allocation3 + $0xaa0] sm:$0xff] }
 0x77d   :  { %3645 = vmatpush2.msra.mxu1 %v3163_v11  ;;  %3783 = vmatprep.subr.mxu0 %v3208_v52  ;;  %v8584_v11 = vld [vmem:[#allocation133_spill] sm:$0xff]  ;;  %v3200_v52 = vld [vmem:[#allocation3 + $0xc48] sm:$0xff] }
 0x77e   :  { %3646 = vmatprep.subr.mxu1 %v3160_v63  ;;  %3414 = vmatprep.mubr.f32.mxu1 %v7400_v40  ;;  %v3144_v63 = vld [vmem:[#allocation3 + $0xa88] sm:$0xff] }
 0x77f   :  { %3647 = vmatpush2.msra.mxu1 %v3159_v45  ;;  %3784 = vmatpush1.msra.mxu0 %v3207_v24  ;;  %v8585_v45 = vld [vmem:[#allocation122_spill] sm:$0xff]  ;;  %v3143_v24 = vld [vmem:[#allocation3 + $0xa80] sm:$0xff] }
 0x780   :  { %3415 = vmatmul.mubr.f32.gmra.mxu1 %v7395_v61  ;;  %3575 = vmatprep.mubr.f32.mxu0 %v8581_v21 }
 0x781   :  { %3648 = vmatprep.subr.mxu1 %v3156_v0  ;;  %3576 = vmatmul.mubr.f32.gmra.mxu0 %v8582_v22  ;;  %v8586_v0 = vld [vmem:[#allocation120_spill] sm:$0xff] }
 0x782   :  { %3649 = vmatpush2.msra.mxu1 %v3155_v17  ;;  %3785 = vmatprep.subr.mxu0 %v3204_v35  ;;  %v3199_v17 = vld [vmem:[#allocation3 + $0xc40] sm:$0xff]  ;;  %v8587_v35 = vld [vmem:[#allocation138_spill] sm:$0xff]  ;;  %v8589_v22 = vld [vmem:[#allocation124_spill] sm:$0xff] }
 0x783   :  { %3650 = vmatprep.subr.mxu1 %v3152_v8  ;;  %3420 = vmatprep.mubr.f32.mxu1 %v8583_v48  ;;  %v3140_v8 = vld [vmem:[#allocation3 + $0xa68] sm:$0xff] }
 0x784   :  { %3651 = vmatpush2.msra.mxu1 %v3151_v50  ;;  %3786 = vmatpush1.msra.mxu0 %v3203_v18  ;;  %v3139_v50 = vld [vmem:[#allocation3 + $0xa60] sm:$0xff]  ;;  %v8588_v18 = vld [vmem:[#allocation137_spill] sm:$0xff]  ;;  %v3196_v48 = vld [vmem:[#allocation3 + $0xc28] sm:$0xff] }
 0x785   :  { %3421 = vmatmul.mubr.f32.gmra.mxu1 %v8584_v11  ;;  %3581 = vmatprep.mubr.f32.mxu0 %v8585_v45  ;;  %v3136_v11 = vld [vmem:[#allocation3 + $0xa48] sm:$0xff]  ;;  %v8590_v45 = vld [vmem:[#allocation123_spill] sm:$0xff] }
 0x786   :  { %3652 = vmatprep.subr.mxu1 %v3148_v58  ;;  %3582 = vmatmul.mubr.f32.gmra.mxu0 %v8586_v0  ;;  %v3135_v58 = vld [vmem:[#allocation3 + $0xa40] sm:$0xff]  ;;  %v8593_v0 = vld [vmem:[#allocation126_spill] sm:$0xff] }
 0x787   :  { %3653 = vmatpush2.msra.mxu1 %v3147_v29  ;;  %3787 = vmatprep.subr.mxu0 %v3200_v52  ;;  %v3195_v29 = vld [vmem:[#allocation3 + $0xc20] sm:$0xff]  ;;  %v8591_v52 = vld [vmem:[#allocation140_spill] sm:$0xff] }
 0x788   :  { %3654 = vmatprep.subr.mxu1 %v3144_v63  ;;  %3426 = vmatprep.mubr.f32.mxu1 %v8587_v35  ;;  %v3132_v63 = vld [vmem:[#allocation3 + $0xa28] sm:$0xff] }
 0x789   :  { %3655 = vmatpush2.msra.mxu1 %v3143_v24  ;;  %3788 = vmatpush1.msra.mxu0 %v3199_v17  ;;  %v3131_v24 = vld [vmem:[#allocation3 + $0xa20] sm:$0xff]  ;;  %v3192_v35 = vld [vmem:[#allocation3 + $0xc08] sm:$0xff] }
 0x78a   :  { %3427 = vmatmul.mubr.f32.gmra.mxu1 %v8588_v18  ;;  %3587 = vmatprep.mubr.f32.mxu0 %v8589_v22  ;;  %v8592_v17 = vld [vmem:[#allocation139_spill] sm:$0xff]  ;;  %v3128_v18 = vld [vmem:[#allocation3 + $0xa08] sm:$0xff]  ;;  %v8594_v22 = vld [vmem:[#allocation125_spill] sm:$0xff] }
 0x78b   :  { %3656 = vmatprep.subr.mxu1 %v3140_v8  ;;  %3588 = vmatmul.mubr.f32.gmra.mxu0 %v8590_v45  ;;  %v3127_v8 = vld [vmem:[#allocation3 + $0xa00] sm:$0xff]  ;;  %v8597_v45 = vmov 0.0  }
 0x78c   :  { %3657 = vmatpush2.msra.mxu1 %v3139_v50  ;;  %3789 = vmatprep.subr.mxu0 %v3196_v48  ;;  %v3191_v50 = vld [vmem:[#allocation3 + $0xc00] sm:$0xff]  ;;  %v2870_v48 = vld [vmem:[#allocation3 + $0x1f8] sm:$0xff] }
 0x78d   :  { %3658 = vmatprep.subr.mxu1 %v3136_v11  ;;  %3432 = vmatprep.mubr.f32.mxu1 %v8591_v52  ;;  %v8595_v11 = vld [vmem:[#allocation101_spill] sm:$0xff]  ;;  %v2866_v52 = vld [vmem:[#allocation3 + $0x1d8] sm:$0xff] }
 0x78e   :  { %3659 = vmatpush2.msra.mxu1 %v3135_v58  ;;  %3790 = vmatpush1.msra.mxu0 %v3195_v29  ;;  %v2869_v58 = vld [vmem:[#allocation3 + $0x1f0] sm:$0xff]  ;;  %v8596_v29 = vld [vmem:[#allocation99_spill] sm:$0xff] }
 0x78f   :  { %3433 = vmatmul.mubr.f32.gmra.mxu1 %v8592_v17  ;;  %3593 = vmatprep.mubr.f32.mxu0 %v8593_v0  ;;  %v2998_v17 = vld [vmem:[#allocation3 + $0x5f8] sm:$0xff]  ;;  %v8598_v0 = vld [vmem:[#allocation96_spill] sm:$0xff] }
 0x790   :  { %3660 = vmatprep.subr.mxu1 %v3132_v63  ;;  %3594 = vmatmul.mubr.f32.gmra.mxu0 %v8594_v22  ;;  %v2997_v63 = vld [vmem:[#allocation3 + $0x5f0] sm:$0xff]  ;;  %v2858_v22 = vld [vmem:[#allocation3 + $0x198] sm:$0xff] }
 0x791   :  { %3661 = vmatpush2.msra.mxu1 %v3131_v24  ;;  %3791 = vmatprep.subr.mxu0 %v3192_v35  ;;  %v2865_v24 = vld [vmem:[#allocation3 + $0x1d0] sm:$0xff] }
 0x792   :  { %3662 = vmatprep.subr.mxu1 %v3128_v18  ;;  %3664 = vmatprep.mubr.f32.mxu1 %v8595_v11  ;;  %v2994_v18 = vld [vmem:[#allocation3 + $0x5d8] sm:$0xff]  ;;  %v8599_v35 = vld [vmem:[#allocation105_spill] sm:$0xff]  ;;  %v8600_v11 = vld [vmem:[#allocation103_spill] sm:$0xff] }
 0x793   :  { %3663 = vmatpush2.msra.mxu1 %v3127_v8  ;;  %3792 = vmatpush1.msra.mxu0 %v3191_v50  ;;  %v2862_v8 = vld [vmem:[#allocation3 + $0x1b8] sm:$0xff]  ;;  %v2993_v50 = vld [vmem:[#allocation3 + $0x5d0] sm:$0xff] }
 0x794   :  { %3665 = vmatmul.mubr.f32.vlgmr.msra.gmra.mxu1 %v8596_v29  ;;  %3825 = vmatprep.mubr.f32.mxu0 %v8597_v45  ;;  %v2861_v29 = vld [vmem:[#allocation3 + $0x1b0] sm:$0xff] }
 0x795   :  { %3922 = vmatprep.subr.mxu1 %v2870_v48  ;;  %3826 = vmatmul.mubr.f32.vlgmr.msra.gmra.mxu0 %v8598_v0  ;;  %v2990_v48 = vld [vmem:[#allocation3 + $0x5b8] sm:$0xff]  ;;  %v8601_v0 = vld [vmem:[#allocation95_spill] sm:$0xff] }
 0x796   :  { %3923 = vmatpush1.msra.mxu1 %v2869_v58  ;;  %4083 = vmatprep.subr.mxu0 %v2998_v17  ;;  %v2989_v58 = vld [vmem:[#allocation3 + $0x5b0] sm:$0xff]  ;;  %v2986_v17 = vld [vmem:[#allocation3 + $0x598] sm:$0xff] }
 0x797   :  { %3924 = vmatprep.subr.mxu1 %v2866_v52  ;;  %4084 = vmatpush1.msra.mxu0 %v2997_v63  ;;  %v2857_v52 = vld [vmem:[#allocation3 + $0x190] sm:$0xff]  ;;  %v8602_v63 = vld [vmem:[#allocation108_spill] sm:$0xff] }
 0x798   :  { %3670 = vmatprep.mubr.f32.mxu1 %v8599_v35  ;;  %3925 = vmatpush1.msra.mxu1 %v2865_v24  ;;  %v2854_v24 = vld [vmem:[#allocation3 + $0x178] sm:$0xff]  ;;  %v8603_v35 = vld [vmem:[#allocation107_spill] sm:$0xff] }
 0x799   :  { %4085 = vmatprep.subr.mxu0 %v2994_v18  ;;  %3671 = vmatmul.mubr.f32.gmra.mxu1 %v8600_v11  ;;  %v2985_v18 = vld [vmem:[#allocation3 + $0x590] sm:$0xff] }
 0x79a   :  { %3831 = vmatprep.mubr.f32.mxu0 %v8597_v45  ;;  %3926 = vmatprep.subr.mxu1 %v2862_v8  ;;  %v2853_v11 = vld [vmem:[#allocation3 + $0x170] sm:$0xff]  ;;  %v2982_v8 = vld [vmem:[#allocation3 + $0x578] sm:$0xff] }
 0x79b   :  { %4086 = vmatpush1.msra.mxu0 %v2993_v50  ;;  %3927 = vmatpush1.msra.mxu1 %v2861_v29  ;;  %v2850_v50 = vld [vmem:[#allocation3 + $0x158] sm:$0xff]  ;;  %v2981_v29 = vld [vmem:[#allocation3 + $0x570] sm:$0xff] }
 0x79c   :  { %3832 = vmatmul.mubr.f32.gmra.mxu0 %v8601_v0  ;;  %4087 = vmatprep.subr.mxu0 %v2990_v48  ;;  %v8604_v0 = vld [vmem:[#allocation98_spill] sm:$0xff] }
 0x79d   :  { %3928 = vmatprep.subr.mxu1 %v2858_v22  ;;  %4088 = vmatpush1.msra.mxu0 %v2989_v58  ;;  %v2849_v22 = vld [vmem:[#allocation3 + $0x150] sm:$0xff]  ;;  %v2978_v48 = vld [vmem:[#allocation3 + $0x558] sm:$0xff] }
 0x79e   :  { %3676 = vmatprep.mubr.f32.mxu1 %v8602_v63  ;;  %3929 = vmatpush1.msra.mxu1 %v2857_v52  ;;  %v8605_v58 = vld [vmem:[#allocation110_spill] sm:$0xff]  ;;  %v8606_v63 = vld [vmem:[#allocation109_spill] sm:$0xff] }
 0x79f   :  { %4089 = vmatprep.subr.mxu0 %v2986_v17  ;;  %3677 = vmatmul.mubr.f32.gmra.mxu1 %v8603_v35  ;;  %v2846_v52 = vld [vmem:[#allocation3 + $0x138] sm:$0xff]  ;;  %v2977_v17 = vld [vmem:[#allocation3 + $0x550] sm:$0xff] }
 0x7a0   :  { %3837 = vmatprep.mubr.f32.mxu0 %v8597_v45  ;;  %3930 = vmatprep.subr.mxu1 %v2854_v24  ;;  %v2845_v35 = vld [vmem:[#allocation3 + $0x130] sm:$0xff]  ;;  %v2974_v24 = vld [vmem:[#allocation3 + $0x538] sm:$0xff] }
 0x7a1   :  { %4090 = vmatpush1.msra.mxu0 %v2985_v18  ;;  %3931 = vmatpush1.msra.mxu1 %v2853_v11  ;;  %v2842_v18 = vld [vmem:[#allocation3 + $0x118] sm:$0xff]  ;;  %v2973_v11 = vld [vmem:[#allocation3 + $0x530] sm:$0xff] }
 0x7a2   :  { %3838 = vmatmul.mubr.f32.gmra.mxu0 %v8604_v0  ;;  %4091 = vmatprep.subr.mxu0 %v2982_v8  ;;  %v8607_v0 = vld [vmem:[#allocation97_spill] sm:$0xff] }
 0x7a3   :  { %3932 = vmatprep.subr.mxu1 %v2850_v50  ;;  %4092 = vmatpush1.msra.mxu0 %v2981_v29  ;;  %v2841_v8 = vld [vmem:[#allocation3 + $0x110] sm:$0xff]  ;;  %v2970_v50 = vld [vmem:[#allocation3 + $0x518] sm:$0xff]  ;;  %v8608_v29 = vld [vmem:[#allocation112_spill] sm:$0xff] }
 0x7a4   :  { %3682 = vmatprep.mubr.f32.mxu1 %v8605_v58  ;;  %3933 = vmatpush1.msra.mxu1 %v2849_v22  ;;  %v2838_v22 = vld [vmem:[#allocation3 + $0xf8] sm:$0xff]  ;;  %v8609_v58 = vld [vmem:[#allocation111_spill] sm:$0xff] }
 0x7a5   :  { %4093 = vmatprep.subr.mxu0 %v2978_v48  ;;  %3683 = vmatmul.mubr.f32.gmra.mxu1 %v8606_v63  ;;  %v2969_v48 = vld [vmem:[#allocation3 + $0x510] sm:$0xff] }
 0x7a6   :  { %3843 = vmatprep.mubr.f32.mxu0 %v8597_v45  ;;  %3934 = vmatprep.subr.mxu1 %v2846_v52  ;;  %v2837_v63 = vld [vmem:[#allocation3 + $0xf0] sm:$0xff]  ;;  %v2966_v52 = vld [vmem:[#allocation3 + $0x4f8] sm:$0xff] }
 0x7a7   :  { %4094 = vmatpush1.msra.mxu0 %v2977_v17  ;;  %3935 = vmatpush1.msra.mxu1 %v2845_v35  ;;  %v2834_v17 = vld [vmem:[#allocation3 + $0xd8] sm:$0xff]  ;;  %v2965_v35 = vld [vmem:[#allocation3 + $0x4f0] sm:$0xff] }
 0x7a8   :  { %3844 = vmatmul.mubr.f32.gmra.mxu0 %v8607_v0  ;;  %4095 = vmatprep.subr.mxu0 %v2974_v24  ;;  %v8610_v0 = vld [vmem:[#allocation102_spill] sm:$0xff]  ;;  %v2833_v24 = vld [vmem:[#allocation3 + $0xd0] sm:$0xff] }
 0x7a9   :  { %3936 = vmatprep.subr.mxu1 %v2842_v18  ;;  %4096 = vmatpush1.msra.mxu0 %v2973_v11  ;;  %v2962_v18 = vld [vmem:[#allocation3 + $0x4d8] sm:$0xff] }
 0x7aa   :  { %3688 = vmatprep.mubr.f32.mxu1 %v8608_v29  ;;  %3937 = vmatpush1.msra.mxu1 %v2841_v8  ;;  %v8611_v11 = vld [vmem:[#allocation114_spill] sm:$0xff]  ;;  %v8612_v29 = vld [vmem:[#allocation113_spill] sm:$0xff] }
 0x7ab   :  { %4097 = vmatprep.subr.mxu0 %v2970_v50  ;;  %3689 = vmatmul.mubr.f32.gmra.mxu1 %v8609_v58  ;;  %v2830_v8 = vld [vmem:[#allocation3 + $0xb8] sm:$0xff]  ;;  %v2961_v50 = vld [vmem:[#allocation3 + $0x4d0] sm:$0xff] }
 0x7ac   :  { %3849 = vmatprep.mubr.f32.mxu0 %v8597_v45  ;;  %3938 = vmatprep.subr.mxu1 %v2838_v22  ;;  %v2829_v58 = vld [vmem:[#allocation3 + $0xb0] sm:$0xff]  ;;  %v2958_v22 = vld [vmem:[#allocation3 + $0x4b8] sm:$0xff] }
 0x7ad   :  { %4098 = vmatpush1.msra.mxu0 %v2969_v48  ;;  %3939 = vmatpush1.msra.mxu1 %v2837_v63  ;;  %v2826_v48 = vld [vmem:[#allocation3 + $0x98] sm:$0xff]  ;;  %v2957_v63 = vld [vmem:[#allocation3 + $0x4b0] sm:$0xff] }
 0x7ae   :  { %3850 = vmatmul.mubr.f32.gmra.mxu0 %v8610_v0  ;;  %4099 = vmatprep.subr.mxu0 %v2966_v52  ;;  %v8613_v0 = vld [vmem:[#allocation100_spill] sm:$0xff]  ;;  %v2825_v52 = vld [vmem:[#allocation3 + $0x90] sm:$0xff] }
 0x7af   :  { %3940 = vmatprep.subr.mxu1 %v2834_v17  ;;  %4100 = vmatpush1.msra.mxu0 %v2965_v35  ;;  %v2954_v17 = vld [vmem:[#allocation3 + $0x498] sm:$0xff]  ;;  %v8614_v35 = vld [vmem:[#allocation117_spill] sm:$0xff] }
 0x7b0   :  { %3694 = vmatprep.mubr.f32.mxu1 %v8611_v11  ;;  %3941 = vmatpush1.msra.mxu1 %v2833_v24  ;;  %v2822_v24 = vld [vmem:[#allocation3 + $0x78] sm:$0xff]  ;;  %v8615_v11 = vld [vmem:[#allocation115_spill] sm:$0xff] }
 0x7b1   :  { %4101 = vmatprep.subr.mxu0 %v2962_v18  ;;  %3695 = vmatmul.mubr.f32.gmra.mxu1 %v8612_v29  ;;  %v2953_v18 = vld [vmem:[#allocation3 + $0x490] sm:$0xff] }
 0x7b2   :  { %3855 = vmatprep.mubr.f32.mxu0 %v8597_v45  ;;  %3942 = vmatprep.subr.mxu1 %v2830_v8  ;;  %v2821_v29 = vld [vmem:[#allocation3 + $0x70] sm:$0xff]  ;;  %v2950_v8 = vld [vmem:[#allocation3 + $0x478] sm:$0xff] }
 0x7b3   :  { %4102 = vmatpush1.msra.mxu0 %v2961_v50  ;;  %3943 = vmatpush1.msra.mxu1 %v2829_v58  ;;  %v2818_v50 = vld [vmem:[#allocation3 + $0x58] sm:$0xff]  ;;  %v2949_v58 = vld [vmem:[#allocation3 + $0x470] sm:$0xff] }
 0x7b4   :  { %3856 = vmatmul.mubr.f32.gmra.mxu0 %v8613_v0  ;;  %4103 = vmatprep.subr.mxu0 %v2958_v22  ;;  %v8616_v0 = vld [vmem:[#allocation106_spill] sm:$0xff]  ;;  %v2817_v22 = vld [vmem:[#allocation3 + $0x50] sm:$0xff] }
 0x7b5   :  { %3944 = vmatprep.subr.mxu1 %v2826_v48  ;;  %4104 = vmatpush1.msra.mxu0 %v2957_v63  ;;  %v2946_v48 = vld [vmem:[#allocation3 + $0x458] sm:$0xff]  ;;  %v8617_v63 = vld [vmem:[#allocation121_spill] sm:$0xff] }
 0x7b6   :  { %3700 = vmatprep.mubr.f32.mxu1 %v8614_v35  ;;  %3945 = vmatpush1.msra.mxu1 %v2825_v52  ;;  %v2814_v52 = vld [vmem:[#allocation3 + $0x38] sm:$0xff]  ;;  %v8618_v35 = vld [vmem:[#allocation119_spill] sm:$0xff] }
 0x7b7   :  { %4105 = vmatprep.subr.mxu0 %v2954_v17  ;;  %3701 = vmatmul.mubr.f32.gmra.mxu1 %v8615_v11  ;;  %v2945_v17 = vld [vmem:[#allocation3 + $0x450] sm:$0xff] }
 0x7b8   :  { %3861 = vmatprep.mubr.f32.mxu0 %v8597_v45  ;;  %3946 = vmatprep.subr.mxu1 %v2822_v24  ;;  %v2813_v11 = vld [vmem:[#allocation3 + $0x30] sm:$0xff]  ;;  %v2942_v24 = vld [vmem:[#allocation3 + $0x438] sm:$0xff] }
 0x7b9   :  { %4106 = vmatpush1.msra.mxu0 %v2953_v18  ;;  %3947 = vmatpush1.msra.mxu1 %v2821_v29  ;;  %v2810_v18 = vld [vmem:[#allocation3 + $0x18] sm:$0xff]  ;;  %v2941_v29 = vld [vmem:[#allocation3 + $0x430] sm:$0xff] }
 0x7ba   :  { %3862 = vmatmul.mubr.f32.gmra.mxu0 %v8616_v0  ;;  %4107 = vmatprep.subr.mxu0 %v2950_v8  ;;  %v8619_v0 = vld [vmem:[#allocation104_spill] sm:$0xff]  ;;  %v2809_v8 = vld [vmem:[#allocation3 + $0x10] sm:$0xff] }
 0x7bb   :  { %3948 = vmatprep.subr.mxu1 %v2818_v50  ;;  %4108 = vmatpush1.msra.mxu0 %v2949_v58  ;;  %v2938_v50 = vld [vmem:[#allocation3 + $0x418] sm:$0xff] }
 0x7bc   :  { %3706 = vmatprep.mubr.f32.mxu1 %v8617_v63  ;;  %3949 = vmatpush1.msra.mxu1 %v2817_v22  ;;  %v8620_v58 = vld [vmem:[#allocation142_spill] sm:$0xff]  ;;  %v8621_v63 = vld [vmem:[#allocation141_spill] sm:$0xff] }
 0x7bd   :  { %4109 = vmatprep.subr.mxu0 %v2946_v48  ;;  %3707 = vmatmul.mubr.f32.gmra.mxu1 %v8618_v35  ;;  %v2934_v22 = vld [vmem:[#allocation3 + $0x3f8] sm:$0xff]  ;;  %v2937_v48 = vld [vmem:[#allocation3 + $0x410] sm:$0xff] }
 0x7be   :  { %3867 = vmatprep.mubr.f32.mxu0 %v8597_v45  ;;  %3950 = vmatprep.subr.mxu1 %v2814_v52  ;;  %v2933_v35 = vld [vmem:[#allocation3 + $0x3f0] sm:$0xff]  ;;  %v3062_v52 = vld [vmem:[#allocation3 + $0x7f8] sm:$0xff] }
 0x7bf   :  { %4110 = vmatpush1.msra.mxu0 %v2945_v17  ;;  %3951 = vmatpush1.msra.mxu1 %v2813_v11  ;;  %v2930_v17 = vld [vmem:[#allocation3 + $0x3d8] sm:$0xff]  ;;  %v3061_v11 = vld [vmem:[#allocation3 + $0x7f0] sm:$0xff] }
 0x7c0   :  { %3868 = vmatmul.mubr.f32.gmra.mxu0 %v8619_v0  ;;  %4111 = vmatprep.subr.mxu0 %v2942_v24  ;;  %v8622_v0 = vld [vmem:[#allocation128_spill] sm:$0xff]  ;;  %v2929_v24 = vld [vmem:[#allocation3 + $0x3d0] sm:$0xff] }
 0x7c1   :  { %3952 = vmatprep.subr.mxu1 %v2810_v18  ;;  %4112 = vmatpush1.msra.mxu0 %v2941_v29  ;;  %v3058_v18 = vld [vmem:[#allocation3 + $0x7d8] sm:$0xff]  ;;  %v8623_v29 = vld [vmem:[#allocation144_spill] sm:$0xff] }
 0x7c2   :  { %3712 = vmatprep.mubr.f32.mxu1 %v8620_v58  ;;  %3953 = vmatpush1.msra.mxu1 %v2809_v8  ;;  %v2926_v8 = vld [vmem:[#allocation3 + $0x3b8] sm:$0xff]  ;;  %v8624_v58 = vld [vmem:[#allocation143_spill] sm:$0xff] }
 0x7c3   :  { %4113 = vmatprep.subr.mxu0 %v2938_v50  ;;  %3713 = vmatmul.mubr.f32.gmra.mxu1 %v8621_v63  ;;  %v3057_v50 = vld [vmem:[#allocation3 + $0x7d0] sm:$0xff] }
 0x7c4   :  { %3873 = vmatprep.mubr.f32.mxu0 %v8597_v45  ;;  %3954 = vmatprep.subr.mxu1 %v2934_v22  ;;  %v2925_v63 = vld [vmem:[#allocation3 + $0x3b0] sm:$0xff]  ;;  %v3054_v22 = vld [vmem:[#allocation3 + $0x7b8] sm:$0xff] }
 0x7c5   :  { %4114 = vmatpush1.msra.mxu0 %v2937_v48  ;;  %3955 = vmatpush2.msra.mxu1 %v2933_v35  ;;  %v2922_v48 = vld [vmem:[#allocation3 + $0x398] sm:$0xff]  ;;  %v3053_v35 = vld [vmem:[#allocation3 + $0x7b0] sm:$0xff] }
 0x7c6   :  { %3874 = vmatmul.mubr.f32.gmra.mxu0 %v8622_v0  ;;  %4115 = vmatprep.subr.mxu0 %v3062_v52  ;;  %v8625_v0 = vld [vmem:[#allocation127_spill] sm:$0xff]  ;;  %v2921_v52 = vld [vmem:[#allocation3 + $0x390] sm:$0xff] }
 0x7c7   :  { %3956 = vmatprep.subr.mxu1 %v2930_v17  ;;  %4116 = vmatpush2.msra.mxu0 %v3061_v11  ;;  %v3050_v17 = vld [vmem:[#allocation3 + $0x798] sm:$0xff] }
 0x7c8   :  { %3718 = vmatprep.mubr.f32.mxu1 %v8623_v29  ;;  %3957 = vmatpush2.msra.mxu1 %v2929_v24  ;;  %v8626_v11 = vld [vmem:[#allocation146_spill] sm:$0xff]  ;;  %v8627_v29 = vld [vmem:[#allocation145_spill] sm:$0xff] }
 0x7c9   :  { %4117 = vmatprep.subr.mxu0 %v3058_v18  ;;  %3719 = vmatmul.mubr.f32.gmra.mxu1 %v8624_v58  ;;  %v2918_v24 = vld [vmem:[#allocation3 + $0x378] sm:$0xff]  ;;  %v3049_v18 = vld [vmem:[#allocation3 + $0x790] sm:$0xff] }
 0x7ca   :  { %3879 = vmatprep.mubr.f32.mxu0 %v8597_v45  ;;  %3958 = vmatprep.subr.mxu1 %v2926_v8  ;;  %v2917_v58 = vld [vmem:[#allocation3 + $0x370] sm:$0xff]  ;;  %v3046_v8 = vld [vmem:[#allocation3 + $0x778] sm:$0xff] }
 0x7cb   :  { %4118 = vmatpush2.msra.mxu0 %v3057_v50  ;;  %3959 = vmatpush2.msra.mxu1 %v2925_v63  ;;  %v2914_v50 = vld [vmem:[#allocation3 + $0x358] sm:$0xff]  ;;  %v3045_v63 = vld [vmem:[#allocation3 + $0x770] sm:$0xff] }
 0x7cc   :  { %3880 = vmatmul.mubr.f32.gmra.mxu0 %v8625_v0  ;;  %4119 = vmatprep.subr.mxu0 %v3054_v22  ;;  %v8628_v0 = vld [vmem:[#allocation130_spill] sm:$0xff]  ;;  %v2913_v22 = vld [vmem:[#allocation3 + $0x350] sm:$0xff] }
 0x7cd   :  { %3960 = vmatprep.subr.mxu1 %v2922_v48  ;;  %4120 = vmatpush2.msra.mxu0 %v3053_v35  ;;  %v3042_v48 = vld [vmem:[#allocation3 + $0x758] sm:$0xff]  ;;  %v8629_v35 = vld [vmem:[#allocation148_spill] sm:$0xff] }
 0x7ce   :  { %3724 = vmatprep.mubr.f32.mxu1 %v8626_v11  ;;  %3961 = vmatpush2.msra.mxu1 %v2921_v52  ;;  %v2910_v52 = vld [vmem:[#allocation3 + $0x338] sm:$0xff]  ;;  %v8630_v11 = vld [vmem:[#allocation147_spill] sm:$0xff] }
 0x7cf   :  { %4121 = vmatprep.subr.mxu0 %v3050_v17  ;;  %3725 = vmatmul.mubr.f32.gmra.mxu1 %v8627_v29  ;;  %v3041_v17 = vld [vmem:[#allocation3 + $0x750] sm:$0xff] }
 0x7d0   :  { %3885 = vmatprep.mubr.f32.mxu0 %v8597_v45  ;;  %3962 = vmatprep.subr.mxu1 %v2918_v24  ;;  %v2909_v29 = vld [vmem:[#allocation3 + $0x330] sm:$0xff]  ;;  %v3038_v24 = vld [vmem:[#allocation3 + $0x738] sm:$0xff] }
 0x7d1   :  { %4122 = vmatpush2.msra.mxu0 %v3049_v18  ;;  %3963 = vmatpush2.msra.mxu1 %v2917_v58  ;;  %v2906_v18 = vld [vmem:[#allocation3 + $0x318] sm:$0xff]  ;;  %v3037_v58 = vld [vmem:[#allocation3 + $0x730] sm:$0xff] }
 0x7d2   :  { %3886 = vmatmul.mubr.f32.gmra.mxu0 %v8628_v0  ;;  %4123 = vmatprep.subr.mxu0 %v3046_v8  ;;  %v8631_v0 = vld [vmem:[#allocation129_spill] sm:$0xff] }
 0x7d3   :  { %3964 = vmatprep.subr.mxu1 %v2914_v50  ;;  %4124 = vmatpush2.msra.mxu0 %v3045_v63  ;;  %v2905_v8 = vld [vmem:[#allocation3 + $0x310] sm:$0xff]  ;;  %v3034_v50 = vld [vmem:[#allocation3 + $0x718] sm:$0xff] }
 0x7d4   :  { %3730 = vmatprep.mubr.f32.mxu1 %v8629_v35  ;;  %3965 = vmatpush2.msra.mxu1 %v2913_v22  ;;  %v8632_v63 = vld [vmem:[#allocation150_spill] sm:$0xff]  ;;  %v8633_v35 = vld [vmem:[#allocation149_spill] sm:$0xff] }
 0x7d5   :  { %4125 = vmatprep.subr.mxu0 %v3042_v48  ;;  %3731 = vmatmul.mubr.f32.gmra.mxu1 %v8630_v11  ;;  %v2902_v22 = vld [vmem:[#allocation3 + $0x2f8] sm:$0xff]  ;;  %v3033_v48 = vld [vmem:[#allocation3 + $0x710] sm:$0xff] }
 0x7d6   :  { %3891 = vmatprep.mubr.f32.mxu0 %v8597_v45  ;;  %3966 = vmatprep.subr.mxu1 %v2910_v52  ;;  %v2901_v11 = vld [vmem:[#allocation3 + $0x2f0] sm:$0xff]  ;;  %v3030_v52 = vld [vmem:[#allocation3 + $0x6f8] sm:$0xff] }
 0x7d7   :  { %4126 = vmatpush2.msra.mxu0 %v3041_v17  ;;  %3967 = vmatpush2.msra.mxu1 %v2909_v29  ;;  %v2898_v17 = vld [vmem:[#allocation3 + $0x2d8] sm:$0xff]  ;;  %v3029_v29 = vld [vmem:[#allocation3 + $0x6f0] sm:$0xff] }
 0x7d8   :  { %3892 = vmatmul.mubr.f32.gmra.mxu0 %v8631_v0  ;;  %4127 = vmatprep.subr.mxu0 %v3038_v24  ;;  %v8634_v0 = vld [vmem:[#allocation132_spill] sm:$0xff]  ;;  %v2897_v24 = vld [vmem:[#allocation3 + $0x2d0] sm:$0xff] }
 0x7d9   :  { %3968 = vmatprep.subr.mxu1 %v2906_v18  ;;  %4128 = vmatpush2.msra.mxu0 %v3037_v58  ;;  %v3026_v18 = vld [vmem:[#allocation3 + $0x6d8] sm:$0xff]  ;;  %v8635_v58 = vld [vmem:[#allocation152_spill] sm:$0xff] }
 0x7da   :  { %3736 = vmatprep.mubr.f32.mxu1 %v8632_v63  ;;  %3969 = vmatpush2.msra.mxu1 %v2905_v8  ;;  %v2894_v8 = vld [vmem:[#allocation3 + $0x2b8] sm:$0xff]  ;;  %v8636_v63 = vld [vmem:[#allocation151_spill] sm:$0xff] }
 0x7db   :  { %4129 = vmatprep.subr.mxu0 %v3034_v50  ;;  %3737 = vmatmul.mubr.f32.gmra.mxu1 %v8633_v35  ;;  %v3025_v50 = vld [vmem:[#allocation3 + $0x6d0] sm:$0xff] }
 0x7dc   :  { %3897 = vmatprep.mubr.f32.mxu0 %v8597_v45  ;;  %3970 = vmatprep.subr.mxu1 %v2902_v22  ;;  %v2893_v35 = vld [vmem:[#allocation3 + $0x2b0] sm:$0xff]  ;;  %v3022_v22 = vld [vmem:[#allocation3 + $0x6b8] sm:$0xff] }
 0x7dd   :  { %4130 = vmatpush2.msra.mxu0 %v3033_v48  ;;  %3971 = vmatpush2.msra.mxu1 %v2901_v11  ;;  %v2890_v48 = vld [vmem:[#allocation3 + $0x298] sm:$0xff]  ;;  %v3021_v11 = vld [vmem:[#allocation3 + $0x6b0] sm:$0xff] }
 0x7de   :  { %3898 = vmatmul.mubr.f32.gmra.mxu0 %v8634_v0  ;;  %4131 = vmatprep.subr.mxu0 %v3030_v52  ;;  %v8637_v0 = vld [vmem:[#allocation131_spill] sm:$0xff]  ;;  %v2889_v52 = vld [vmem:[#allocation3 + $0x290] sm:$0xff] }
 0x7df   :  { %3972 = vmatprep.subr.mxu1 %v2898_v17  ;;  %4132 = vmatpush2.msra.mxu0 %v3029_v29  ;;  %v3018_v17 = vld [vmem:[#allocation3 + $0x698] sm:$0xff] }
 0x7e0   :  { %3742 = vmatprep.mubr.f32.mxu1 %v8635_v58  ;;  %3973 = vmatpush2.msra.mxu1 %v2897_v24  ;;  %v8638_v29 = vld [vmem:[#allocation154_spill] sm:$0xff]  ;;  %v8639_v58 = vld [vmem:[#allocation153_spill] sm:$0xff] }
 0x7e1   :  { %4133 = vmatprep.subr.mxu0 %v3026_v18  ;;  %3743 = vmatmul.mubr.f32.gmra.mxu1 %v8636_v63  ;;  %v2886_v24 = vld [vmem:[#allocation3 + $0x278] sm:$0xff]  ;;  %v3017_v18 = vld [vmem:[#allocation3 + $0x690] sm:$0xff] }
 0x7e2   :  { %3903 = vmatprep.mubr.f32.mxu0 %v8597_v45  ;;  %3974 = vmatprep.subr.mxu1 %v2894_v8  ;;  %v2885_v63 = vld [vmem:[#allocation3 + $0x270] sm:$0xff]  ;;  %v3014_v8 = vld [vmem:[#allocation3 + $0x678] sm:$0xff] }
 0x7e3   :  { %4134 = vmatpush2.msra.mxu0 %v3025_v50  ;;  %3975 = vmatpush2.msra.mxu1 %v2893_v35  ;;  %v2882_v50 = vld [vmem:[#allocation3 + $0x258] sm:$0xff]  ;;  %v3013_v35 = vld [vmem:[#allocation3 + $0x670] sm:$0xff] }
 0x7e4   :  { %3904 = vmatmul.mubr.f32.gmra.mxu0 %v8637_v0  ;;  %4135 = vmatprep.subr.mxu0 %v3022_v22  ;;  %v8640_v0 = vld [vmem:[#allocation136_spill] sm:$0xff]  ;;  %v2881_v22 = vld [vmem:[#allocation3 + $0x250] sm:$0xff] }
 0x7e5   :  { %3976 = vmatprep.subr.mxu1 %v2890_v48  ;;  %4136 = vmatpush2.msra.mxu0 %v3021_v11  ;;  %v3010_v48 = vld [vmem:[#allocation3 + $0x658] sm:$0xff]  ;;  %v8641_v11 = vld [vmem:[#allocation156_spill] sm:$0xff] }
 0x7e6   :  { %3748 = vmatprep.mubr.f32.mxu1 %v8638_v29  ;;  %3977 = vmatpush2.msra.mxu1 %v2889_v52  ;;  %v2878_v52 = vld [vmem:[#allocation3 + $0x238] sm:$0xff]  ;;  %v8642_v29 = vld [vmem:[#allocation155_spill] sm:$0xff] }
 0x7e7   :  { %4137 = vmatprep.subr.mxu0 %v3018_v17  ;;  %3749 = vmatmul.mubr.f32.gmra.mxu1 %v8639_v58  ;;  %v3009_v17 = vld [vmem:[#allocation3 + $0x650] sm:$0xff] }
 0x7e8   :  { %3909 = vmatprep.mubr.f32.mxu0 %v8597_v45  ;;  %3978 = vmatprep.subr.mxu1 %v2886_v24  ;;  %v2877_v58 = vld [vmem:[#allocation3 + $0x230] sm:$0xff]  ;;  %v3006_v24 = vld [vmem:[#allocation3 + $0x638] sm:$0xff] }
 0x7e9   :  { %4138 = vmatpush2.msra.mxu0 %v3017_v18  ;;  %3979 = vmatpush2.msra.mxu1 %v2885_v63  ;;  %v2874_v18 = vld [vmem:[#allocation3 + $0x218] sm:$0xff]  ;;  %v3005_v63 = vld [vmem:[#allocation3 + $0x630] sm:$0xff] }
 0x7ea   :  { %3910 = vmatmul.mubr.f32.gmra.mxu0 %v8640_v0  ;;  %4139 = vmatprep.subr.mxu0 %v3014_v8  ;;  %v2873_v0 = vld [vmem:[#allocation3 + $0x210] sm:$0xff]  ;;  %v8643_v8 = vld [vmem:[#allocation134_spill] sm:$0xff] }
 0x7eb   :  { %3980 = vmatprep.subr.mxu1 %v2882_v50  ;;  %4140 = vmatpush2.msra.mxu0 %v3013_v35  ;;  %v3002_v50 = vld [vmem:[#allocation3 + $0x618] sm:$0xff]  ;;  %v3001_v35 = vld [vmem:[#allocation3 + $0x610] sm:$0xff] }
 0x7ec   :  { %3754 = vmatprep.mubr.f32.mxu1 %v8641_v11  ;;  %3981 = vmatpush2.msra.mxu1 %v2881_v22  ;;  %v3126_v22 = vld [vmem:[#allocation3 + $0x9f8] sm:$0xff] }
 0x7ed   :  { %4141 = vmatprep.subr.mxu0 %v3010_v48  ;;  %3755 = vmatmul.mubr.f32.gmra.mxu1 %v8642_v29  ;;  %v8644_v48 = vld [vmem:[#allocation93_spill] sm:$0xff]  ;;  %v8645_v11 = vld [vmem:[#allocation94_spill] sm:$0xff] }
 0x7ee   :  { %3915 = vmatprep.mubr.f32.mxu0 %v8597_v45  ;;  %3982 = vmatprep.subr.mxu1 %v2878_v52  ;;  %v3125_v29 = vld [vmem:[#allocation3 + $0x9f0] sm:$0xff]  ;;  %v3122_v52 = vld [vmem:[#allocation3 + $0x9d8] sm:$0xff] }
 0x7ef   :  { %4142 = vmatpush2.msra.mxu0 %v3009_v17  ;;  %3983 = vmatpush2.msra.mxu1 %v2877_v58  ;;  %v3254_v17 = vld [vmem:[#allocation3 + $0xdf8] sm:$0xff]  ;;  %v3121_v58 = vld [vmem:[#allocation3 + $0x9d0] sm:$0xff] }
 0x7f0   :  { %3916 = vmatmul.mubr.f32.gmra.mxu0 %v8643_v8  ;;  %4143 = vmatprep.subr.mxu0 %v3006_v24  ;;  %v3253_v24 = vld [vmem:[#allocation3 + $0xdf0] sm:$0xff] }
 0x7f1   :  { %3984 = vmatprep.subr.mxu1 %v2874_v18  ;;  %4144 = vmatpush2.msra.mxu0 %v3005_v63  ;;  %v3117_v18 = vld [vmem:[#allocation3 + $0x9b0] sm:$0xff]  ;;  %v3250_v63 = vld [vmem:[#allocation3 + $0xdd8] sm:$0xff] }
 0x7f2   :  { %3985 = vmatpush2.msra.mxu1 %v2873_v0  ;;  %3986 = vmatprep.mubr.f32.mxu1 %v8644_v48  ;;  %v3118_v0 = vld [vmem:[#allocation3 + $0x9b8] sm:$0xff] }
 0x7f3   :  { %4145 = vmatprep.subr.mxu0 %v3002_v50  ;;  %3987 = vmatmul.mubr.f32.vlgmr.msra.gmra.mxu1 %v7135_v39  ;;  %v3114_v39 = vld [vmem:[#allocation3 + $0x998] sm:$0xff] }
 0x7f4   :  { %4146 = vmatpush2.msra.mxu0 %v3001_v35  ;;  %4147 = vmatprep.mubr.f32.mxu0 %v8645_v11  ;;  %v3113_v11 = vld [vmem:[#allocation3 + $0x990] sm:$0xff]  ;;  %v3246_v50 = vld [vmem:[#allocation3 + $0xdb8] sm:$0xff] }
 0x7f5   :  { %4244 = vmatprep.subr.mxu1 %v3126_v22  ;;  %4148 = vmatmul.mubr.f32.vlgmr.msra.gmra.mxu0 %v7137_v2  ;;  %v3249_v2 = vld [vmem:[#allocation3 + $0xdd0] sm:$0xff] }
 0x7f6   :  { %4245 = vmatpush1.msra.mxu1 %v3125_v29  ;;  %4405 = vmatprep.subr.mxu0 %v3254_v17  ;;  %v3110_v29 = vld [vmem:[#allocation3 + $0x978] sm:$0xff]  ;;  %v3101_v22 = vld [vmem:[#allocation3 + $0x930] sm:$0xff] }
 0x7f7   :  { %4246 = vmatprep.subr.mxu1 %v3122_v52  ;;  %3992 = vmatprep.mubr.f32.mxu1 %v7154_v55  ;;  %v3109_v55 = vld [vmem:[#allocation3 + $0x970] sm:$0xff]  ;;  %v3242_v52 = vld [vmem:[#allocation3 + $0xd98] sm:$0xff] }
 0x7f8   :  { %4247 = vmatpush1.msra.mxu1 %v3121_v58  ;;  %4406 = vmatpush1.msra.mxu0 %v3253_v24  ;;  %v7606_v35 = vld [vmem:[#allocation11 + $0x7] ss:$8 sm:$0xf] }
 0x7f9   :  { %3993 = vmatmul.mubr.f32.gmra.mxu1 %v7147_v57  ;;  %4153 = vmatprep.mubr.f32.mxu0 %v7156_v16  ;;  %v3106_v57 = vld [vmem:[#allocation3 + $0x958] sm:$0xff]  ;;  %v3105_v16 = vld [vmem:[#allocation3 + $0x950] sm:$0xff] }
 0x7fa   :  { %4248 = vmatprep.subr.mxu1 %v3118_v0  ;;  %4154 = vmatmul.mubr.f32.gmra.mxu0 %v7149_v51  ;;  %v3245_v51 = vld [vmem:[#allocation3 + $0xdb0] sm:$0xff]  ;;  %v3094_v58 = vld [vmem:[#allocation3 + $0x8f8] sm:$0xff] }
 0x7fb   :  { %4249 = vmatpush1.msra.mxu1 %v3117_v18  ;;  %4407 = vmatprep.subr.mxu0 %v3250_v63  ;;  %v3241_v17 = vld [vmem:[#allocation3 + $0xd90] sm:$0xff] }
 0x7fc   :  { %4250 = vmatprep.subr.mxu1 %v3114_v39  ;;  %3998 = vmatprep.mubr.f32.mxu1 %v7169_v23  ;;  %v3102_v23 = vld [vmem:[#allocation3 + $0x938] sm:$0xff] }
 0x7fd   :  { %4251 = vmatpush1.msra.mxu1 %v3113_v11  ;;  %4408 = vmatpush1.msra.mxu0 %v3249_v2  ;;  %v3089_v11 = vld [vmem:[#allocation3 + $0x8d0] sm:$0xff] }
 0x7fe   :  { %3999 = vmatmul.mubr.f32.gmra.mxu1 %v7160_v7  ;;  %4159 = vmatprep.mubr.f32.mxu0 %v7171_v33  ;;  %v8646_v7 = vld [vmem:[#allocation91_spill] sm:$0xff]  ;;  %v3098_v33 = vld [vmem:[#allocation3 + $0x918] sm:$0xff] }
 0x7ff   :  { %4252 = vmatprep.subr.mxu1 %v3110_v29  ;;  %4160 = vmatmul.mubr.f32.gmra.mxu0 %v7162_v49  ;;  %v7612_v48 = vrot.slane %v7606_v35, %v8646_v7  ;;  %v3097_v49 = vld [vmem:[#allocation3 + $0x910] sm:$0xff] }
 0x800   :  { %4253 = vmatpush1.msra.mxu1 %v3109_v55  ;;  %4409 = vmatprep.subr.mxu0 %v3246_v50  ;;  %v3085_v50 = vld [vmem:[#allocation3 + $0x8b0] sm:$0xff] }
 0x801   :  { %4254 = vmatprep.subr.mxu1 %v3106_v57  ;;  %4004 = vmatprep.mubr.f32.mxu1 %v7182_v19 }
 0x802   :  { %4255 = vmatpush1.msra.mxu1 %v3105_v16  ;;  %4410 = vmatpush1.msra.mxu0 %v3245_v51  ;;  %v3234_v16 = vld [vmem:[#allocation3 + $0xd58] sm:$0xff] }
 0x803   :  { %4005 = vmatmul.mubr.f32.gmra.mxu1 %v7175_v41  ;;  %4165 = vmatprep.mubr.f32.mxu0 %v7184_v3  ;;  %v3093_v41 = vld [vmem:[#allocation3 + $0x8f0] sm:$0xff]  ;;  %v3090_v3 = vld [vmem:[#allocation3 + $0x8d8] sm:$0xff] }
 0x804   :  { %4256 = vmatprep.subr.mxu1 %v3102_v23  ;;  %4166 = vmatmul.mubr.f32.gmra.mxu0 %v7177_v42  ;;  %v3344_v19 = vpop.f32.mrf.mxu1  ;;  %v3238_v42 = vld [vmem:[#allocation3 + $0xd78] sm:$0xff]  ;;  %v3081_v23 = vld [vmem:[#allocation3 + $0x890] sm:$0xff] }
 0x805   :  { %4257 = vmatpush1.msra.mxu1 %v3101_v22  ;;  %4411 = vmatprep.subr.mxu0 %v3242_v52  ;;  %v3345_v24 = vadd.f32 %v3344_v19, %v7612_v48  ;;  %v3505_v0 = vpop.f32.mrf.mxu0 }
 0x806   :  { %4258 = vmatprep.subr.mxu1 %v3098_v33  ;;  %4010 = vmatprep.mubr.f32.mxu1 %v7198_v36  ;;  %v7619_v18 = vpop.f32.mrf.mxu1  ;;  %v3237_v36 = vld [vmem:[#allocation3 + $0xd70] sm:$0xff]  ;;  %v3078_v33 = vld [vmem:[#allocation3 + $0x878] sm:$0xff] }
 0x807   :  { %4259 = vmatpush1.msra.mxu1 %v3097_v49  ;;  %4412 = vmatpush1.msra.mxu0 %v3241_v17  ;;  %v7622_v39 = vadd.f32 %v3505_v0, %v3345_v24  ;;  %v7624_v63 = vpop.f32.mrf.mxu0  ;;  %v3077_v49 = vld [vmem:[#allocation3 + $0x870] sm:$0xff]  ;;  %v3230_v17 = vld [vmem:[#allocation3 + $0xd38] sm:$0xff] }
 0x808   :  { %4011 = vmatmul.mubr.f32.gmra.mxu1 %v7189_v5  ;;  %4171 = vmatprep.mubr.f32.mxu0 %v7200_v10  ;;  %v3086_v5 = vld [vmem:[#allocation3 + $0x8b8] sm:$0xff] }
 0x809   :  { %4260 = vmatprep.subr.mxu1 %v3094_v58  ;;  %v3350_v2 = vpop.f32.mrf.mxu1  ;;  %4172 = vmatmul.mubr.f32.gmra.mxu0 %v7191_v20  ;;  %v3082_v20 = vld [vmem:[#allocation3 + $0x898] sm:$0xff]  ;;  %v3073_v58 = vld [vmem:[#allocation3 + $0x850] sm:$0xff] }
 0x80a   :  { %4261 = vmatpush1.msra.mxu1 %v3093_v41  ;;  %v3351_v29 = vadd.f32 %v3350_v2, %v7612_v48  ;;  %4413 = vmatprep.subr.mxu0 %v3238_v42  ;;  %v3511_v55 = vpop.f32.mrf.mxu0  ;;  %v3070_v41 = vld [vmem:[#allocation3 + $0x838] sm:$0xff]  ;;  %v3069_v42 = vld [vmem:[#allocation3 + $0x830] sm:$0xff] }
 0x80b   :  { %4262 = vmatprep.subr.mxu1 %v3090_v3  ;;  %v7629_v57 = vpop.f32.mrf.mxu1  ;;  %4016 = vmatprep.mubr.f32.mxu1 %v7212_v43  ;;  %v3233_v43 = vld [vmem:[#allocation3 + $0xd50] sm:$0xff] }
 0x80c   :  { %4263 = vmatpush1.msra.mxu1 %v3089_v11  ;;  %v7632_v10 = vadd.f32 %v3511_v55, %v3351_v29  ;;  %4414 = vmatpush1.msra.mxu0 %v3237_v36  ;;  %v7635_v51 = vpop.f32.mrf.mxu0  ;;  %v3226_v11 = vld [vmem:[#allocation3 + $0xd18] sm:$0xff]  ;;  %v3065_v36 = vld [vmem:[#allocation3 + $0x810] sm:$0xff] }
 0x80d   :  { %4017 = vmatmul.mubr.f32.gmra.mxu1 %v7207_v25  ;;  %4177 = vmatprep.mubr.f32.mxu0 %v7215_v53  ;;  %v3190_v55 = vld [vmem:[#allocation3 + $0xbf8] sm:$0xff] }
 0x80e   :  { %4264 = vmatprep.subr.mxu1 %v3086_v5  ;;  %v3356_v22 = vpop.f32.mrf.mxu1  ;;  %4178 = vmatmul.mubr.f32.gmra.mxu0 %v7209_v1  ;;  %v3074_v1 = vld [vmem:[#allocation3 + $0x858] sm:$0xff] }
 0x80f   :  { %4265 = vmatpush1.msra.mxu1 %v3085_v50  ;;  %v3357_v7 = vadd.f32 %v3356_v22, %v7612_v48  ;;  %4415 = vmatprep.subr.mxu0 %v3234_v16  ;;  %v3517_v52 = vpop.f32.mrf.mxu0  ;;  %v3222_v16 = vld [vmem:[#allocation3 + $0xcf8] sm:$0xff]  ;;  %v3185_v22 = vld [vmem:[#allocation3 + $0xbd0] sm:$0xff] }
 0x810   :  { %4266 = vmatprep.subr.mxu1 %v3082_v20  ;;  %v7640_v25 = vpop.f32.mrf.mxu1  ;;  %4022 = vmatprep.mubr.f32.mxu1 %v7224_v26  ;;  %v3229_v26 = vld [vmem:[#allocation3 + $0xd30] sm:$0xff] }
 0x811   :  { %4267 = vmatpush1.msra.mxu1 %v3081_v23  ;;  %v7643_v53 = vadd.f32 %v3517_v52, %v3357_v7  ;;  %4416 = vmatpush1.msra.mxu0 %v3233_v43  ;;  %v7646_v19 = vpop.f32.mrf.mxu0  ;;  %v3189_v20 = vld [vmem:[#allocation3 + $0xbf0] sm:$0xff] }
 0x812   :  { %4023 = vmatmul.mubr.f32.gmra.mxu1 %v7218_v56  ;;  %4183 = vmatprep.mubr.f32.mxu0 %v7227_v38 }
 0x813   :  { %4268 = vmatprep.subr.mxu1 %v3078_v33  ;;  %v3362_v24 = vpop.f32.mrf.mxu1  ;;  %4184 = vmatmul.mubr.f32.gmra.mxu0 %v7221_v6  ;;  %v3066_v6 = vld [vmem:[#allocation3 + $0x818] sm:$0xff] }
 0x814   :  { %4269 = vmatpush1.msra.mxu1 %v3077_v49  ;;  %v3363_v0 = vadd.f32 %v3362_v24, %v7612_v48  ;;  %4417 = vmatprep.subr.mxu0 %v3230_v17  ;;  %v3523_v3 = vpop.f32.mrf.mxu0  ;;  %v3182_v33 = vld [vmem:[#allocation3 + $0xbb8] sm:$0xff]  ;;  %v3181_v49 = vld [vmem:[#allocation3 + $0xbb0] sm:$0xff] }
 0x815   :  { %4270 = vmatprep.subr.mxu1 %v3074_v1  ;;  %v7651_v56 = vpop.f32.mrf.mxu1  ;;  %4028 = vmatprep.mubr.f32.mxu1 %v7236_v59  ;;  %v3225_v59 = vld [vmem:[#allocation3 + $0xd10] sm:$0xff]  ;;  %v3218_v1 = vld [vmem:[#allocation3 + $0xcd8] sm:$0xff] }
 0x816   :  { %4271 = vmatpush1.msra.mxu1 %v3073_v58  ;;  %v7654_v38 = vadd.f32 %v3523_v3, %v3363_v0  ;;  %4418 = vmatpush1.msra.mxu0 %v3229_v26  ;;  %v7657_v2 = vpop.f32.mrf.mxu0  ;;  %v3177_v58 = vld [vmem:[#allocation3 + $0xb90] sm:$0xff]  ;;  %v3174_v0 = vld [vmem:[#allocation3 + $0xb78] sm:$0xff] }
 0x817   :  { %4029 = vmatmul.mubr.f32.gmra.mxu1 %v7230_v9  ;;  %4189 = vmatprep.mubr.f32.mxu0 %v7248_v60  ;;  %v3173_v3 = vld [vmem:[#allocation3 + $0xb70] sm:$0xff] }
 0x818   :  { %4272 = vmatprep.subr.mxu1 %v3070_v41  ;;  %v3368_v29 = vpop.f32.mrf.mxu1  ;;  %4190 = vmatmul.mubr.f32.gmra.mxu0 %v7242_v44  ;;  %v3186_v44 = vld [vmem:[#allocation3 + $0xbd8] sm:$0xff] }
 0x819   :  { %4273 = vmatpush1.msra.mxu1 %v3069_v42  ;;  %v3369_v5 = vadd.f32 %v3368_v29, %v7612_v48  ;;  %4419 = vmatprep.subr.mxu0 %v3226_v11  ;;  %v3529_v50 = vpop.f32.mrf.mxu0  ;;  %v3214_v42 = vld [vmem:[#allocation3 + $0xcb8] sm:$0xff]  ;;  %v3169_v11 = vld [vmem:[#allocation3 + $0xb50] sm:$0xff] }
 0x81a   :  { %4274 = vmatprep.subr.mxu1 %v3066_v6  ;;  %v7662_v9 = vpop.f32.mrf.mxu1  ;;  %4034 = vmatprep.mubr.f32.mxu1 %v7356_v32  ;;  %v3221_v32 = vld [vmem:[#allocation3 + $0xcf0] sm:$0xff] }
 0x81b   :  { %4275 = vmatpush1.msra.mxu1 %v3065_v36  ;;  %v7665_v60 = vadd.f32 %v3529_v50, %v3369_v5  ;;  %4420 = vmatpush1.msra.mxu0 %v3225_v59  ;;  %v7668_v23 = vpop.f32.mrf.mxu0  ;;  %v3166_v59 = vld [vmem:[#allocation3 + $0xb38] sm:$0xff] }
 0x81c   :  { %4035 = vmatmul.mubr.f32.gmra.mxu1 %v7350_v30  ;;  %4195 = vmatprep.mubr.f32.mxu0 %v7287_v31  ;;  %v3210_v50 = vld [vmem:[#allocation3 + $0xc98] sm:$0xff] }
 0x81d   :  { %4276 = vmatprep.subr.mxu1 %v3190_v55  ;;  %v3374_v43 = vpop.f32.mrf.mxu1  ;;  %4196 = vmatmul.mubr.f32.gmra.mxu0 %v7281_v15  ;;  %v3178_v15 = vld [vmem:[#allocation3 + $0xb98] sm:$0xff]  ;;  %v3165_v55 = vld [vmem:[#allocation3 + $0xb30] sm:$0xff] }
 0x81e   :  { %4277 = vmatpush2.msra.mxu1 %v3189_v20  ;;  %v3375_v7 = vadd.f32 %v3374_v43, %v7612_v48  ;;  %4421 = vmatprep.subr.mxu0 %v3222_v16  ;;  %v3535_v52 = vpop.f32.mrf.mxu0 }
 0x81f   :  { %4278 = vmatprep.subr.mxu1 %v3186_v44  ;;  %v7673_v30 = vpop.f32.mrf.mxu1  ;;  %4040 = vmatprep.mubr.f32.mxu1 %v7368_v46  ;;  %v3217_v46 = vld [vmem:[#allocation3 + $0xcd0] sm:$0xff] }
 0x820   :  { %4279 = vmatpush2.msra.mxu1 %v3185_v22  ;;  %v7676_v31 = vadd.f32 %v3535_v52, %v3375_v7  ;;  %4422 = vmatpush1.msra.mxu0 %v3221_v32  ;;  %v7679_v17 = vpop.f32.mrf.mxu0  ;;  %v3161_v44 = vld [vmem:[#allocation3 + $0xb10] sm:$0xff]  ;;  %v8647_v22 = vld [vmem:[#allocation92_spill] sm:$0xff] }
 0x821   :  { %4041 = vmatmul.mubr.f32.gmra.mxu1 %v7362_v34  ;;  %4201 = vmatprep.mubr.f32.mxu0 %v7299_v14  ;;  %v7707_v43 = vrot.slane %v7606_v35, %v8647_v22  ;;  %v3154_v35 = vld [vmem:[#allocation3 + $0xad8] sm:$0xff] }
 0x822   :  { %4280 = vmatprep.subr.mxu1 %v3182_v33  ;;  %v3380_v24 = vpop.f32.mrf.mxu1  ;;  %4202 = vmatmul.mubr.f32.gmra.mxu0 %v7293_v37  ;;  %v3170_v37 = vld [vmem:[#allocation3 + $0xb58] sm:$0xff] }
 0x823   :  { %4281 = vmatpush2.msra.mxu1 %v3181_v49  ;;  %v3381_v26 = vadd.f32 %v3380_v24, %v7612_v48  ;;  %4423 = vmatprep.subr.mxu0 %v3218_v1  ;;  %v3541_v41 = vpop.f32.mrf.mxu0  ;;  %v3206_v49 = vld [vmem:[#allocation3 + $0xc78] sm:$0xff]  ;;  %v3153_v1 = vld [vmem:[#allocation3 + $0xad0] sm:$0xff] }
 0x824   :  { %4282 = vmatprep.subr.mxu1 %v3178_v15  ;;  %v7684_v34 = vpop.f32.mrf.mxu1  ;;  %4046 = vmatprep.mubr.f32.mxu1 %v7380_v27  ;;  %v3213_v27 = vld [vmem:[#allocation3 + $0xcb0] sm:$0xff] }
 0x825   :  { %4283 = vmatpush2.msra.mxu1 %v3177_v58  ;;  %v7687_v14 = vadd.f32 %v3541_v41, %v3381_v26  ;;  %4424 = vmatpush1.msra.mxu0 %v3217_v46  ;;  %v7690_v6 = vpop.f32.mrf.mxu0  ;;  %v3205_v46 = vld [vmem:[#allocation3 + $0xc70] sm:$0xff] }
 0x826   :  { %4047 = vmatmul.mubr.f32.gmra.mxu1 %v7374_v54  ;;  %4207 = vmatprep.mubr.f32.mxu0 %v7311_v12 }
 0x827   :  { %4284 = vmatprep.subr.mxu1 %v3174_v0  ;;  %v3386_v36 = vpop.f32.mrf.mxu1  ;;  %4208 = vmatmul.mubr.f32.gmra.mxu0 %v7305_v13  ;;  %v3162_v13 = vld [vmem:[#allocation3 + $0xb18] sm:$0xff] }
 0x828   :  { %4285 = vmatpush2.msra.mxu1 %v3173_v3  ;;  %v3387_v29 = vadd.f32 %v3386_v36, %v7612_v48  ;;  %4425 = vmatprep.subr.mxu0 %v3214_v42  ;;  %v3547_v5 = vpop.f32.mrf.mxu0  ;;  %v3150_v0 = vld [vmem:[#allocation3 + $0xab8] sm:$0xff]  ;;  %v8649_v3 = vld [vmem:[#allocation135_spill] sm:$0xff] }
 0x829   :  { %4286 = vmatprep.subr.mxu1 %v3170_v37  ;;  %v7695_v54 = vpop.f32.mrf.mxu1  ;;  %4052 = vmatprep.mubr.f32.mxu1 %v7390_v62  ;;  %v3209_v62 = vld [vmem:[#allocation3 + $0xc90] sm:$0xff]  ;;  %v3146_v36 = vld [vmem:[#allocation3 + $0xa98] sm:$0xff] }
 0x82a   :  { %4287 = vmatpush2.msra.mxu1 %v3169_v11  ;;  %v7698_v12 = vadd.f32 %v3547_v5, %v3387_v29  ;;  %4426 = vmatpush1.msra.mxu0 %v3213_v27  ;;  %v7701_v20 = vpop.f32.mrf.mxu0  ;;  %v8650_v11 = vld [vmem:[#allocation133_spill] sm:$0xff]  ;;  %v3202_v27 = vld [vmem:[#allocation3 + $0xc58] sm:$0xff] }
 0x82b   :  { %4053 = vmatmul.mubr.f32.gmra.mxu1 %v7385_v4  ;;  %4213 = vmatprep.mubr.f32.mxu0 %v7323_v47  ;;  %v3158_v4 = vld [vmem:[#allocation3 + $0xaf8] sm:$0xff]  ;;  %v3157_v47 = vld [vmem:[#allocation3 + $0xaf0] sm:$0xff] }
 0x82c   :  { %4288 = vmatprep.subr.mxu1 %v3166_v59  ;;  %v3392_v16 = vpop.f32.mrf.mxu1  ;;  %4214 = vmatmul.mubr.f32.gmra.mxu0 %v7317_v28  ;;  %v8651_v59 = vld [vmem:[#allocation122_spill] sm:$0xff]  ;;  %v3145_v5 = vld [vmem:[#allocation3 + $0xa90] sm:$0xff] }
 0x82d   :  { %4289 = vmatpush2.msra.mxu1 %v3165_v55  ;;  %v3393_v32 = vadd.f32 %v3392_v16, %v7612_v48  ;;  %4427 = vmatprep.subr.mxu0 %v3210_v50  ;;  %v3553_v7 = vpop.f32.mrf.mxu0  ;;  %v8652_v50 = vld [vmem:[#allocation120_spill] sm:$0xff] }
 0x82e   :  { %4290 = vmatprep.subr.mxu1 %v3162_v13  ;;  %v3394_v33 = vpop.f32.mrf.mxu1  ;;  %4058 = vmatprep.mubr.f32.mxu1 %v7400_v40  ;;  %v8648_v40 = vld [vmem:[#allocation116_spill] sm:$0xff] }
 0x82f   :  { %4291 = vmatpush2.msra.mxu1 %v3161_v44  ;;  %v7711_v52 = vadd.f32 %v3553_v7, %v3393_v32  ;;  %v3395_v28 = vadd.f32 %v3394_v33, %v7707_v43  ;;  %4428 = vmatpush1.msra.mxu0 %v3209_v62  ;;  %v3555_v15 = vpop.f32.mrf.mxu0  ;;  %v3201_v44 = vld [vmem:[#allocation3 + $0xc50] sm:$0xff]  ;;  %v3142_v62 = vld [vmem:[#allocation3 + $0xa78] sm:$0xff] }
 0x830   :  { %4059 = vmatmul.mubr.f32.gmra.mxu1 %v7395_v61  ;;  %4219 = vmatprep.mubr.f32.mxu0 %v8581_v21  ;;  %v3149_v21 = vld [vmem:[#allocation3 + $0xab0] sm:$0xff] }
 0x831   :  { %4292 = vmatprep.subr.mxu1 %v3158_v4  ;;  %v7716_v58 = vadd.f32 %v3555_v15, %v3395_v28  ;;  %v3398_v24 = vpop.f32.mrf.mxu1  ;;  %4220 = vmatmul.mubr.f32.gmra.mxu0 %v8648_v40  ;;  %v8653_v4 = vld [vmem:[#allocation138_spill] sm:$0xff]  ;;  %v3141_v7 = vld [vmem:[#allocation3 + $0xa70] sm:$0xff] }
 0x832   :  { %4293 = vmatpush2.msra.mxu1 %v3157_v47  ;;  %v3399_v26 = vadd.f32 %v3398_v24, %v7612_v48  ;;  %4429 = vmatprep.subr.mxu0 %v3206_v49  ;;  %v3559_v61 = vpop.f32.mrf.mxu0  ;;  %v8654_v28 = vld [vmem:[#allocation137_spill] sm:$0xff]  ;;  %v3198_v49 = vld [vmem:[#allocation3 + $0xc38] sm:$0xff] }
 0x833   :  { %4294 = vmatprep.subr.mxu1 %v3154_v35  ;;  %v3400_v41 = vpop.f32.mrf.mxu1  ;;  %4064 = vmatprep.mubr.f32.mxu1 %v8649_v3  ;;  %v3138_v35 = vld [vmem:[#allocation3 + $0xa58] sm:$0xff]  ;;  %v3137_v24 = vld [vmem:[#allocation3 + $0xa50] sm:$0xff] }
 0x834   :  { %4295 = vmatpush2.msra.mxu1 %v3153_v1  ;;  %v7721_v37 = vadd.f32 %v3559_v61, %v3399_v26  ;;  %v3401_v42 = vadd.f32 %v3400_v41, %v7707_v43  ;;  %4430 = vmatpush1.msra.mxu0 %v3205_v46  ;;  %v3561_v29 = vpop.f32.mrf.mxu0  ;;  %v8655_v1 = vld [vmem:[#allocation124_spill] sm:$0xff]  ;;  %v8656_v26 = vld [vmem:[#allocation123_spill] sm:$0xff]  ;;  %v3134_v41 = vld [vmem:[#allocation3 + $0xa38] sm:$0xff] }
 0x835   :  { %4065 = vmatmul.mubr.f32.gmra.mxu1 %v8650_v11  ;;  %4225 = vmatprep.mubr.f32.mxu0 %v8651_v59  ;;  %v3133_v11 = vld [vmem:[#allocation3 + $0xa30] sm:$0xff]  ;;  %v3130_v59 = vld [vmem:[#allocation3 + $0xa18] sm:$0xff] }
 0x836   :  { %4296 = vmatprep.subr.mxu1 %v3150_v0  ;;  %v7726_v55 = vadd.f32 %v3561_v29, %v3401_v42  ;;  %v3404_v13 = vpop.f32.mrf.mxu1  ;;  %4226 = vmatmul.mubr.f32.gmra.mxu0 %v8652_v50  ;;  %v3197_v0 = vld [vmem:[#allocation3 + $0xc30] sm:$0xff]  ;;  %v8657_v42 = vld [vmem:[#allocation140_spill] sm:$0xff]  ;;  %v8658_v29 = vld [vmem:[#allocation139_spill] sm:$0xff] }
 0x837   :  { %4297 = vmatpush2.msra.mxu1 %v3149_v21  ;;  %v3405_v16 = vadd.f32 %v3404_v13, %v7612_v48  ;;  %4431 = vmatprep.subr.mxu0 %v3202_v27  ;;  %v3565_v22 = vpop.f32.mrf.mxu0  ;;  %v8659_v50 = vld [vmem:[#allocation126_spill] sm:$0xff] }
 0x838   :  { %4298 = vmatprep.subr.mxu1 %v3146_v36  ;;  %v3406_v32 = vpop.f32.mrf.mxu1  ;;  %4070 = vmatprep.mubr.f32.mxu1 %v8653_v4 }
 0x839   :  { %4299 = vmatpush2.msra.mxu1 %v3145_v5  ;;  %v7731_v33 = vadd.f32 %v3565_v22, %v3405_v16  ;;  %v3407_v47 = vadd.f32 %v3406_v32, %v7707_v43  ;;  %4432 = vmatpush1.msra.mxu0 %v3201_v44  ;;  %v3567_v15 = vpop.f32.mrf.mxu0  ;;  %v3194_v5 = vld [vmem:[#allocation3 + $0xc18] sm:$0xff]  ;;  %v3129_v44 = vld [vmem:[#allocation3 + $0xa10] sm:$0xff] }
 0x83a   :  { %4071 = vmatmul.mubr.f32.gmra.mxu1 %v8654_v28  ;;  %4231 = vmatprep.mubr.f32.mxu0 %v8655_v1  ;;  %v8660_v22 = vld [vmem:[#allocation125_spill] sm:$0xff] }
 0x83b   :  { %4300 = vmatprep.subr.mxu1 %v3142_v62  ;;  %v7736_v40 = vadd.f32 %v3567_v15, %v3407_v47  ;;  %v3410_v46 = vpop.f32.mrf.mxu1  ;;  %4232 = vmatmul.mubr.f32.gmra.mxu0 %v8656_v26  ;;  %v3193_v32 = vld [vmem:[#allocation3 + $0xc10] sm:$0xff]  ;;  %v8662_v15 = vld [vmem:[#allocation99_spill] sm:$0xff] }
 0x83c   :  { %4301 = vmatpush2.msra.mxu1 %v3141_v7  ;;  %v3411_v61 = vadd.f32 %v3410_v46, %v7612_v48  ;;  %4433 = vmatprep.subr.mxu0 %v3198_v49  ;;  %v3571_v3 = vpop.f32.mrf.mxu0  ;;  %v8661_v28 = vld [vmem:[#allocation101_spill] sm:$0xff] }
 0x83d   :  { %4302 = vmatprep.subr.mxu1 %v3138_v35  ;;  %v3412_v21 = vpop.f32.mrf.mxu1  ;;  %4076 = vmatprep.mubr.f32.mxu1 %v8657_v42 }
 0x83e   :  { %4303 = vmatpush2.msra.mxu1 %v3137_v24  ;;  %v7741_v36 = vadd.f32 %v3571_v3, %v3411_v61  ;;  %v3413_v27 = vadd.f32 %v3412_v21, %v7707_v43  ;;  %4434 = vmatpush1.msra.mxu0 %v3197_v0  ;;  %v3573_v13 = vpop.f32.mrf.mxu0  ;;  %v8663_v24 = vld [vmem:[#allocation105_spill] sm:$0xff]  ;;  %v8664_v0 = vld [vmem:[#allocation96_spill] sm:$0xff]  ;;  %v8665_v21 = vld [vmem:[#allocation103_spill] sm:$0xff] }
 0x83f   :  { %4077 = vmatmul.mubr.f32.gmra.mxu1 %v8658_v29  ;;  %4237 = vmatprep.mubr.f32.mxu0 %v8659_v50 }
 0x840   :  { %4304 = vmatprep.subr.mxu1 %v3134_v41  ;;  %v7746_v16 = vadd.f32 %v3573_v13, %v3413_v27  ;;  %v3416_v62 = vpop.f32.mrf.mxu1  ;;  %4238 = vmatmul.mubr.f32.gmra.mxu0 %v8660_v22  ;;  %v8666_v27 = vld [vmem:[#allocation108_spill] sm:$0xff] }
 0x841   :  { %4305 = vmatpush2.msra.mxu1 %v3133_v11  ;;  %v3417_v4 = vadd.f32 %v3416_v62, %v7612_v48  ;;  %4435 = vmatprep.subr.mxu0 %v3194_v5  ;;  %v3577_v7 = vpop.f32.mrf.mxu0 }
 0x842   :  { %4306 = vmatprep.subr.mxu1 %v3130_v59  ;;  %v3418_v47 = vpop.f32.mrf.mxu1  ;;  %4308 = vmatprep.mubr.f32.mxu1 %v8661_v28  ;;  %v8667_v59 = vld [vmem:[#allocation95_spill] sm:$0xff] }
 0x843   :  { %4307 = vmatpush2.msra.mxu1 %v3129_v44  ;;  %v7751_v35 = vadd.f32 %v3577_v7, %v3417_v4  ;;  %v3419_v49 = vadd.f32 %v3418_v47, %v7707_v43  ;;  %4436 = vmatpush1.msra.mxu0 %v3193_v32  ;;  %v3579_v1 = vpop.f32.mrf.mxu0  ;;  %v8668_v44 = vld [vmem:[#allocation107_spill] sm:$0xff]  ;;  %v8669_v32 = vld [vmem:[#allocation110_spill] sm:$0xff] }
 0x844   :  { %4309 = vmatmul.mubr.f32.vlgmr.msra.gmra.mxu1 %v8662_v15  ;;  %4469 = vmatprep.mubr.f32.mxu0 %v8597_v45  ;;  %v8670_v47 = vld [vmem:[#allocation98_spill] sm:$0xff] }
 0x845   :  { %4314 = vmatprep.mubr.f32.mxu1 %v8663_v24  ;;  %v7757_v46 = vadd.f32 %v3579_v1, %v3419_v49  ;;  %v3422_v26 = vpop.f32.mrf.mxu1  ;;  %4470 = vmatmul.mubr.f32.vlgmr.msra.gmra.mxu0 %v8664_v0  ;;  %v8671_v1 = vld [vmem:[#allocation109_spill] sm:$0xff]  ;;  %v8672_v0 = vld [vmem:[#allocation112_spill] sm:$0xff] }
 0x846   :  { %v3423_v61 = vadd.f32 %v3422_v26, %v7612_v48  ;;  %4475 = vmatprep.mubr.f32.mxu0 %v8597_v45  ;;  %v3583_v41 = vpop.f32.mrf.mxu0  ;;  %v3347_v26 = vadd.f32 %v7619_v18, %v7707_v43 }
 0x847   :  { %v3424_v3 = vpop.f32.mrf.mxu1 }
 0x848   :  { %4315 = vmatmul.mubr.f32.gmra.mxu1 %v8665_v21  ;;  %v7763_v42 = vadd.f32 %v3583_v41, %v3423_v61  ;;  %v3425_v11 = vadd.f32 %v3424_v3, %v7707_v43  ;;  %v3585_v29 = vpop.f32.mrf.mxu0  ;;  %v8673_v3 = vld [vmem:[#allocation97_spill] sm:$0xff]  ;;  %v3508_v18 = vadd.f32 %v7624_v63, %v3347_v26 }
 0x849   :  { %4320 = vmatprep.mubr.f32.mxu1 %v8666_v27  ;;  %4476 = vmatmul.mubr.f32.gmra.mxu0 %v8667_v59 }
 0x84a   :  { %v7768_v5 = vadd.f32 %v3585_v29, %v3425_v11  ;;  %v3428_v13 = vpop.f32.mrf.mxu1  ;;  %4481 = vmatprep.mubr.f32.mxu0 %v8597_v45  ;;  %v8674_v29 = vld [vmem:[#allocation111_spill] sm:$0xff] }
 0x84b   :  { %v3429_v50 = vadd.f32 %v3428_v13, %v7612_v48  ;;  %v3589_v62 = vpop.f32.mrf.mxu0  ;;  %v8675_v13 = vld [vmem:[#allocation114_spill] sm:$0xff] }
 0x84c   :  { %4321 = vmatmul.mubr.f32.gmra.mxu1 %v8668_v44  ;;  %v3430_v22 = vpop.f32.mrf.mxu1  ;;  %v8676_v44 = vld [vmem:[#allocation102_spill] sm:$0xff] }
 0x84d   :  { %4326 = vmatprep.mubr.f32.mxu1 %v8669_v32  ;;  %v7774_v4 = vadd.f32 %v3589_v62, %v3429_v50  ;;  %v3431_v7 = vadd.f32 %v3430_v22, %v7707_v43  ;;  %4482 = vmatmul.mubr.f32.gmra.mxu0 %v8670_v47  ;;  %v3591_v28 = vpop.f32.mrf.mxu0  ;;  %v3353_v32 = vadd.f32 %v7629_v57, %v7707_v43 }
 0x84e   :  { %4487 = vmatprep.mubr.f32.mxu0 %v8597_v45 }
 0x84f   :  { %v7779_v49 = vadd.f32 %v3591_v28, %v3431_v7  ;;  %v3434_v15 = vpop.f32.mrf.mxu1  ;;  %v8677_v28 = vld [vmem:[#allocation113_spill] sm:$0xff]  ;;  %v3514_v26 = vadd.f32 %v7635_v51, %v3353_v32 }
 0x850   :  { %4327 = vmatmul.mubr.f32.gmra.mxu1 %v8671_v1  ;;  %v3435_v24 = vadd.f32 %v3434_v15, %v7612_v48  ;;  %v3595_v61 = vpop.f32.mrf.mxu0  ;;  %v8678_v1 = vld [vmem:[#allocation117_spill] sm:$0xff] }
 0x851   :  { %4332 = vmatprep.mubr.f32.mxu1 %v8672_v0  ;;  %v3436_v41 = vpop.f32.mrf.mxu1  ;;  %4488 = vmatmul.mubr.f32.gmra.mxu0 %v8673_v3  ;;  %v8680_v0 = vld [vmem:[#allocation115_spill] sm:$0xff]  ;;  %v3359_v3 = vadd.f32 %v7640_v25, %v7707_v43 }
 0x852   :  { %v7787_v21 = vadd.f32 %v3595_v61, %v3435_v24  ;;  %v3437_v11 = vadd.f32 %v3436_v41, %v7707_v43  ;;  %4493 = vmatprep.mubr.f32.mxu0 %v8597_v45  ;;  %v3597_v27 = vpop.f32.mrf.mxu0  ;;  %v8679_v24 = vld [vmem:[#allocation100_spill] sm:$0xff] }
 0x854   :  { %4333 = vmatmul.mubr.f32.gmra.mxu1 %v8674_v29  ;;  %v7792_v59 = vadd.f32 %v3597_v27, %v3437_v11  ;;  %v3666_v48 = vpop.f32.mrf.mxu1  ;;  %v8681_v11 = vld [vmem:[#allocation121_spill] sm:$0xff] }
 0x855   :  { %4338 = vmatprep.mubr.f32.mxu1 %v8675_v13  ;;  %v3667_v50 = vadd.f32 %v3666_v48, %v7622_v39  ;;  %4494 = vmatmul.mubr.f32.gmra.mxu0 %v8676_v44  ;;  %v3827_v62 = vpop.f32.mrf.mxu0  ;;  %v8682_v48 = vld [vmem:[#allocation106_spill] sm:$0xff]  ;;  %v8683_v13 = vld [vmem:[#allocation119_spill] sm:$0xff] }
 0x856   :  { %v3668_v22 = vpop.f32.mrf.mxu1  ;;  %4499 = vmatprep.mubr.f32.mxu0 %v8597_v45  ;;  %v8684_v44 = vld [vmem:[#allocation142_spill] sm:$0xff] }
 0x857   :  { %v3828_v7 = vadd.f32 %v3827_v62, %v3667_v50  ;;  %v3669_v47 = vadd.f32 %v3668_v22, %v3508_v18  ;;  %v3829_v15 = vpop.f32.mrf.mxu0  ;;  %v3520_v50 = vadd.f32 %v7646_v19, %v3359_v3  ;;  %v8685_v62 = vld [vmem:[#allocation104_spill] sm:$0xff]  ;;  %v3371_v3 = vadd.f32 %v7662_v9, %v7707_v43 }
 0x858   :  { %4339 = vmatmul.mubr.f32.gmra.mxu1 %v8677_v28  ;;  %v8687_v19 = vld [vmem:[#allocation144_spill] sm:$0xff] }
 0x859   :  { %4344 = vmatprep.mubr.f32.mxu1 %v8678_v1  ;;  %5876 = vtanh.f32 %v3828_v7  ;;  %v3830_v63 = vadd.f32 %v3829_v15, %v3669_v47  ;;  %4500 = vmatmul.mubr.f32.gmra.mxu0 %v8679_v24  ;;  %v3672_v39 = vpop.f32.mrf.mxu1  ;;  %v3365_v7 = vadd.f32 %v7651_v56, %v7707_v43  ;;  %v8686_v15 = vld [vmem:[#allocation141_spill] sm:$0xff] }
 0x85a   :  { %4505 = vmatprep.mubr.f32.mxu0 %v8597_v45  ;;  %v3673_v57 = vadd.f32 %v3672_v39, %v7632_v10 }
 0x85b   :  { %5878 = vtanh.f32 %v3830_v63  ;;  %v3674_v41 = vpop.f32.mrf.mxu1 }
 0x85c   :  { %4345 = vmatmul.mubr.f32.gmra.mxu1 %v8680_v0  ;;  %v3833_v61 = vpop.f32.mrf.mxu0  ;;  %v3675_v29 = vadd.f32 %v3674_v41, %v3514_v26  ;;  %v3526_v26 = vadd.f32 %v7657_v2, %v3365_v7  ;;  %v8689_v0 = vld [vmem:[#allocation143_spill] sm:$0xff] }
 0x85d   :  { %4350 = vmatprep.mubr.f32.mxu1 %v8681_v11  ;;  %v3834_v27 = vadd.f32 %v3833_v61, %v3673_v57  ;;  %4506 = vmatmul.mubr.f32.gmra.mxu0 %v8682_v48  ;;  %v8690_v11 = vld [vmem:[#allocation146_spill] sm:$0xff]  ;;  %v8691_v48 = vld [vmem:[#allocation127_spill] sm:$0xff] }
 0x85e   :  { %v3835_v18 = vpop.f32.mrf.mxu0  ;;  %4511 = vmatprep.mubr.f32.mxu0 %v8597_v45 }
 0x85f   :  { %5880 = vtanh.f32 %v3834_v27  ;;  %v3836_v51 = vadd.f32 %v3835_v18, %v3675_v29  ;;  %v3678_v10 = vpop.f32.mrf.mxu1 }
 0x860   :  { %4351 = vmatmul.mubr.f32.gmra.mxu1 %v8683_v13  ;;  %v3679_v25 = vadd.f32 %v3678_v10, %v7643_v53  ;;  %v8688_v53 = vld [vmem:[#allocation128_spill] sm:$0xff]  ;;  %v3532_v10 = vadd.f32 %v7668_v23, %v3371_v3 }
 0x861   :  { %4356 = vmatprep.mubr.f32.mxu1 %v8684_v44  ;;  %5882 = vtanh.f32 %v3836_v51  ;;  %4512 = vmatmul.mubr.f32.gmra.mxu0 %v8685_v62  ;;  %v3680_v32 = vpop.f32.mrf.mxu1  ;;  %v8692_v51 = vld [vmem:[#allocation145_spill] sm:$0xff] }
 0x862   :  { %v3839_v22 = vpop.f32.mrf.mxu0  ;;  %4517 = vmatprep.mubr.f32.mxu0 %v8597_v45  ;;  %v3681_v28 = vadd.f32 %v3680_v32, %v3520_v50  ;;  %v8693_v50 = vld [vmem:[#allocation148_spill] sm:$0xff]  ;;  %v3377_v32 = vadd.f32 %v7673_v30, %v7707_v43 }
 0x863   :  { %v3840_v47 = vadd.f32 %v3839_v22, %v3679_v25  ;;  %v8694_v25 = vld [vmem:[#allocation130_spill] sm:$0xff] }
 0x864   :  { %4357 = vmatmul.mubr.f32.gmra.mxu1 %v8686_v15  ;;  %v3841_v1 = vpop.f32.mrf.mxu0  ;;  %v8696_v15 = vld [vmem:[#allocation150_spill] sm:$0xff] }
 0x865   :  { %4362 = vmatprep.mubr.f32.mxu1 %v8687_v19  ;;  %5884 = vtanh.f32 %v3840_v47  ;;  %v3842_v63 = vadd.f32 %v3841_v1, %v3681_v28  ;;  %4518 = vmatmul.mubr.f32.gmra.mxu0 %v8688_v53  ;;  %v3684_v39 = vpop.f32.mrf.mxu1  ;;  %v8695_v28 = vld [vmem:[#allocation147_spill] sm:$0xff]  ;;  %v8697_v19 = vld [vmem:[#allocation129_spill] sm:$0xff]  ;;  %v3538_v53 = vadd.f32 %v7679_v17, %v3377_v32 }
 0x866   :  { %v7823_v24 = vpop.eup %5876  ;;  %4523 = vmatprep.mubr.f32.mxu0 %v8597_v45  ;;  %v3685_v56 = vadd.f32 %v3684_v39, %v7654_v38  ;;  %v8704_v32 = vld [vmem:[#allocation153_spill] sm:$0xff] }
 0x867   :  { %5886 = vtanh.f32 %v3842_v63  ;;  %v3686_v41 = vpop.f32.mrf.mxu1 }
 0x868   :  { %v7829_v57 = vpop.eup %5878  ;;  %4363 = vmatmul.mubr.f32.gmra.mxu1 %v8689_v0  ;;  %v3845_v61 = vpop.f32.mrf.mxu0  ;;  %v3687_v29 = vadd.f32 %v3686_v41, %v3526_v26  ;;  %v8698_v26 = vld [vmem:[#allocation149_spill] sm:$0xff]  ;;  %v8699_v41 = vld [vmem:[#allocation152_spill] sm:$0xff] }
 0x869   :  { %4368 = vmatprep.mubr.f32.mxu1 %v8690_v11  ;;  %v3846_v27 = vadd.f32 %v3845_v61, %v3685_v56  ;;  %4524 = vmatmul.mubr.f32.gmra.mxu0 %v8691_v48  ;;  %v3383_v61 = vadd.f32 %v7684_v34, %v7707_v43  ;;  %v8701_v48 = vld [vmem:[#allocation151_spill] sm:$0xff] }
 0x86a   :  { %v3847_v2 = vpop.f32.mrf.mxu0  ;;  %4529 = vmatprep.mubr.f32.mxu0 %v8597_v45 }
 0x86b   :  { %5888 = vtanh.f32 %v3846_v27  ;;  %v3848_v38 = vadd.f32 %v3847_v2, %v3687_v29  ;;  %v3690_v13 = vpop.f32.mrf.mxu1  ;;  %v8700_v27 = vld [vmem:[#allocation132_spill] sm:$0xff] }
 0x86c   :  { %v7837_v18 = vpop.eup %5880  ;;  %4369 = vmatmul.mubr.f32.gmra.mxu1 %v8692_v51  ;;  %v3691_v9 = vadd.f32 %v3690_v13, %v7665_v60  ;;  %v8702_v51 = vld [vmem:[#allocation154_spill] sm:$0xff] }
 0x86d   :  { %4374 = vmatprep.mubr.f32.mxu1 %v8693_v50  ;;  %5890 = vtanh.f32 %v3848_v38  ;;  %4530 = vmatmul.mubr.f32.gmra.mxu0 %v8694_v25  ;;  %v3692_v22 = vpop.f32.mrf.mxu1  ;;  %v3544_v38 = vadd.f32 %v7690_v6, %v3383_v61  ;;  %v3389_v25 = vadd.f32 %v7695_v54, %v7707_v43 }
 0x86e   :  { %v7843_v44 = vpop.eup %5882  ;;  %v3851_v62 = vpop.f32.mrf.mxu0  ;;  %4535 = vmatprep.mubr.f32.mxu0 %v8597_v45  ;;  %v3693_v47 = vadd.f32 %v3692_v22, %v3532_v10  ;;  %v8703_v10 = vld [vmem:[#allocation131_spill] sm:$0xff] }
 0x86f   :  { %v3852_v7 = vadd.f32 %v3851_v62, %v3691_v9 }
 0x870   :  { %4375 = vmatmul.mubr.f32.gmra.mxu1 %v8695_v28  ;;  %v3853_v23 = vpop.f32.mrf.mxu0  ;;  %v8706_v28 = vld [vmem:[#allocation136_spill] sm:$0xff] }
 0x871   :  { %4380 = vmatprep.mubr.f32.mxu1 %v8696_v15  ;;  %5892 = vtanh.f32 %v3852_v7  ;;  %v3854_v60 = vadd.f32 %v3853_v23, %v3693_v47  ;;  %4536 = vmatmul.mubr.f32.gmra.mxu0 %v8697_v19  ;;  %v3696_v63 = vpop.f32.mrf.mxu1  ;;  %v8705_v7 = vld [vmem:[#allocation156_spill] sm:$0xff]  ;;  %v3550_v15 = vadd.f32 %v7701_v20, %v3389_v25 }
 0x872   :  { %v7851_v1 = vpop.eup %5884  ;;  %4541 = vmatprep.mubr.f32.mxu0 %v8597_v45  ;;  %v3697_v30 = vadd.f32 %v3696_v63, %v7676_v31 }
 0x873   :  { %5894 = vtanh.f32 %v3854_v60  ;;  %v3698_v0 = vpop.f32.mrf.mxu1  ;;  %v8707_v60 = vld [vmem:[#allocation155_spill] sm:$0xff] }
 0x874   :  { %v7857_v39 = vpop.eup %5886  ;;  %4381 = vmatmul.mubr.f32.gmra.mxu1 %v8698_v26  ;;  %v3857_v56 = vpop.f32.mrf.mxu0  ;;  %v3699_v11 = vadd.f32 %v3698_v0, %v3538_v53 }
 0x875   :  { %4386 = vmatprep.mubr.f32.mxu1 %v8699_v41  ;;  %v3858_v3 = vadd.f32 %v3857_v56, %v3697_v30  ;;  %4542 = vmatmul.mubr.f32.gmra.mxu0 %v8700_v27 }
 0x876   :  { %v3859_v17 = vpop.f32.mrf.mxu0  ;;  %4547 = vmatprep.mubr.f32.mxu0 %v8597_v45 }
 0x877   :  { %5896 = vtanh.f32 %v3858_v3  ;;  %v3860_v31 = vadd.f32 %v3859_v17, %v3699_v11  ;;  %v3702_v2 = vpop.f32.mrf.mxu1 }
 0x878   :  { %v7865_v29 = vpop.eup %5888  ;;  %4387 = vmatmul.mubr.f32.gmra.mxu1 %v8701_v48  ;;  %v3703_v34 = vadd.f32 %v3702_v2, %v7687_v14 }
 0x879   :  { %4392 = vmatprep.mubr.f32.mxu1 %v8702_v51  ;;  %5898 = vtanh.f32 %v3860_v31  ;;  %4548 = vmatmul.mubr.f32.gmra.mxu0 %v8703_v10  ;;  %v3704_v9 = vpop.f32.mrf.mxu1 }
 0x87a   :  { %v7871_v13 = vpop.eup %5890  ;;  %v3863_v50 = vpop.f32.mrf.mxu0  ;;  %4553 = vmatprep.mubr.f32.mxu0 %v8597_v45  ;;  %v3705_v22 = vadd.f32 %v3704_v9, %v3544_v38 }
 0x87b   :  { %v3864_v62 = vadd.f32 %v3863_v50, %v3703_v34 }
 0x87c   :  { %4393 = vmatmul.mubr.f32.gmra.mxu1 %v8704_v32  ;;  %v3865_v6 = vpop.f32.mrf.mxu0 }
 0x87d   :  { %4398 = vmatprep.mubr.f32.mxu1 %v8705_v7  ;;  %5900 = vtanh.f32 %v3864_v62  ;;  %v3866_v14 = vadd.f32 %v3865_v6, %v3705_v22  ;;  %4554 = vmatmul.mubr.f32.gmra.mxu0 %v8706_v28  ;;  %v3708_v23 = vpop.f32.mrf.mxu1 }
 0x87e   :  { %v7879_v47 = vpop.eup %5892  ;;  %4559 = vmatprep.mubr.f32.mxu0 %v8597_v45  ;;  %v3709_v54 = vadd.f32 %v3708_v23, %v7698_v12 }
 0x87f   :  { %5902 = vtanh.f32 %v3866_v14  ;;  %v3710_v63 = vpop.f32.mrf.mxu1 }
 0x880   :  { %v7885_v43 = vpop.eup %5894  ;;  %4399 = vmatmul.mubr.f32.gmra.mxu1 %v8707_v60  ;;  %v3869_v19 = vpop.f32.mrf.mxu0  ;;  %v3711_v30 = vadd.f32 %v3710_v63, %v3550_v15 }
 0x881   :  { %v3870_v53 = vadd.f32 %v3869_v19, %v3709_v54  ;;  %4560 = vmatmul.mubr.f32.gmra.mxu0 %v8643_v8 }
 0x882   :  { %v3871_v26 = vpop.f32.mrf.mxu0 }
 0x883   :  { %5904 = vtanh.f32 %v3870_v53  ;;  %v3872_v56 = vadd.f32 %v3871_v26, %v3711_v30  ;;  %v3714_v20 = vpop.f32.mrf.mxu1 }
 0x884   :  { %v7889_v0 = vpop.eup %5896  ;;  %v3715_v45 = vadd.f32 %v3714_v20, %v7711_v52 }
 0x885   :  { %5906 = vtanh.f32 %v3872_v56  ;;  %v3716_v41 = vpop.f32.mrf.mxu1 }
 0x886   :  { %v7892_v12 = vpop.eup %5898  ;;  %v3875_v61 = vpop.f32.mrf.mxu0  ;;  %v3717_v11 = vadd.f32 %v3716_v41, %v7716_v58 }
 0x887   :  { %v3876_v3 = vadd.f32 %v3875_v61, %v3715_v45 }
 0x888   :  { %v3877_v27 = vpop.f32.mrf.mxu0 }
 0x889   :  { %5908 = vtanh.f32 %v3876_v3  ;;  %v3878_v17 = vadd.f32 %v3877_v27, %v3717_v11  ;;  %v3720_v31 = vpop.f32.mrf.mxu1 }
 0x88a   :  { %v7895_v8 = vpop.eup %5900  ;;  %v3721_v48 = vadd.f32 %v3720_v31, %v7721_v37 }
 0x88b   :  { %8708 = vst [vmem:[#allocation118_spill] sm:$0xff] %v7895_v8  ;;  %5910 = vtanh.f32 %v3878_v17  ;;  %v3722_v52 = vpop.f32.mrf.mxu1 }
 0x88c   :  { %v7898_v2 = vpop.eup %5902  ;;  %v3881_v38 = vpop.f32.mrf.mxu0  ;;  %v3723_v34 = vadd.f32 %v3722_v52, %v7726_v55 }
 0x88d   :  { %8709 = vst [vmem:[#allocation134_spill] sm:$0xff] %v7898_v2  ;;  %v3882_v51 = vadd.f32 %v3881_v38, %v3721_v48 }
 0x88e   :  { %v3883_v10 = vpop.f32.mrf.mxu0 }
 0x88f   :  { %5912 = vtanh.f32 %v3882_v51  ;;  %v3884_v50 = vadd.f32 %v3883_v10, %v3723_v34  ;;  %v3726_v9 = vpop.f32.mrf.mxu1 }
 0x890   :  { %v7901_v58 = vpop.eup %5904  ;;  %v3727_v25 = vadd.f32 %v3726_v9, %v7731_v33 }
 0x891   :  { %8710 = vst [vmem:[#allocation93_spill] sm:$0xff] %v7901_v58  ;;  %5914 = vtanh.f32 %v3884_v50  ;;  %v3728_v37 = vpop.f32.mrf.mxu1 }
 0x892   :  { %v7904_v62 = vpop.eup %5906  ;;  %v3887_v22 = vpop.f32.mrf.mxu0  ;;  %v3729_v6 = vadd.f32 %v3728_v37, %v7736_v40 }
 0x893   :  { %8711 = vst [vmem:[#allocation94_spill] sm:$0xff] %v7904_v62  ;;  %v3888_v32 = vadd.f32 %v3887_v22, %v3727_v25 }
 0x894   :  { %v3889_v7 = vpop.f32.mrf.mxu0 }
 0x895   :  { %5916 = vtanh.f32 %v3888_v32  ;;  %v3890_v14 = vadd.f32 %v3889_v7, %v3729_v6  ;;  %v3732_v28 = vpop.f32.mrf.mxu1 }
 0x896   :  { %v7907_v55 = vpop.eup %5908  ;;  %v3733_v23 = vadd.f32 %v3732_v28, %v7741_v36 }
 0x897   :  { %8712 = vst [vmem:[#allocation91_spill] sm:$0xff] %v7907_v55  ;;  %5918 = vtanh.f32 %v3890_v14  ;;  %v3734_v33 = vpop.f32.mrf.mxu1 }
 0x898   :  { %v7910_v15 = vpop.eup %5910  ;;  %v3893_v54 = vpop.f32.mrf.mxu0  ;;  %v3735_v19 = vadd.f32 %v3734_v33, %v7746_v16  ;;  %v6004_v33 = vld [vmem:[#allocation11 + $0x7] ss:$8 sm:$0xf] }
 0x899   :  { %8713 = vst [vmem:[#allocation92_spill] sm:$0xff] %v7910_v15  ;;  %v3894_v60 = vadd.f32 %v3893_v54, %v3733_v23 }
 0x89a   :  { %v3895_v63 = vpop.f32.mrf.mxu0 }
 0x89b   :  { %5920 = vtanh.f32 %v3894_v60  ;;  %v3896_v53 = vadd.f32 %v3895_v63, %v3735_v19  ;;  %v3738_v30 = vpop.f32.mrf.mxu1  ;;  %v8722_v60 = vld [vmem:[#allocation90_spill] sm:$0xff] }
 0x89c   :  { %v7913_v40 = vpop.eup %5912  ;;  %v3739_v26 = vadd.f32 %v3738_v30, %v7751_v35  ;;  %v8723_v19 = vsub.s32 2, %v8722_v60  ;;  %v8724_v30 = vsub.s32 3, %v8722_v60 }
 0x89d   :  { %8714 = vst [vmem:[#allocation116_spill] sm:$0xff] %v7913_v40  ;;  %5922 = vtanh.f32 %v3896_v53  ;;  %v3740_v36 = vpop.f32.mrf.mxu1 }
 0x89e   :  { %v7916_v56 = vpop.eup %5914  ;;  %v3899_v20 = vpop.f32.mrf.mxu0  ;;  %v3741_v61 = vadd.f32 %v3740_v36, %v7757_v46 }
 0x89f   :  { %8715 = vst [vmem:[#allocation135_spill] sm:$0xff] %v7916_v56  ;;  %v3900_v45 = vadd.f32 %v3899_v20, %v3739_v26  ;;  %v7943_v26 = vrot.slane %v6004_v33, %v8724_v30 }
 0x8a0   :  { %v3901_v41 = vpop.f32.mrf.mxu0 }
 0x8a1   :  { %5924 = vtanh.f32 %v3900_v45  ;;  %v3902_v3 = vadd.f32 %v3901_v41, %v3741_v61  ;;  %v3744_v11 = vpop.f32.mrf.mxu1 }
 0x8a2   :  { %v7919_v16 = vpop.eup %5916  ;;  %v3745_v27 = vadd.f32 %v3744_v11, %v7763_v42 }
 0x8a3   :  { %8716 = vst [vmem:[#allocation133_spill] sm:$0xff] %v7919_v16  ;;  %5926 = vtanh.f32 %v3902_v3  ;;  %v3746_v35 = vpop.f32.mrf.mxu1 }
 0x8a4   :  { %v7922_v17 = vpop.eup %5918  ;;  %v3905_v31 = vpop.f32.mrf.mxu0  ;;  %v3747_v38 = vadd.f32 %v3746_v35, %v7768_v5 }
 0x8a5   :  { %8717 = vst [vmem:[#allocation122_spill] sm:$0xff] %v7922_v17  ;;  %v3906_v48 = vadd.f32 %v3905_v31, %v3745_v27 }
 0x8a6   :  { %v3907_v52 = vpop.f32.mrf.mxu0 }
 0x8a7   :  { %5928 = vtanh.f32 %v3906_v48  ;;  %v3908_v51 = vadd.f32 %v3907_v52, %v3747_v38  ;;  %v3750_v34 = vpop.f32.mrf.mxu1 }
 0x8a8   :  { %v7925_v46 = vpop.eup %5920  ;;  %v3751_v10 = vadd.f32 %v3750_v34, %v7774_v4 }
 0x8a9   :  { %8718 = vst [vmem:[#allocation120_spill] sm:$0xff] %v7925_v46  ;;  %5930 = vtanh.f32 %v3908_v51  ;;  %v3752_v42 = vpop.f32.mrf.mxu1 }
 0x8aa   :  { %v7928_v50 = vpop.eup %5922  ;;  %v3911_v9 = vpop.f32.mrf.mxu0  ;;  %v3753_v22 = vadd.f32 %v3752_v42, %v7779_v49  ;;  %v7939_v49 = vrot.slane %v6004_v33, %v8723_v19 }
 0x8ab   :  { %8719 = vst [vmem:[#allocation138_spill] sm:$0xff] %v7928_v50  ;;  %v3912_v25 = vadd.f32 %v3911_v9, %v3751_v10 }
 0x8ac   :  { %v3913_v37 = vpop.f32.mrf.mxu0 }
 0x8ad   :  { %5932 = vtanh.f32 %v3912_v25  ;;  %v3914_v32 = vadd.f32 %v3913_v37, %v3753_v22  ;;  %v3756_v6 = vpop.f32.mrf.mxu1 }
 0x8ae   :  { %v7931_v5 = vpop.eup %5924  ;;  %v3757_v7 = vadd.f32 %v3756_v6, %v7787_v21 }
 0x8af   :  { %8720 = vst [vmem:[#allocation137_spill] sm:$0xff] %v7931_v5  ;;  %5934 = vtanh.f32 %v3914_v32  ;;  %v3758_v4 = vpop.f32.mrf.mxu1 }
 0x8b0   :  { %v7934_v14 = vpop.eup %5926  ;;  %v3917_v28 = vpop.f32.mrf.mxu0  ;;  %v3759_v54 = vadd.f32 %v3758_v4, %v7792_v59 }
 0x8b1   :  { %8721 = vst [vmem:[#allocation124_spill] sm:$0xff] %v7934_v14  ;;  %v3918_v23 = vadd.f32 %v3917_v28, %v3757_v7 }
 0x8b2   :  { %v3919_v63 = vpop.f32.mrf.mxu0 }
 0x8b3   :  { %5936 = vtanh.f32 %v3918_v23  ;;  %v3920_v53 = vadd.f32 %v3919_v63, %v3759_v54  ;;  %v3988_v20 = vpop.f32.mrf.mxu1 }
 0x8b4   :  { %v7945_v21 = vpop.eup %5928  ;;  %v3989_v36 = vadd.f32 %v3988_v20, %v7939_v49 }
 0x8b5   :  { %8725 = vst [vmem:[#allocation123_spill] sm:$0xff] %v7945_v21  ;;  %5938 = vtanh.f32 %v3920_v53  ;;  %v4149_v59 = vpop.f32.mrf.mxu0  ;;  %v3990_v61 = vpop.f32.mrf.mxu1 }
 0x8b6   :  { %v7948_v45 = vpop.eup %5930  ;;  %v7950_v41 = vadd.f32 %v4149_v59, %v3989_v36  ;;  %v3991_v3 = vadd.f32 %v3990_v61, %v7943_v26 }
 0x8b7   :  { %8726 = vst [vmem:[#allocation140_spill] sm:$0xff] %v7948_v45  ;;  %v4151_v11 = vpop.f32.mrf.mxu0 }
 0x8b8   :  { %v7953_v27 = vadd.f32 %v4151_v11, %v3991_v3 }
 0x8b9   :  { %v3994_v31 = vpop.f32.mrf.mxu1 }
 0x8ba   :  { %v7955_v35 = vpop.eup %5932  ;;  %v3995_v48 = vadd.f32 %v3994_v31, %v7939_v49  ;;  %v4155_v38 = vpop.f32.mrf.mxu0 }
 0x8bb   :  { %8727 = vst [vmem:[#allocation139_spill] sm:$0xff] %v7955_v35  ;;  %v3996_v52 = vpop.f32.mrf.mxu1 }
 0x8bc   :  { %v7958_v51 = vpop.eup %5934  ;;  %v7960_v34 = vadd.f32 %v4155_v38, %v3995_v48  ;;  %v3997_v10 = vadd.f32 %v3996_v52, %v7943_v26  ;;  %v4157_v9 = vpop.f32.mrf.mxu0 }
 0x8bd   :  { %8728 = vst [vmem:[#allocation126_spill] sm:$0xff] %v7958_v51 }
 0x8be   :  { %v7963_v42 = vadd.f32 %v4157_v9, %v3997_v10  ;;  %v4000_v25 = vpop.f32.mrf.mxu1 }
 0x8bf   :  { %v4001_v22 = vadd.f32 %v4000_v25, %v7939_v49  ;;  %v4161_v32 = vpop.f32.mrf.mxu0 }
 0x8c0   :  { %v7966_v37 = vpop.eup %5936  ;;  %v4002_v6 = vpop.f32.mrf.mxu1 }
 0x8c1   :  { %8729 = vst [vmem:[#allocation125_spill] sm:$0xff] %v7966_v37  ;;  %v7968_v7 = vadd.f32 %v4161_v32, %v4001_v22  ;;  %v4003_v28 = vadd.f32 %v4002_v6, %v7943_v26  ;;  %v4163_v23 = vpop.f32.mrf.mxu0 }
 0x8c2   :  { %v7971_v4 = vpop.eup %5938 }
 0x8c3   :  { %8730 = vst [vmem:[#allocation101_spill] sm:$0xff] %v7971_v4  ;;  %v7973_v54 = vadd.f32 %v4163_v23, %v4003_v28  ;;  %v4006_v33 = vpop.f32.mrf.mxu1 }
 0x8c4   :  { %v4007_v60 = vadd.f32 %v4006_v33, %v7939_v49  ;;  %v4167_v19 = vpop.f32.mrf.mxu0 }
 0x8c5   :  { %v4008_v63 = vpop.f32.mrf.mxu1 }
 0x8c6   :  { %v7976_v53 = vadd.f32 %v4167_v19, %v4007_v60  ;;  %v4009_v30 = vadd.f32 %v4008_v63, %v7943_v26  ;;  %v4169_v20 = vpop.f32.mrf.mxu0 }
 0x8c8   :  { %v7979_v36 = vadd.f32 %v4169_v20, %v4009_v30  ;;  %v4012_v59 = vpop.f32.mrf.mxu1 }
 0x8c9   :  { %v4013_v61 = vadd.f32 %v4012_v59, %v7939_v49  ;;  %v4173_v3 = vpop.f32.mrf.mxu0 }
 0x8ca   :  { %v4014_v11 = vpop.f32.mrf.mxu1 }
 0x8cb   :  { %v7982_v31 = vadd.f32 %v4173_v3, %v4013_v61  ;;  %v4015_v48 = vadd.f32 %v4014_v11, %v7943_v26  ;;  %v4175_v38 = vpop.f32.mrf.mxu0 }
 0x8cd   :  { %v7985_v52 = vadd.f32 %v4175_v38, %v4015_v48  ;;  %v4018_v10 = vpop.f32.mrf.mxu1 }
 0x8ce   :  { %v4019_v9 = vadd.f32 %v4018_v10, %v7939_v49  ;;  %v4179_v25 = vpop.f32.mrf.mxu0 }
 0x8cf   :  { %v4020_v22 = vpop.f32.mrf.mxu1 }
 0x8d0   :  { %v7988_v32 = vadd.f32 %v4179_v25, %v4019_v9  ;;  %v4021_v6 = vadd.f32 %v4020_v22, %v7943_v26  ;;  %v4181_v28 = vpop.f32.mrf.mxu0 }
 0x8d2   :  { %v7991_v23 = vadd.f32 %v4181_v28, %v4021_v6  ;;  %v4024_v33 = vpop.f32.mrf.mxu1 }
 0x8d3   :  { %v4025_v60 = vadd.f32 %v4024_v33, %v7939_v49  ;;  %v4185_v19 = vpop.f32.mrf.mxu0 }
 0x8d4   :  { %v4026_v63 = vpop.f32.mrf.mxu1 }
 0x8d5   :  { %v7994_v30 = vadd.f32 %v4185_v19, %v4025_v60  ;;  %v4027_v20 = vadd.f32 %v4026_v63, %v7943_v26  ;;  %v4187_v59 = vpop.f32.mrf.mxu0 }
 0x8d7   :  { %v7997_v61 = vadd.f32 %v4187_v59, %v4027_v20  ;;  %v4030_v3 = vpop.f32.mrf.mxu1 }
 0x8d8   :  { %v4031_v11 = vadd.f32 %v4030_v3, %v7939_v49  ;;  %v4191_v48 = vpop.f32.mrf.mxu0 }
 0x8d9   :  { %v4032_v38 = vpop.f32.mrf.mxu1 }
 0x8da   :  { %v8000_v10 = vadd.f32 %v4191_v48, %v4031_v11  ;;  %v4033_v9 = vadd.f32 %v4032_v38, %v7943_v26  ;;  %v4193_v25 = vpop.f32.mrf.mxu0 }
 0x8dc   :  { %v8003_v22 = vadd.f32 %v4193_v25, %v4033_v9  ;;  %v4036_v6 = vpop.f32.mrf.mxu1 }
 0x8dd   :  { %v4037_v28 = vadd.f32 %v4036_v6, %v7939_v49  ;;  %v4197_v33 = vpop.f32.mrf.mxu0 }
 0x8de   :  { %v4038_v60 = vpop.f32.mrf.mxu1 }
 0x8df   :  { %v8006_v19 = vadd.f32 %v4197_v33, %v4037_v28  ;;  %v4039_v63 = vadd.f32 %v4038_v60, %v7943_v26  ;;  %v4199_v20 = vpop.f32.mrf.mxu0 }
 0x8e1   :  { %v8009_v59 = vadd.f32 %v4199_v20, %v4039_v63  ;;  %v4042_v3 = vpop.f32.mrf.mxu1 }
 0x8e2   :  { %v4043_v11 = vadd.f32 %v4042_v3, %v7939_v49  ;;  %v4203_v48 = vpop.f32.mrf.mxu0 }
 0x8e3   :  { %v4044_v38 = vpop.f32.mrf.mxu1 }
 0x8e4   :  { %v8012_v37 = vadd.f32 %v4203_v48, %v4043_v11  ;;  %v4045_v9 = vadd.f32 %v4044_v38, %v7943_v26  ;;  %v4205_v25 = vpop.f32.mrf.mxu0 }
 0x8e6   :  { %v8015_v6 = vadd.f32 %v4205_v25, %v4045_v9  ;;  %v4048_v4 = vpop.f32.mrf.mxu1 }
 0x8e7   :  { %v4049_v28 = vadd.f32 %v4048_v4, %v7939_v49  ;;  %v4209_v33 = vpop.f32.mrf.mxu0 }
 0x8e8   :  { %v4050_v60 = vpop.f32.mrf.mxu1 }
 0x8e9   :  { %v8018_v35 = vadd.f32 %v4209_v33, %v4049_v28  ;;  %v4051_v63 = vadd.f32 %v4050_v60, %v7943_v26  ;;  %v4211_v20 = vpop.f32.mrf.mxu0 }
 0x8eb   :  { %v8021_v3 = vadd.f32 %v4211_v20, %v4051_v63  ;;  %v4054_v51 = vpop.f32.mrf.mxu1 }
 0x8ec   :  { %v4055_v11 = vadd.f32 %v4054_v51, %v7939_v49  ;;  %v4215_v48 = vpop.f32.mrf.mxu0 }
 0x8ed   :  { %v4056_v38 = vpop.f32.mrf.mxu1 }
 0x8ee   :  { %v8024_v21 = vadd.f32 %v4215_v48, %v4055_v11  ;;  %v4057_v9 = vadd.f32 %v4056_v38, %v7943_v26  ;;  %v4217_v25 = vpop.f32.mrf.mxu0 }
 0x8f0   :  { %v8027_v4 = vadd.f32 %v4217_v25, %v4057_v9  ;;  %v4060_v45 = vpop.f32.mrf.mxu1 }
 0x8f1   :  { %v4061_v28 = vadd.f32 %v4060_v45, %v7939_v49  ;;  %v4221_v33 = vpop.f32.mrf.mxu0 }
 0x8f2   :  { %v4062_v60 = vpop.f32.mrf.mxu1 }
 0x8f3   :  { %v8030_v5 = vadd.f32 %v4221_v33, %v4061_v28  ;;  %v4063_v63 = vadd.f32 %v4062_v60, %v7943_v26  ;;  %v4223_v20 = vpop.f32.mrf.mxu0 }
 0x8f5   :  { %v8033_v51 = vadd.f32 %v4223_v20, %v4063_v63  ;;  %v4066_v14 = vpop.f32.mrf.mxu1 }
 0x8f6   :  { %v4067_v11 = vadd.f32 %v4066_v14, %v7939_v49  ;;  %v4227_v48 = vpop.f32.mrf.mxu0 }
 0x8f7   :  { %v4068_v38 = vpop.f32.mrf.mxu1 }
 0x8f8   :  { %v8036_v46 = vadd.f32 %v4227_v48, %v4067_v11  ;;  %v4069_v9 = vadd.f32 %v4068_v38, %v7943_v26  ;;  %v4229_v25 = vpop.f32.mrf.mxu0 }
 0x8fa   :  { %v8039_v45 = vadd.f32 %v4229_v25, %v4069_v9  ;;  %v4072_v50 = vpop.f32.mrf.mxu1 }
 0x8fb   :  { %v4073_v28 = vadd.f32 %v4072_v50, %v7939_v49  ;;  %v4233_v33 = vpop.f32.mrf.mxu0 }
 0x8fc   :  { %v4074_v60 = vpop.f32.mrf.mxu1 }
 0x8fd   :  { %v8042_v16 = vadd.f32 %v4233_v33, %v4073_v28  ;;  %v4075_v63 = vadd.f32 %v4074_v60, %v7943_v26  ;;  %v4235_v20 = vpop.f32.mrf.mxu0 }
 0x8ff   :  { %v8045_v14 = vadd.f32 %v4235_v20, %v4075_v63  ;;  %v8047_v17 = vpop.f32.mrf.mxu1 }
 0x900   :  { %v8049_v11 = vpop.f32.mrf.mxu0 }
 0x901   :  { %v8051_v48 = vpop.f32.mrf.mxu1 }
 0x902   :  { %v8053_v38 = vpop.f32.mrf.mxu0 }
 0x904   :  { %v4310_v9 = vpop.f32.mrf.mxu1 }
 0x905   :  { %v4311_v50 = vadd.f32 %v4310_v9, %v7950_v41  ;;  %v4471_v25 = vpop.f32.mrf.mxu0 }
 0x906   :  { %v4312_v40 = vpop.f32.mrf.mxu1 }
 0x907   :  { %v4472_v28 = vadd.f32 %v4471_v25, %v4311_v50  ;;  %v4313_v33 = vadd.f32 %v4312_v40, %v7953_v27  ;;  %v4473_v60 = vpop.f32.mrf.mxu0 }
 0x908   :  { %v4316_v56 = vpop.f32.mrf.mxu1 }
 0x909   :  { %5940 = vtanh.f32 %v4472_v28  ;;  %v4474_v63 = vadd.f32 %v4473_v60, %v4313_v33  ;;  %v4317_v20 = vadd.f32 %v4316_v56, %v7960_v34  ;;  %v4477_v55 = vpop.f32.mrf.mxu0 }
 0x90a   :  { %v4318_v15 = vpop.f32.mrf.mxu1 }
 0x90b   :  { %5942 = vtanh.f32 %v4474_v63  ;;  %v4478_v58 = vadd.f32 %v4477_v55, %v4317_v20  ;;  %v4319_v62 = vadd.f32 %v4318_v15, %v7963_v42  ;;  %v4479_v8 = vpop.f32.mrf.mxu0 }
 0x90c   :  { %v4322_v2 = vpop.f32.mrf.mxu1 }
 0x90d   :  { %5944 = vtanh.f32 %v4478_v58  ;;  %v4480_v41 = vadd.f32 %v4479_v8, %v4319_v62  ;;  %v4323_v9 = vadd.f32 %v4322_v2, %v7968_v7  ;;  %v4483_v50 = vpop.f32.mrf.mxu0 }
 0x90e   :  { %v4324_v40 = vpop.f32.mrf.mxu1 }
 0x90f   :  { %5946 = vtanh.f32 %v4480_v41  ;;  %v4484_v27 = vadd.f32 %v4483_v50, %v4323_v9  ;;  %v4325_v25 = vadd.f32 %v4324_v40, %v7973_v54  ;;  %v4485_v28 = vpop.f32.mrf.mxu0 }
 0x910   :  { %v4328_v56 = vpop.f32.mrf.mxu1 }
 0x911   :  { %5948 = vtanh.f32 %v4484_v27  ;;  %v4486_v34 = vadd.f32 %v4485_v28, %v4325_v25  ;;  %v4329_v55 = vadd.f32 %v4328_v56, %v7976_v53  ;;  %v4489_v33 = vpop.f32.mrf.mxu0 }
 0x912   :  { %v4330_v15 = vpop.f32.mrf.mxu1 }
 0x913   :  { %5950 = vtanh.f32 %v4486_v34  ;;  %v4490_v42 = vadd.f32 %v4489_v33, %v4329_v55  ;;  %v4331_v8 = vadd.f32 %v4330_v15, %v7979_v36  ;;  %v4491_v58 = vpop.f32.mrf.mxu0 }
 0x914   :  { %v4334_v2 = vpop.f32.mrf.mxu1 }
 0x915   :  { %5952 = vtanh.f32 %v4490_v42  ;;  %v4492_v62 = vadd.f32 %v4491_v58, %v4331_v8  ;;  %v4335_v7 = vadd.f32 %v4334_v2, %v7982_v31  ;;  %v4495_v54 = vpop.f32.mrf.mxu0 }
 0x916   :  { %v8064_v60 = vpop.eup %5940  ;;  %v4336_v63 = vpop.f32.mrf.mxu1 }
 0x917   :  { %5954 = vtanh.f32 %v4492_v62  ;;  %v4496_v20 = vadd.f32 %v4495_v54, %v4335_v7  ;;  %v4337_v53 = vadd.f32 %v4336_v63, %v7985_v52  ;;  %v4497_v9 = vpop.f32.mrf.mxu0 }
 0x918   :  { %v8067_v41 = vpop.eup %5942  ;;  %v4340_v50 = vpop.f32.mrf.mxu1 }
 0x919   :  { %5956 = vtanh.f32 %v4496_v20  ;;  %v4498_v36 = vadd.f32 %v4497_v9, %v4337_v53  ;;  %v4341_v40 = vadd.f32 %v4340_v50, %v7988_v32  ;;  %v4501_v25 = vpop.f32.mrf.mxu0 }
 0x91a   :  { %v8070_v27 = vpop.eup %5944  ;;  %v4342_v31 = vpop.f32.mrf.mxu1 }
 0x91b   :  { %5958 = vtanh.f32 %v4498_v36  ;;  %v4502_v28 = vadd.f32 %v4501_v25, %v4341_v40  ;;  %v4343_v56 = vadd.f32 %v4342_v31, %v7991_v23  ;;  %v4503_v55 = vpop.f32.mrf.mxu0 }
 0x91c   :  { %v8073_v34 = vpop.eup %5946  ;;  %v4346_v52 = vpop.f32.mrf.mxu1 }
 0x91d   :  { %5960 = vtanh.f32 %v4502_v28  ;;  %v4504_v33 = vadd.f32 %v4503_v55, %v4343_v56  ;;  %v4347_v15 = vadd.f32 %v4346_v52, %v7994_v30  ;;  %v4507_v8 = vpop.f32.mrf.mxu0 }
 0x91e   :  { %v8076_v42 = vpop.eup %5948  ;;  %v4348_v32 = vpop.f32.mrf.mxu1 }
 0x91f   :  { %5962 = vtanh.f32 %v4504_v33  ;;  %v4508_v58 = vadd.f32 %v4507_v8, %v4347_v15  ;;  %v4349_v2 = vadd.f32 %v4348_v32, %v7997_v61  ;;  %v4509_v7 = vpop.f32.mrf.mxu0 }
 0x920   :  { %v8079_v62 = vpop.eup %5950  ;;  %v4352_v23 = vpop.f32.mrf.mxu1 }
 0x921   :  { %5964 = vtanh.f32 %v4508_v58  ;;  %v4510_v54 = vadd.f32 %v4509_v7, %v4349_v2  ;;  %v4353_v63 = vadd.f32 %v4352_v23, %v8000_v10  ;;  %v4513_v53 = vpop.f32.mrf.mxu0 }
 0x922   :  { %v8082_v20 = vpop.eup %5952  ;;  %v4354_v30 = vpop.f32.mrf.mxu1 }
 0x923   :  { %5966 = vtanh.f32 %v4510_v54  ;;  %v4514_v9 = vadd.f32 %v4513_v53, %v4353_v63  ;;  %v4355_v50 = vadd.f32 %v4354_v30, %v8003_v22  ;;  %v4515_v40 = vpop.f32.mrf.mxu0 }
 0x924   :  { %v8085_v36 = vpop.eup %5954  ;;  %v4358_v61 = vpop.f32.mrf.mxu1 }
 0x925   :  { %5968 = vtanh.f32 %v4514_v9  ;;  %v4516_v25 = vadd.f32 %v4515_v40, %v4355_v50  ;;  %v4359_v31 = vadd.f32 %v4358_v61, %v8006_v19  ;;  %v4519_v56 = vpop.f32.mrf.mxu0 }
 0x926   :  { %v8088_v28 = vpop.eup %5956  ;;  %v4360_v10 = vpop.f32.mrf.mxu1 }
 0x927   :  { %5970 = vtanh.f32 %v4516_v25  ;;  %v4520_v55 = vadd.f32 %v4519_v56, %v4359_v31  ;;  %v4361_v52 = vadd.f32 %v4360_v10, %v8009_v59  ;;  %v4521_v15 = vpop.f32.mrf.mxu0 }
 0x928   :  { %v8091_v33 = vpop.eup %5958  ;;  %v4364_v22 = vpop.f32.mrf.mxu1 }
 0x929   :  { %5972 = vtanh.f32 %v4520_v55  ;;  %v4522_v8 = vadd.f32 %v4521_v15, %v4361_v52  ;;  %v4365_v32 = vadd.f32 %v4364_v22, %v8012_v37  ;;  %v4525_v2 = vpop.f32.mrf.mxu0 }
 0x92a   :  { %v8094_v58 = vpop.eup %5960  ;;  %v4366_v19 = vpop.f32.mrf.mxu1 }
 0x92b   :  { %5974 = vtanh.f32 %v4522_v8  ;;  %v4526_v7 = vadd.f32 %v4525_v2, %v4365_v32  ;;  %v4367_v23 = vadd.f32 %v4366_v19, %v8015_v6  ;;  %v4527_v63 = vpop.f32.mrf.mxu0 }
 0x92c   :  { %v8097_v54 = vpop.eup %5962  ;;  %v4370_v59 = vpop.f32.mrf.mxu1 }
 0x92d   :  { %5976 = vtanh.f32 %v4526_v7  ;;  %v4528_v53 = vadd.f32 %v4527_v63, %v4367_v23  ;;  %v4371_v30 = vadd.f32 %v4370_v59, %v8018_v35  ;;  %v4531_v50 = vpop.f32.mrf.mxu0 }
 0x92e   :  { %v8100_v9 = vpop.eup %5964  ;;  %v4372_v37 = vpop.f32.mrf.mxu1 }
 0x92f   :  { %5978 = vtanh.f32 %v4528_v53  ;;  %v4532_v40 = vadd.f32 %v4531_v50, %v4371_v30  ;;  %v4373_v61 = vadd.f32 %v4372_v37, %v8021_v3  ;;  %v4533_v31 = vpop.f32.mrf.mxu0 }
 0x930   :  { %v8103_v25 = vpop.eup %5966  ;;  %v4376_v6 = vpop.f32.mrf.mxu1 }
 0x931   :  { %5980 = vtanh.f32 %v4532_v40  ;;  %v4534_v56 = vadd.f32 %v4533_v31, %v4373_v61  ;;  %v4377_v10 = vadd.f32 %v4376_v6, %v8024_v21  ;;  %v4537_v52 = vpop.f32.mrf.mxu0  ;;  %v4079_v31 = vadd.f32 %v8047_v17, %v7939_v49 }
 0x932   :  { %v8106_v55 = vpop.eup %5968  ;;  %v4378_v35 = vpop.f32.mrf.mxu1 }
 0x933   :  { %5982 = vtanh.f32 %v4534_v56  ;;  %v4538_v15 = vadd.f32 %v4537_v52, %v4377_v10  ;;  %v4379_v22 = vadd.f32 %v4378_v35, %v8027_v4  ;;  %v4539_v32 = vpop.f32.mrf.mxu0  ;;  %v4081_v35 = vadd.f32 %v8051_v48, %v7943_v26 }
 0x934   :  { %v8109_v8 = vpop.eup %5970  ;;  %v4382_v3 = vpop.f32.mrf.mxu1  ;;  %v4240_v17 = vadd.f32 %v8049_v11, %v4079_v31 }
 0x935   :  { %5984 = vtanh.f32 %v4538_v15  ;;  %v4540_v2 = vadd.f32 %v4539_v32, %v4379_v22  ;;  %v4383_v19 = vadd.f32 %v4382_v3, %v8030_v5  ;;  %v4543_v23 = vpop.f32.mrf.mxu0  ;;  %v4242_v26 = vadd.f32 %v8053_v38, %v4081_v35  ;;  %v8732_v35 = vld [vmem:[#allocation89_spill] sm:$0xff] }
 0x936   :  { %v8112_v7 = vpop.eup %5972  ;;  %v4384_v21 = vpop.f32.mrf.mxu1  ;;  %5439 = vmatprep.subr.mxu0 %v8732_v35 }
 0x937   :  { %5986 = vtanh.f32 %v4540_v2  ;;  %v4544_v63 = vadd.f32 %v4543_v23, %v4383_v19  ;;  %v4385_v59 = vadd.f32 %v4384_v21, %v8033_v51  ;;  %v4545_v30 = vpop.f32.mrf.mxu0 }
 0x938   :  { %v8115_v53 = vpop.eup %5974  ;;  %v4388_v4 = vpop.f32.mrf.mxu1 }
 0x939   :  { %5988 = vtanh.f32 %v4544_v63  ;;  %v4546_v50 = vadd.f32 %v4545_v30, %v4385_v59  ;;  %v4389_v37 = vadd.f32 %v4388_v4, %v8036_v46  ;;  %v4549_v61 = vpop.f32.mrf.mxu0 }
 0x93a   :  { %v8118_v40 = vpop.eup %5976  ;;  %v4390_v5 = vpop.f32.mrf.mxu1 }
 0x93b   :  { %5990 = vtanh.f32 %v4546_v50  ;;  %v4550_v6 = vadd.f32 %v4549_v61, %v4389_v37  ;;  %v4391_v56 = vadd.f32 %v4390_v5, %v8039_v45  ;;  %v4551_v10 = vpop.f32.mrf.mxu0 }
 0x93c   :  { %v8123_v51 = vpop.eup %5978  ;;  %v4394_v52 = vpop.f32.mrf.mxu1 }
 0x93d   :  { %5992 = vtanh.f32 %v4550_v6  ;;  %v4552_v46 = vadd.f32 %v4551_v10, %v4391_v56  ;;  %v4395_v15 = vadd.f32 %v4394_v52, %v8042_v16  ;;  %v4555_v32 = vpop.f32.mrf.mxu0  ;;  %v8731_v52 = vld [vmem:[#allocation57_spill] sm:$0xff] }
 0x93e   :  { %v8128_v22 = vpop.eup %5980  ;;  %v4396_v3 = vpop.f32.mrf.mxu1  ;;  %5359 = vmatprep.subr.mxu1 %v8731_v52 }
 0x93f   :  { %5994 = vtanh.f32 %v4552_v46  ;;  %v4556_v49 = vadd.f32 %v4555_v32, %v4395_v15  ;;  %v4397_v45 = vadd.f32 %v4396_v3, %v8045_v14  ;;  %v4557_v19 = vpop.f32.mrf.mxu0 }
 0x940   :  { %v8132_v2 = vpop.eup %5982  ;;  %v4400_v23 = vpop.f32.mrf.mxu1 }
 0x941   :  { %5996 = vtanh.f32 %v4556_v49  ;;  %v4558_v48 = vadd.f32 %v4557_v19, %v4397_v45  ;;  %v4401_v21 = vadd.f32 %v4400_v23, %v4240_v17  ;;  %v4561_v63 = vpop.f32.mrf.mxu0 }
 0x942   :  { %v8135_v16 = vpop.eup %5984  ;;  %v4402_v59 = vpop.f32.mrf.mxu1 }
 0x943   :  { %5998 = vtanh.f32 %v4558_v48  ;;  %v4562_v30 = vadd.f32 %v4561_v63, %v4401_v21  ;;  %v4403_v11 = vadd.f32 %v4402_v59, %v4242_v26  ;;  %v4563_v50 = vpop.f32.mrf.mxu0 }
 0x944   :  { %v8137_v4 = vpop.eup %5986 }
 0x945   :  { %6000 = vtanh.f32 %v4562_v30  ;;  %v4564_v14 = vadd.f32 %v4563_v50, %v4403_v11 }
 0x946   :  { %v8139_v37 = vpop.eup %5988 }
 0x947   :  { %6002 = vtanh.f32 %v4564_v14 }
 0x948   :  { %v8141_v61 = vpop.eup %5990 }
 0x94a   :  { %v8143_v38 = vpop.eup %5992 }
 0x94c   :  { %v8145_v5 = vpop.eup %5994 }
 0x94e   :  { %v8147_v31 = vpop.eup %5996 }
 0x950   :  { %v8149_v6 = vpop.eup %5998 }
 0x952   :  { %v8151_v56 = vpop.eup %6000 }
 0x954   :  { %v8153_v10 = vpop.eup %6002 }
 0x955   :  { %6167 = dma.done.wait [#allocation5 + $0x2], 8192 }
 0x956   :  { %6168 = vsyncadd [#allocation5 + $0x2], 4294959104  ;;  %v8733_v46 = vld [vmem:[#allocation41_spill] sm:$0xff]  ;;  %v8735_v32 = vld [vmem:[#allocation56_spill] sm:$0xff]  ;;  %4762 = vmatprep.mubr.f32.mxu1 %v7829_v57  ;;  %4907 = vmatprep.mubr.f32.mxu0 %v8067_v41  ;;  %vm5004_vm10 = vcmask 64512  }
 0x957   :  { %5360 = vmatpush3.msra.mxu1 %v8733_v46  ;;  %v8734_v15 = vld [vmem:[#allocation73_spill] sm:$0xff]  ;;  %v8736_v3 = vld [vmem:[#allocation88_spill] sm:$0xff]  ;;  %v8739_v45 = vld [vmem:[#allocation55_spill] sm:$0xff] }
 0x958   :  { %5440 = vmatpush3.msra.mxu0 %v8734_v15  ;;  %5361 = vmatprep.subr.mxu1 %v8735_v32  ;;  %v8737_v17 = vld [vmem:[#allocation40_spill] sm:$0xff]  ;;  %v8740_v19 = vld [vmem:[#allocation87_spill] sm:$0xff]  ;;  %v8743_v48 = vld [vmem:[#allocation54_spill] sm:$0xff] }
 0x959   :  { %5441 = vmatprep.subr.mxu0 %v8736_v3  ;;  %5362 = vmatpush3.msra.mxu1 %v8737_v17  ;;  %v8738_v49 = vld [vmem:[#allocation72_spill] sm:$0xff]  ;;  %v8741_v23 = vld [vmem:[#allocation39_spill] sm:$0xff]  ;;  %v8744_v21 = vld [vmem:[#allocation86_spill] sm:$0xff] }
 0x95a   :  { %5442 = vmatpush3.msra.mxu0 %v8738_v49  ;;  %5363 = vmatprep.subr.mxu1 %v8739_v45  ;;  %v8742_v26 = vld [vmem:[#allocation71_spill] sm:$0xff]  ;;  %v8745_v63 = vld [vmem:[#allocation38_spill] sm:$0xff]  ;;  %v8747_v30 = vld [vmem:[#allocation53_spill] sm:$0xff] }
 0x95b   :  { %5443 = vmatprep.subr.mxu0 %v8740_v19  ;;  %5364 = vmatpush3.msra.mxu1 %v8741_v23  ;;  %v8746_v59 = vld [vmem:[#allocation70_spill] sm:$0xff]  ;;  %v8748_v11 = vld [vmem:[#allocation85_spill] sm:$0xff]  ;;  %v8751_v52 = vld [vmem:[#allocation52_spill] sm:$0xff] }
 0x95c   :  { %5444 = vmatpush3.msra.mxu0 %v8742_v26  ;;  %5365 = vmatprep.subr.mxu1 %v8743_v48  ;;  %v8749_v50 = vld [vmem:[#allocation37_spill] sm:$0xff]  ;;  %v8752_v35 = vld [vmem:[#allocation84_spill] sm:$0xff]  ;;  %v8755_v32 = vld [vmem:[#allocation51_spill] sm:$0xff] }
 0x95d   :  { %5445 = vmatprep.subr.mxu0 %v8744_v21  ;;  %5366 = vmatpush3.msra.mxu1 %v8745_v63  ;;  %v8750_v14 = vld [vmem:[#allocation69_spill] sm:$0xff]  ;;  %v8753_v46 = vld [vmem:[#allocation36_spill] sm:$0xff]  ;;  %v8756_v3 = vld [vmem:[#allocation83_spill] sm:$0xff] }
 0x95e   :  { %5446 = vmatpush3.msra.mxu0 %v8746_v59  ;;  %5367 = vmatprep.subr.mxu1 %v8747_v30  ;;  %v8754_v15 = vld [vmem:[#allocation68_spill] sm:$0xff]  ;;  %v8757_v17 = vld [vmem:[#allocation35_spill] sm:$0xff]  ;;  %v8759_v45 = vld [vmem:[#allocation50_spill] sm:$0xff] }
 0x95f   :  { %5447 = vmatprep.subr.mxu0 %v8748_v11  ;;  %5368 = vmatpush3.msra.mxu1 %v8749_v50  ;;  %v8758_v49 = vld [vmem:[#allocation67_spill] sm:$0xff]  ;;  %v8760_v19 = vld [vmem:[#allocation82_spill] sm:$0xff]  ;;  %v8763_v48 = vld [vmem:[#allocation49_spill] sm:$0xff] }
 0x960   :  { %5448 = vmatpush3.msra.mxu0 %v8750_v14  ;;  %5369 = vmatprep.subr.mxu1 %v8751_v52  ;;  %v8761_v23 = vld [vmem:[#allocation34_spill] sm:$0xff]  ;;  %v8764_v21 = vld [vmem:[#allocation81_spill] sm:$0xff]  ;;  %v8767_v30 = vld [vmem:[#allocation48_spill] sm:$0xff] }
 0x961   :  { %5449 = vmatprep.subr.mxu0 %v8752_v35  ;;  %5370 = vmatpush3.msra.mxu1 %v8753_v46  ;;  %v8762_v26 = vld [vmem:[#allocation66_spill] sm:$0xff]  ;;  %v8765_v63 = vld [vmem:[#allocation33_spill] sm:$0xff]  ;;  %v8768_v11 = vld [vmem:[#allocation80_spill] sm:$0xff] }
 0x962   :  { %5450 = vmatpush3.msra.mxu0 %v8754_v15  ;;  %5371 = vmatprep.subr.mxu1 %v8755_v32  ;;  %v8766_v59 = vld [vmem:[#allocation65_spill] sm:$0xff]  ;;  %v8769_v50 = vld [vmem:[#allocation32_spill] sm:$0xff]  ;;  %v8771_v52 = vld [vmem:[#allocation47_spill] sm:$0xff] }
 0x963   :  { %5451 = vmatprep.subr.mxu0 %v8756_v3  ;;  %5372 = vmatpush3.msra.mxu1 %v8757_v17  ;;  %v8770_v14 = vld [vmem:[#allocation64_spill] sm:$0xff]  ;;  %v8772_v35 = vld [vmem:[#allocation79_spill] sm:$0xff]  ;;  %v8775_v32 = vld [vmem:[#allocation46_spill] sm:$0xff] }
 0x964   :  { %5452 = vmatpush3.msra.mxu0 %v8758_v49  ;;  %5373 = vmatprep.subr.mxu1 %v8759_v45  ;;  %v8773_v46 = vld [vmem:[#allocation31_spill] sm:$0xff]  ;;  %v8776_v3 = vld [vmem:[#allocation78_spill] sm:$0xff]  ;;  %v8779_v45 = vld [vmem:[#allocation45_spill] sm:$0xff] }
 0x965   :  { %5453 = vmatprep.subr.mxu0 %v8760_v19  ;;  %5374 = vmatpush3.msra.mxu1 %v8761_v23  ;;  %v8774_v15 = vld [vmem:[#allocation63_spill] sm:$0xff]  ;;  %v8777_v17 = vld [vmem:[#allocation30_spill] sm:$0xff]  ;;  %v8780_v19 = vld [vmem:[#allocation77_spill] sm:$0xff] }
 0x966   :  { %5454 = vmatpush3.msra.mxu0 %v8762_v26  ;;  %5375 = vmatprep.subr.mxu1 %v8763_v48  ;;  %v8778_v49 = vld [vmem:[#allocation62_spill] sm:$0xff]  ;;  %v8781_v23 = vld [vmem:[#allocation29_spill] sm:$0xff]  ;;  %v8783_v48 = vld [vmem:[#allocation44_spill] sm:$0xff] }
 0x967   :  { %5455 = vmatprep.subr.mxu0 %v8764_v21  ;;  %5376 = vmatpush3.msra.mxu1 %v8765_v63  ;;  %v8782_v26 = vld [vmem:[#allocation61_spill] sm:$0xff]  ;;  %v8784_v21 = vld [vmem:[#allocation76_spill] sm:$0xff]  ;;  %v8796_v57 = vld [vmem:[#allocation118_spill] sm:$0xff] }
 0x968   :  { %5456 = vmatpush3.msra.mxu0 %v8766_v59  ;;  %5377 = vmatprep.subr.mxu1 %v8767_v30  ;;  %v8785_v63 = vld [vmem:[#allocation28_spill] sm:$0xff]  ;;  %v8787_v30 = vld [vmem:[#allocation43_spill] sm:$0xff]  ;;  %v8808_v41 = vld [vmem:[#allocation137_spill] sm:$0xff] }
 0x969   :  { %5457 = vmatprep.subr.mxu0 %v8768_v11  ;;  %5378 = vmatpush3.msra.mxu1 %v8769_v50  ;;  %v8786_v59 = vld [vmem:[#allocation60_spill] sm:$0xff]  ;;  %v8788_v11 = vld [vmem:[#allocation75_spill] sm:$0xff] }
 0x96a   :  { %5458 = vmatpush3.msra.mxu0 %v8770_v14  ;;  %5379 = vmatprep.subr.mxu1 %v8771_v52  ;;  %v8789_v50 = vld [vmem:[#allocation27_spill] sm:$0xff]  ;;  %v8791_v52 = vld [vmem:[#allocation42_spill] sm:$0xff] }
 0x96b   :  { %5459 = vmatprep.subr.mxu0 %v8772_v35  ;;  %5380 = vmatpush3.msra.mxu1 %v8773_v46  ;;  %v8790_v14 = vld [vmem:[#allocation59_spill] sm:$0xff]  ;;  %v8792_v35 = vld [vmem:[#allocation74_spill] sm:$0xff] }
 0x96c   :  { %5460 = vmatpush3.msra.mxu0 %v8774_v15  ;;  %5381 = vmatprep.subr.mxu1 %v8775_v32  ;;  %v8793_v46 = vld [vmem:[#allocation26_spill] sm:$0xff] }
 0x96d   :  { %5461 = vmatprep.subr.mxu0 %v8776_v3  ;;  %5382 = vmatpush3.msra.mxu1 %v8777_v17  ;;  %v8794_v15 = vld [vmem:[#allocation58_spill] sm:$0xff] }
 0x96e   :  { %5462 = vmatpush3.msra.mxu0 %v8778_v49  ;;  %5383 = vmatprep.subr.mxu1 %v8779_v45 }
 0x96f   :  { %5463 = vmatprep.subr.mxu0 %v8780_v19  ;;  %5384 = vmatpush3.msra.mxu1 %v8781_v23 }
 0x970   :  { %5464 = vmatpush3.msra.mxu0 %v8782_v26  ;;  %5385 = vmatprep.subr.mxu1 %v8783_v48 }
 0x971   :  { %5465 = vmatprep.subr.mxu0 %v8784_v21  ;;  %5386 = vmatpush3.msra.mxu1 %v8785_v63 }
 0x972   :  { %5466 = vmatpush3.msra.mxu0 %v8786_v59  ;;  %5387 = vmatprep.subr.mxu1 %v8787_v30 }
 0x973   :  { %5467 = vmatprep.subr.mxu0 %v8788_v11  ;;  %5388 = vmatpush3.msra.mxu1 %v8789_v50 }
 0x974   :  { %5468 = vmatpush3.msra.mxu0 %v8790_v14  ;;  %5389 = vmatprep.subr.mxu1 %v8791_v52 }
 0x975   :  { %5469 = vmatprep.subr.mxu0 %v8792_v35  ;;  %5390 = vmatpush3.msra.mxu1 %v8793_v46 }
 0x976   :  { %5470 = vmatpush3.msra.mxu0 %v8794_v15  ;;  %4763 = vmatmul.mubr.f32.vlgmr.msra.gmra.mxu1 %v7823_v24  ;;  %v8795_v24 = vld [vmem:[#allocation134_spill] sm:$0xff] }
 0x977   :  { %4908 = vmatmul.mubr.f32.vlgmr.msra.gmra.mxu0 %v8064_v60  ;;  %4767 = vmatprep.mubr.f32.mxu1 %v7843_v44  ;;  %v8798_v44 = vld [vmem:[#allocation93_spill] sm:$0xff]  ;;  %v8807_v60 = vld [vmem:[#allocation124_spill] sm:$0xff] }
 0x978   :  { %4912 = vmatprep.mubr.f32.mxu0 %v8073_v34  ;;  %v8810_v34 = vld [vmem:[#allocation123_spill] sm:$0xff] }
 0x97a   :  { %4768 = vmatmul.mubr.f32.gmra.mxu1 %v7837_v18  ;;  %v8797_v18 = vld [vmem:[#allocation94_spill] sm:$0xff] }
 0x97b   :  { %4913 = vmatmul.mubr.f32.gmra.mxu0 %v8070_v27  ;;  %4772 = vmatprep.mubr.f32.mxu1 %v7857_v39  ;;  %v8800_v39 = vld [vmem:[#allocation91_spill] sm:$0xff]  ;;  %v8809_v27 = vld [vmem:[#allocation140_spill] sm:$0xff] }
 0x97c   :  { %4917 = vmatprep.mubr.f32.mxu0 %v8079_v62  ;;  %v8812_v62 = vld [vmem:[#allocation139_spill] sm:$0xff] }
 0x97e   :  { %4773 = vmatmul.mubr.f32.gmra.mxu1 %v7851_v1  ;;  %v8799_v1 = vld [vmem:[#allocation92_spill] sm:$0xff] }
 0x97f   :  { %4918 = vmatmul.mubr.f32.gmra.mxu0 %v8076_v42  ;;  %4777 = vmatprep.mubr.f32.mxu1 %v7871_v13  ;;  %v8802_v13 = vld [vmem:[#allocation116_spill] sm:$0xff]  ;;  %v8811_v42 = vld [vmem:[#allocation126_spill] sm:$0xff] }
 0x980   :  { %4922 = vmatprep.mubr.f32.mxu0 %v8085_v36  ;;  %v8814_v36 = vld [vmem:[#allocation125_spill] sm:$0xff] }
 0x982   :  { %4778 = vmatmul.mubr.f32.gmra.mxu1 %v7865_v29  ;;  %v8801_v29 = vld [vmem:[#allocation135_spill] sm:$0xff] }
 0x983   :  { %4923 = vmatmul.mubr.f32.gmra.mxu0 %v8082_v20  ;;  %4782 = vmatprep.mubr.f32.mxu1 %v7885_v43  ;;  %v8804_v43 = vld [vmem:[#allocation133_spill] sm:$0xff] }
 0x984   :  { %4927 = vmatprep.mubr.f32.mxu0 %v8091_v33  ;;  %v8813_v20 = vld [vmem:[#allocation101_spill] sm:$0xff] }
 0x986   :  { %4783 = vmatmul.mubr.f32.gmra.mxu1 %v7879_v47  ;;  %v8803_v47 = vld [vmem:[#allocation122_spill] sm:$0xff] }
 0x987   :  { %4928 = vmatmul.mubr.f32.gmra.mxu0 %v8088_v28  ;;  %4787 = vmatprep.mubr.f32.mxu1 %v7892_v12  ;;  %v8806_v12 = vld [vmem:[#allocation120_spill] sm:$0xff] }
 0x988   :  { %4932 = vmatprep.mubr.f32.mxu0 %v8097_v54 }
 0x98a   :  { %4788 = vmatmul.mubr.f32.gmra.mxu1 %v7889_v0  ;;  %v8805_v0 = vld [vmem:[#allocation138_spill] sm:$0xff] }
 0x98b   :  { %4933 = vmatmul.mubr.f32.gmra.mxu0 %v8094_v58  ;;  %4792 = vmatprep.mubr.f32.mxu1 %v8795_v24  ;;  %v8283_v58 = vld [vmem:[#allocation11 + $0x38] ss:$0 sm:$0xff] }
 0x98c   :  { %4937 = vmatprep.mubr.f32.mxu0 %v8103_v25 }
 0x98e   :  { %4793 = vmatmul.mubr.f32.gmra.mxu1 %v8796_v57 }
 0x98f   :  { %4938 = vmatmul.mubr.f32.gmra.mxu0 %v8100_v9  ;;  %4797 = vmatprep.mubr.f32.mxu1 %v8797_v18 }
 0x990   :  { %4942 = vmatprep.mubr.f32.mxu0 %v8109_v8 }
 0x992   :  { %4798 = vmatmul.mubr.f32.gmra.mxu1 %v8798_v44 }
 0x993   :  { %4943 = vmatmul.mubr.f32.gmra.mxu0 %v8106_v55  ;;  %4802 = vmatprep.mubr.f32.mxu1 %v8799_v1 }
 0x994   :  { %4947 = vmatprep.mubr.f32.mxu0 %v8115_v53 }
 0x996   :  { %4803 = vmatmul.mubr.f32.gmra.mxu1 %v8800_v39 }
 0x997   :  { %4948 = vmatmul.mubr.f32.gmra.mxu0 %v8112_v7  ;;  %4807 = vmatprep.mubr.f32.mxu1 %v8801_v29 }
 0x998   :  { %4952 = vmatprep.mubr.f32.mxu0 %v8123_v51 }
 0x99a   :  { %4808 = vmatmul.mubr.f32.gmra.mxu1 %v8802_v13 }
 0x99b   :  { %4953 = vmatmul.mubr.f32.gmra.mxu0 %v8118_v40  ;;  %4812 = vmatprep.mubr.f32.mxu1 %v8803_v47 }
 0x99c   :  { %4957 = vmatprep.mubr.f32.mxu0 %v8132_v2 }
 0x99e   :  { %4813 = vmatmul.mubr.f32.gmra.mxu1 %v8804_v43 }
 0x99f   :  { %4958 = vmatmul.mubr.f32.gmra.mxu0 %v8128_v22  ;;  %4817 = vmatprep.mubr.f32.mxu1 %v8805_v0 }
 0x9a0   :  { %4962 = vmatprep.mubr.f32.mxu0 %v8137_v4 }
 0x9a2   :  { %4818 = vmatmul.mubr.f32.gmra.mxu1 %v8806_v12 }
 0x9a3   :  { %4963 = vmatmul.mubr.f32.gmra.mxu0 %v8135_v16  ;;  %4822 = vmatprep.mubr.f32.mxu1 %v8807_v60 }
 0x9a4   :  { %4967 = vmatprep.mubr.f32.mxu0 %v8141_v61 }
 0x9a6   :  { %4823 = vmatmul.mubr.f32.gmra.mxu1 %v8808_v41 }
 0x9a7   :  { %4968 = vmatmul.mubr.f32.gmra.mxu0 %v8139_v37  ;;  %4827 = vmatprep.mubr.f32.mxu1 %v8809_v27 }
 0x9a8   :  { %4972 = vmatprep.mubr.f32.mxu0 %v8145_v5 }
 0x9aa   :  { %4828 = vmatmul.mubr.f32.gmra.mxu1 %v8810_v34 }
 0x9ab   :  { %4973 = vmatmul.mubr.f32.gmra.mxu0 %v8143_v38  ;;  %4832 = vmatprep.mubr.f32.mxu1 %v8811_v42 }
 0x9ac   :  { %4977 = vmatprep.mubr.f32.mxu0 %v8149_v6 }
 0x9ae   :  { %4833 = vmatmul.mubr.f32.gmra.mxu1 %v8812_v62 }
 0x9af   :  { %4978 = vmatmul.mubr.f32.gmra.mxu0 %v8147_v31  ;;  %4837 = vmatprep.mubr.f32.mxu1 %v8813_v20 }
 0x9b0   :  { %4982 = vmatprep.mubr.f32.mxu0 %v8153_v10 }
 0x9b2   :  { %4838 = vmatmul.mubr.f32.gmra.mxu1 %v8814_v36 }
 0x9b3   :  { %4983 = vmatmul.mubr.f32.gmra.mxu0 %v8151_v56 }
 0xa36   :  { %v5391_v28 = vpop.f32.mrf.mxu1 }
 0xa37   :  { %v5471_v33 = vpop.f32.mrf.mxu0 }
 0xa38   :  { %v5392_v54 = vpop.f32.mrf.mxu1 }
 0xa39   :  { %v5472_v9 = vpop.f32.mrf.mxu0  ;;  %v5393_v25 = vadd.f32 %v5392_v54, %v5391_v28 }
 0xa3a   :  { %v5394_v55 = vpop.f32.mrf.mxu1  ;;  %v5473_v53 = vadd.f32 %v5472_v9, %v5471_v33 }
 0xa3b   :  { %v5474_v8 = vpop.f32.mrf.mxu0  ;;  %v4765_v7 = vadd.f32 %v5393_v25, %v8283_v58 }
 0xa3c   :  { %v5395_v40 = vpop.f32.mrf.mxu1 }
 0xa3d   :  { %v5475_v51 = vpop.f32.mrf.mxu0  ;;  %v4910_v22 = vadd.f32 %v5473_v53, %v4765_v7  ;;  %v5396_v2 = vadd.f32 %v5395_v40, %v5394_v55 }
 0xa3e   :  { %v5397_v16 = vpop.f32.mrf.mxu1  ;;  %v5476_v61 = vadd.f32 %v5475_v51, %v5474_v8 }
 0xa3f   :  { %v5477_v4 = vpop.f32.mrf.mxu0  ;;  %6005 = vtanh.f32 %v4910_v22  ;;  %v4770_v37 = vadd.f32 %v5396_v2, %v8283_v58 }
 0xa40   :  { %v5398_v38 = vpop.f32.mrf.mxu1 }
 0xa41   :  { %v5478_v5 = vpop.f32.mrf.mxu0  ;;  %v4915_v31 = vadd.f32 %v5476_v61, %v4770_v37  ;;  %v5399_v6 = vadd.f32 %v5398_v38, %v5397_v16 }
 0xa42   :  { %v5400_v56 = vpop.f32.mrf.mxu1  ;;  %v5479_v3 = vadd.f32 %v5478_v5, %v5477_v4 }
 0xa43   :  { %v5480_v10 = vpop.f32.mrf.mxu0  ;;  %6007 = vtanh.f32 %v4915_v31  ;;  %v4775_v32 = vadd.f32 %v5399_v6, %v8283_v58 }
 0xa44   :  { %v5401_v17 = vpop.f32.mrf.mxu1 }
 0xa45   :  { %v5481_v49 = vpop.f32.mrf.mxu0  ;;  %v4920_v45 = vadd.f32 %v5479_v3, %v4775_v32  ;;  %v5402_v19 = vadd.f32 %v5401_v17, %v5400_v56 }
 0xa46   :  { %v5403_v23 = vpop.f32.mrf.mxu1  ;;  %v5482_v21 = vadd.f32 %v5481_v49, %v5480_v10 }
 0xa47   :  { %v5483_v26 = vpop.f32.mrf.mxu0  ;;  %6009 = vtanh.f32 %v4920_v45  ;;  %v4780_v48 = vadd.f32 %v5402_v19, %v8283_v58 }
 0xa48   :  { %v5404_v63 = vpop.f32.mrf.mxu1 }
 0xa49   :  { %v5484_v59 = vpop.f32.mrf.mxu0  ;;  %v4925_v30 = vadd.f32 %v5482_v21, %v4780_v48  ;;  %v5405_v11 = vadd.f32 %v5404_v63, %v5403_v23 }
 0xa4a   :  { %v5406_v50 = vpop.f32.mrf.mxu1  ;;  %v5485_v35 = vadd.f32 %v5484_v59, %v5483_v26 }
 0xa4b   :  { %v5486_v14 = vpop.f32.mrf.mxu0  ;;  %6011 = vtanh.f32 %v4925_v30  ;;  %v4785_v52 = vadd.f32 %v5405_v11, %v8283_v58 }
 0xa4c   :  { %v6006_v46 = vpop.eup %6005  ;;  %v5407_v15 = vpop.f32.mrf.mxu1 }
 0xa4d   :  { %v5487_v24 = vpop.f32.mrf.mxu0  ;;  %5005 = vst.msk [vmem:[%s8373_s8] sm:$0xff] %vm5004_vm10, %v6006_v46  ;;  %v4930_v57 = vadd.f32 %v5485_v35, %v4785_v52  ;;  %v5408_v18 = vadd.f32 %v5407_v15, %v5406_v50 }
 0xa4e   :  { %v5409_v44 = vpop.f32.mrf.mxu1  ;;  %v5488_v29 = vadd.f32 %v5487_v24, %v5486_v14 }
 0xa4f   :  { %v5489_v1 = vpop.f32.mrf.mxu0  ;;  %6013 = vtanh.f32 %v4930_v57  ;;  %v4790_v39 = vadd.f32 %v5408_v18, %v8283_v58 }
 0xa50   :  { %v6008_v13 = vpop.eup %6007  ;;  %v5410_v47 = vpop.f32.mrf.mxu1 }
 0xa51   :  { %v5490_v43 = vpop.f32.mrf.mxu0  ;;  %5006 = vst.msk [vmem:[%s8373_s8 + $0x8] sm:$0xff] %vm5004_vm10, %v6008_v13  ;;  %v4935_v0 = vadd.f32 %v5488_v29, %v4790_v39  ;;  %v5411_v12 = vadd.f32 %v5410_v47, %v5409_v44 }
 0xa52   :  { %v5412_v60 = vpop.f32.mrf.mxu1  ;;  %v5491_v34 = vadd.f32 %v5490_v43, %v5489_v1 }
 0xa53   :  { %v5492_v41 = vpop.f32.mrf.mxu0  ;;  %6015 = vtanh.f32 %v4935_v0  ;;  %v4795_v27 = vadd.f32 %v5411_v12, %v8283_v58 }
 0xa54   :  { %v6010_v42 = vpop.eup %6009  ;;  %v5413_v62 = vpop.f32.mrf.mxu1 }
 0xa55   :  { %v5493_v20 = vpop.f32.mrf.mxu0  ;;  %5007 = vst.msk [vmem:[%s8373_s8 + $0x10] sm:$0xff] %vm5004_vm10, %v6010_v42  ;;  %v4940_v36 = vadd.f32 %v5491_v34, %v4795_v27  ;;  %v5414_v28 = vadd.f32 %v5413_v62, %v5412_v60 }
 0xa56   :  { %v5415_v33 = vpop.f32.mrf.mxu1  ;;  %v5494_v25 = vadd.f32 %v5493_v20, %v5492_v41 }
 0xa57   :  { %v5495_v54 = vpop.f32.mrf.mxu0  ;;  %6017 = vtanh.f32 %v4940_v36  ;;  %v4800_v9 = vadd.f32 %v5414_v28, %v8283_v58 }
 0xa58   :  { %v6012_v55 = vpop.eup %6011  ;;  %v5416_v8 = vpop.f32.mrf.mxu1 }
 0xa59   :  { %v5496_v7 = vpop.f32.mrf.mxu0  ;;  %5008 = vst.msk [vmem:[%s8373_s8 + $0x18] sm:$0xff] %vm5004_vm10, %v6012_v55  ;;  %v4945_v53 = vadd.f32 %v5494_v25, %v4800_v9  ;;  %v5417_v40 = vadd.f32 %v5416_v8, %v5415_v33 }
 0xa5a   :  { %v5418_v51 = vpop.f32.mrf.mxu1  ;;  %v5497_v16 = vadd.f32 %v5496_v7, %v5495_v54 }
 0xa5b   :  { %v5498_v22 = vpop.f32.mrf.mxu0  ;;  %6019 = vtanh.f32 %v4945_v53  ;;  %v4805_v2 = vadd.f32 %v5417_v40, %v8283_v58 }
 0xa5c   :  { %v6014_v4 = vpop.eup %6013  ;;  %v5419_v37 = vpop.f32.mrf.mxu1 }
 0xa5d   :  { %v5499_v61 = vpop.f32.mrf.mxu0  ;;  %5009 = vst.msk [vmem:[%s8373_s8 + $0x20] sm:$0xff] %vm5004_vm10, %v6014_v4  ;;  %v4950_v38 = vadd.f32 %v5497_v16, %v4805_v2  ;;  %v5420_v5 = vadd.f32 %v5419_v37, %v5418_v51 }
 0xa5e   :  { %v5421_v31 = vpop.f32.mrf.mxu1  ;;  %v5500_v10 = vadd.f32 %v5499_v61, %v5498_v22 }
 0xa5f   :  { %v5501_v6 = vpop.f32.mrf.mxu0  ;;  %6021 = vtanh.f32 %v4950_v38  ;;  %v4810_v56 = vadd.f32 %v5420_v5, %v8283_v58 }
 0xa60   :  { %v6016_v32 = vpop.eup %6015  ;;  %v5422_v3 = vpop.f32.mrf.mxu1 }
 0xa61   :  { %v5502_v17 = vpop.f32.mrf.mxu0  ;;  %5010 = vst.msk [vmem:[%s8373_s8 + $0x28] sm:$0xff] %vm5004_vm10, %v6016_v32  ;;  %v4955_v49 = vadd.f32 %v5500_v10, %v4810_v56  ;;  %v5423_v45 = vadd.f32 %v5422_v3, %v5421_v31 }
 0xa62   :  { %v5424_v19 = vpop.f32.mrf.mxu1  ;;  %v5503_v48 = vadd.f32 %v5502_v17, %v5501_v6 }
 0xa63   :  { %v5504_v23 = vpop.f32.mrf.mxu0  ;;  %6023 = vtanh.f32 %v4955_v49  ;;  %v4815_v26 = vadd.f32 %v5423_v45, %v8283_v58 }
 0xa64   :  { %v6018_v21 = vpop.eup %6017  ;;  %v5425_v63 = vpop.f32.mrf.mxu1 }
 0xa65   :  { %v5505_v59 = vpop.f32.mrf.mxu0  ;;  %5011 = vst.msk [vmem:[%s8373_s8 + $0x30] sm:$0xff] %vm5004_vm10, %v6018_v21  ;;  %v4960_v30 = vadd.f32 %v5503_v48, %v4815_v26  ;;  %v5426_v11 = vadd.f32 %v5425_v63, %v5424_v19 }
 0xa66   :  { %v5427_v50 = vpop.f32.mrf.mxu1  ;;  %v5506_v35 = vadd.f32 %v5505_v59, %v5504_v23 }
 0xa67   :  { %v5507_v14 = vpop.f32.mrf.mxu0  ;;  %6025 = vtanh.f32 %v4960_v30  ;;  %v4820_v52 = vadd.f32 %v5426_v11, %v8283_v58 }
 0xa68   :  { %v6020_v46 = vpop.eup %6019  ;;  %v5428_v15 = vpop.f32.mrf.mxu1 }
 0xa69   :  { %v5508_v24 = vpop.f32.mrf.mxu0  ;;  %5012 = vst.msk [vmem:[%s8373_s8 + $0x38] sm:$0xff] %vm5004_vm10, %v6020_v46  ;;  %v4965_v57 = vadd.f32 %v5506_v35, %v4820_v52  ;;  %v5429_v18 = vadd.f32 %v5428_v15, %v5427_v50 }
 0xa6a   :  { %v5430_v44 = vpop.f32.mrf.mxu1  ;;  %v5509_v29 = vadd.f32 %v5508_v24, %v5507_v14 }
 0xa6b   :  { %v5510_v1 = vpop.f32.mrf.mxu0  ;;  %6027 = vtanh.f32 %v4965_v57  ;;  %v4825_v39 = vadd.f32 %v5429_v18, %v8283_v58 }
 0xa6c   :  { %v6022_v13 = vpop.eup %6021  ;;  %v5431_v47 = vpop.f32.mrf.mxu1 }
 0xa6d   :  { %v5511_v43 = vpop.f32.mrf.mxu0  ;;  %5013 = vst.msk [vmem:[%s8373_s8 + $0x40] sm:$0xff] %vm5004_vm10, %v6022_v13  ;;  %v4970_v0 = vadd.f32 %v5509_v29, %v4825_v39  ;;  %v5432_v12 = vadd.f32 %v5431_v47, %v5430_v44 }
 0xa6e   :  { %v5433_v60 = vpop.f32.mrf.mxu1  ;;  %v5512_v34 = vadd.f32 %v5511_v43, %v5510_v1 }
 0xa6f   :  { %v5513_v41 = vpop.f32.mrf.mxu0  ;;  %6029 = vtanh.f32 %v4970_v0  ;;  %v4830_v27 = vadd.f32 %v5432_v12, %v8283_v58 }
 0xa70   :  { %v6024_v42 = vpop.eup %6023  ;;  %v5434_v62 = vpop.f32.mrf.mxu1 }
 0xa71   :  { %v5514_v20 = vpop.f32.mrf.mxu0  ;;  %5014 = vst.msk [vmem:[%s8373_s8 + $0x48] sm:$0xff] %vm5004_vm10, %v6024_v42  ;;  %v4975_v36 = vadd.f32 %v5512_v34, %v4830_v27  ;;  %v5435_v28 = vadd.f32 %v5434_v62, %v5433_v60 }
 0xa72   :  { %v5436_v33 = vpop.f32.mrf.mxu1  ;;  %v5515_v25 = vadd.f32 %v5514_v20, %v5513_v41 }
 0xa73   :  { %v5516_v54 = vpop.f32.mrf.mxu0  ;;  %6031 = vtanh.f32 %v4975_v36  ;;  %v4835_v9 = vadd.f32 %v5435_v28, %v8283_v58 }
 0xa74   :  { %v6026_v55 = vpop.eup %6025  ;;  %v5437_v8 = vpop.f32.mrf.mxu1 }
 0xa75   :  { %v5517_v7 = vpop.f32.mrf.mxu0  ;;  %5015 = vst.msk [vmem:[%s8373_s8 + $0x50] sm:$0xff] %vm5004_vm10, %v6026_v55  ;;  %v4980_v53 = vadd.f32 %v5515_v25, %v4835_v9  ;;  %v5438_v40 = vadd.f32 %v5437_v8, %v5436_v33 }
 0xa76   :  { %v5518_v22 = vadd.f32 %v5517_v7, %v5516_v54 }
 0xa77   :  { %6033 = vtanh.f32 %v4980_v53  ;;  %v4840_v51 = vadd.f32 %v5438_v40, %v8283_v58 }
 0xa78   :  { %v6028_v2 = vpop.eup %6027 }
 0xa79   :  { %5016 = vst.msk [vmem:[%s8373_s8 + $0x58] sm:$0xff] %vm5004_vm10, %v6028_v2  ;;  %v4985_v16 = vadd.f32 %v5518_v22, %v4840_v51 }
 0xa7b   :  { %6035 = vtanh.f32 %v4985_v16 }
 0xa7c   :  { %v6030_v4 = vpop.eup %6029 }
 0xa7d   :  { %5017 = vst.msk [vmem:[%s8373_s8 + $0x60] sm:$0xff] %vm5004_vm10, %v6030_v4 }
 0xa80   :  { %v6032_v37 = vpop.eup %6031 }
 0xa81   :  { %5018 = vst.msk [vmem:[%s8373_s8 + $0x68] sm:$0xff] %vm5004_vm10, %v6032_v37 }
 0xa84   :  { %v6034_v58 = vpop.eup %6033 }
 0xa85   :  { %5019 = vst.msk [vmem:[%s8373_s8 + $0x70] sm:$0xff] %vm5004_vm10, %v6034_v58 }
 0xa88   :  { %v6036_v61 = vpop.eup %6035 }
 0xa89   :  { %5020 = vst.msk [vmem:[%s8373_s8 + $0x78] sm:$0xff] %vm5004_vm10, %v6036_v61 }
 0xa8a   :  { %5025 = vsyncpa [#allocation7], 1 }
 0xa8b   :  { %5026 = vsyncpa [#allocation9], 1 }
 0xa8c   :  { %5027 = vsyncpa [#allocation12], 1 }
 0xa8d   :  { %5028 = vsyncmov [#allocation5] }
 0xa90   :  { %s5029_s17 = vpop.sfrf %5028 }
 0xa91   :  { %p5140_p2 = scmp.ne.s32.totalorder %s5029_s17, 0 }
 0xa93   :  { %5033 = shalt.err (%p5140_p2)  }
 0xa94   :  { %5035 = vsyncmov [#allocation5 + $0x1] }
 0xa97   :  { %s5036_s18 = vpop.sfrf %5035 }
 0xa98   :  { %p5141_p3 = scmp.ne.s32.totalorder %s5036_s18, 0 }
 0xa9a   :  { %5040 = shalt.err (%p5141_p3)  }
 0xa9b   :  { %5042 = vsyncmov [#allocation5 + $0x2] }
 0xa9e   :  { %s5043_s19 = vpop.sfrf %5042 }
 0xa9f   :  { %p5142_p4 = scmp.ne.s32.totalorder %s5043_s19, 0 }
 0xaa1   :  { %5047 = shalt.err (%p5142_p4)  }

</bundles_post_ra>
